<compile_context>
chip_gen: v5e
topology: v5e:2x2
jax: 0.10.0
libtpu: 0.0.40
codegen_flags: <defaults>
</compile_context>

<pallas_src>
import functools
import math

import jax
import jax.numpy as jnp
from jax.experimental import pallas as pl
from jax.experimental.pallas import tpu as pltpu

# ----------------------------- config (small) -------------------------------
D_MODEL = 32
NHEAD = 4
HEAD_DIM = D_MODEL // NHEAD
NUM_ENC_LAYERS = 2
NUM_DEC_LAYERS = 2
DIM_FF = 64
VOCAB = 64               # stand-in for len(tokenizer) + num_queries + 2
MAX_DEC_STEP = 16        # max_decoding_step / max_position_embeddings
LN_EPS = 1e-5

SELF_ATTN_SCALE = math.sqrt(HEAD_DIM)         # quirk of the original custom MHA
CROSS_ATTN_SCALE = 1.0 / math.sqrt(HEAD_DIM)  # standard nn.MultiheadAttention
NEG_INF = -1e30


# ----------------------- in-kernel building blocks --------------------------
def _ln(x, g, b, eps=LN_EPS):
    x = x.astype(jnp.float32)
    mu = jnp.mean(x, axis=-1, keepdims=True)
    var = jnp.mean(jnp.square(x - mu), axis=-1, keepdims=True)
    return (x - mu) * jax.lax.rsqrt(var + eps) * g + b


def _dense(x, w, b):
    # x: (B, S, Din) f32, w: (Din, Dout) bf16, b: (1, Dout) f32
    bsz, s, din = x.shape
    y = jnp.dot(x.reshape(bsz * s, din).astype(jnp.bfloat16), w,
                preferred_element_type=jnp.float32) + b
    return y.reshape(bsz, s, w.shape[1])


def _split_heads(x3):
    # (B, S, H*Hd) -> (H*B, S, Hd): heads folded (head-major) into the leading
    # batch axis so every attention matmul is ONE batched einsum.
    return jnp.concatenate(
        [x3[:, :, h * HEAD_DIM:(h + 1) * HEAD_DIM] for h in range(NHEAD)],
        axis=0).astype(jnp.bfloat16)


def _pad_bias(key_pad, sq):
    # key_pad: (B, Sk) float, 1.0 == padded key.  Additive bias (H*B, Sq, Sk),
    # pre-broadcast + head-tiled ONCE (hoisted out of the layer loop).
    b, sk = key_pad.shape
    bias = jnp.where(key_pad[:, None, :] > 0.5,
                     jnp.float32(NEG_INF), jnp.float32(0.0))        # (B,1,Sk)
    bias = jnp.broadcast_to(bias, (b, sq, sk))
    return jnp.concatenate([bias] * NHEAD, axis=0)                  # (H*B,Sq,Sk)


def _causal_bias(b, sq):
    qi = jax.lax.broadcasted_iota(jnp.int32, (sq, sq), 0)
    ki = jax.lax.broadcasted_iota(jnp.int32, (sq, sq), 1)
    bias = jnp.where(ki > qi, jnp.float32(NEG_INF), jnp.float32(0.0))
    return jnp.broadcast_to(bias[None, :, :], (NHEAD * b, sq, sq))


def _mha(q3, k3, v3, wo_h, bo, *, bias, scale):
    """All-heads attention + out-projection with the head merge folded in.

    q3: (B,Sq,D) f32, k3/v3: (B,Sk,D) f32, wo_h: (H,Hd,D) bf16, bo: (1,D) f32,
    bias: (H*B, Sq, Sk) additive mask (0 / -1e30), hoisted by the caller.
    """
    bsz, sq, _ = q3.shape
    d_out = wo_h.shape[-1]
    qh = _split_heads(q3)                      # (HB, Sq, Hd) bf16
    kh = _split_heads(k3)
    vh = _split_heads(v3)

    s = jnp.einsum('bqd,bkd->bqk', qh, kh,
                   preferred_element_type=jnp.float32) * scale + bias
    m = jnp.max(s, axis=-1, keepdims=True)
    p = jnp.exp(s - m)
    # softmax denominator on the EUP (approx reciprocal); normalization folded
    # into p before the bf16 PV matmul (avoids a denom transpose later).
    p = p * pl.reciprocal(jnp.sum(p, axis=-1, keepdims=True), approx=True)
    o = jnp.einsum('bqk,bkd->bqd', p.astype(jnp.bfloat16), vh,
                   preferred_element_type=jnp.float32)               # (HB,Sq,Hd)

    # head merge folded into the out-projection: one batched einsum + sum over h
    o = o.reshape(NHEAD, bsz * sq, HEAD_DIM).astype(jnp.bfloat16)
    out = jnp.sum(jnp.einsum('hqd,hde->hqe', o, wo_h,
                             preferred_element_type=jnp.float32), axis=0)
    return (out + bo).reshape(bsz, sq, d_out)


def _self_attn_block(x_qk, x_v, wqk, bqk, wv, bv, wo_h, bo, *, bias, scale):
    # Q and K share their input (x + pos) -> fused D->2D projection; V uses the
    # raw residual stream (different input), so it cannot be folded into the
    # same matmul without changing semantics.
    d = x_qk.shape[-1]
    qk = _dense(x_qk, wqk, bqk)
    v3 = _dense(x_v, wv, bv)
    return _mha(qk[:, :, :d], qk[:, :, d:], v3, wo_h, bo, bias=bias, scale=scale)


def _cross_attn_block(x_q, x_k, x_v, wq, bq, wk, bk, wv, bv, wo_h, bo, *, bias, scale):
    return _mha(_dense(x_q, wq, bq), _dense(x_k, wk, bk), _dense(x_v, wv, bv),
                wo_h, bo, bias=bias, scale=scale)


def _ffn_block(x, w1, b1, w2, b2):
    h = jnp.maximum(_dense(x, w1, b1), 0.0)   # relu
    return _dense(h, w2, b2)


# --------------------------- fused encoder kernel ----------------------------
def _encoder_kernel(src_ref, pos_ref, mask_ref, ng_ref, nb_ref,
                    wqk_ref, bqk_ref, wv_ref, bv_ref, wo_ref, bo_ref,
                    w1_ref, b1_ref, w2_ref, b2_ref,
                    n1g_ref, n1b_ref, n2g_ref, n2b_ref,
                    out_ref, *, hw, num_layers):
    x = src_ref[...].astype(jnp.float32)          # (B, S, D)  [image ++ text rows]
    pos = pos_ref[...].astype(jnp.float32)        # (B, S, D)
    bsz, s_total, _ = x.shape

    # initial `self.norm` applies only to the image rows; row-id select (no copy)
    row = jax.lax.broadcasted_iota(jnp.int32, x.shape, 1)
    x = jnp.where(row < hw, _ln(x, ng_ref[...], nb_ref[...]), x)

    # additive key-padding bias, built once (hoisted out of the layer loop)
    bias = _pad_bias(mask_ref[...], s_total)      # (H*B, S, S)

    for l in range(num_layers):
        xp = x + pos
        sa = _self_attn_block(xp, x,
                              wqk_ref[l], bqk_ref[l], wv_ref[l], bv_ref[l],
                              wo_ref[l], bo_ref[l],
                              bias=bias, scale=SELF_ATTN_SCALE)
        x = _ln(x + sa, n1g_ref[l], n1b_ref[l])            # dropout_add -> add (eval)
        ff = _ffn_block(x, w1_ref[l], b1_ref[l], w2_ref[l], b2_ref[l])
        x = _ln(x + ff, n2g_ref[l], n2b_ref[l])
    out_ref[...] = x.astype(out_ref.dtype)


# --------------------------- fused decoder kernel ----------------------------
def _decoder_kernel(tgt_ref, qpos_ref, mem_ref, mpos_ref, mmask_ref,
                    eln_g_ref, eln_b_ref,
                    sa_wqk_ref, sa_bqk_ref, sa_wv_ref, sa_bv_ref, sa_wo_ref, sa_bo_ref,
                    ca_wq_ref, ca_bq_ref, ca_wk_ref, ca_bk_ref, ca_wv_ref, ca_bv_ref,
                    ca_wo_ref, ca_bo_ref,
                    w1_ref, b1_ref, w2_ref, b2_ref,
                    n1g_ref, n1b_ref, n3g_ref, n3b_ref, n4g_ref, n4b_ref,
                    out_ref, *, num_layers):
    # DecoderEmbeddings LayerNorm fused in-kernel (word+pos gather done outside)
    tgt = _ln(tgt_ref[...], eln_g_ref[...], eln_b_ref[...])   # (B, Sd, D)
    qpos = qpos_ref[...].astype(jnp.float32)                  # (1, Sd, D)
    mem = mem_ref[...].astype(jnp.float32)                    # (B, Sm, D)
    mem_p = mem + mpos_ref[...].astype(jnp.float32)           # hoisted memory+pos
    bsz, sd, _ = tgt.shape

    # masks built once, additive, pre-broadcast + head-tiled (hoisted)
    self_bias = _causal_bias(bsz, sd)                         # (H*B, Sd, Sd)
    cross_bias = _pad_bias(mmask_ref[...], sd)                # (H*B, Sd, Sm)

    for l in range(num_layers):
        q = tgt + qpos
        sa = _self_attn_block(q, tgt,
                              sa_wqk_ref[l], sa_bqk_ref[l], sa_wv_ref[l], sa_bv_ref[l],
                              sa_wo_ref[l], sa_bo_ref[l],
                              bias=self_bias, scale=SELF_ATTN_SCALE)
        tgt = _ln(tgt + sa, n1g_ref[l], n1b_ref[l])
        ca = _cross_attn_block(tgt + qpos, mem_p, mem,
                               ca_wq_ref[l], ca_bq_ref[l], ca_wk_ref[l], ca_bk_ref[l],
                               ca_wv_ref[l], ca_bv_ref[l], ca_wo_ref[l], ca_bo_ref[l],
                               bias=cross_bias, scale=CROSS_ATTN_SCALE)
        tgt = _ln(tgt + ca, n3g_ref[l], n3b_ref[l])
        ff = _ffn_block(tgt, w1_ref[l], b1_ref[l], w2_ref[l], b2_ref[l])
        tgt = _ln(tgt + ff, n4g_ref[l], n4b_ref[l])
    out_ref[...] = tgt.astype(out_ref.dtype)


# ------------------------------ call helpers ---------------------------------
def _cost_estimate(flops, transcendentals, args, out_shape):
    bytes_accessed = sum(int(a.size) * a.dtype.itemsize for a in args)
    bytes_accessed += math.prod(out_shape) * 4
    return pl.CostEstimate(flops=int(flops), transcendentals=int(transcendentals),
                           bytes_accessed=int(bytes_accessed))


_VMEM_SPEC = pl.BlockSpec(memory_space=pltpu.MemorySpace.VMEM)
_COMPILER_PARAMS = pltpu.CompilerParams(vmem_limit_bytes=64 * 1024 * 1024)


# --------------------------- Transformer forward -----------------------------
@jax.jit
def transformer_encode(params, src, mask, query_embed, pos_embed, text):
    """encode_and_save=True branch."""
    text_attention_mask, text_memory_resized, tokenized = text
    bs, c, h, w = src.shape
    hw = h * w
    t_txt = text_memory_resized.shape[0]
    s_total = hw + t_txt

    # build everything batch-major (B, S, D); no later transpose round-trips
    src_b = src.reshape(bs, c, hw).transpose(0, 2, 1)            # (B, HW, D)
    pos_b = pos_embed.reshape(bs, c, hw).transpose(0, 2, 1)      # (B, HW, D)
    txt_b = text_memory_resized.transpose(1, 0, 2)               # (B, T, D)
    query_embed_t = jnp.tile(query_embed[:, None, :], (1, bs, 1))  # (Q, B, D)
    mask_img = mask.reshape(bs, hw)
    tgt = jnp.zeros_like(query_embed_t)                          # pass_pos_and_query

    src_cat = jnp.concatenate([src_b, txt_b], axis=1)            # (B, S, D)
    pos_cat_b = jnp.concatenate([pos_b, jnp.zeros_like(txt_b)], axis=1)
    mask_cat = jnp.concatenate([mask_img.astype(jnp.bool_),
                                text_attention_mask.astype(jnp.bool_)], axis=1)

    enc = params['enc']
    bf16 = jnp.bfloat16
    enc_args = (
        src_cat, pos_cat_b, mask_cat.astype(jnp.float32),
        params['norm_g'], params['norm_b'],
        enc['wqk'].astype(bf16), enc['bqk'],
        enc['wv'].astype(bf16), enc['bv'],
        enc['wo'].reshape(NUM_ENC_LAYERS, NHEAD, HEAD_DIM, D_MODEL).astype(bf16),
        enc['bo'],
        enc['w1'].astype(bf16), enc['b1'],
        enc['w2'].astype(bf16), enc['b2'],
        enc['n1g'], enc['n1b'], enc['n2g'], enc['n2b'],
    )

    B, S, D, F, L = bs, s_total, D_MODEL, DIM_FF, NUM_ENC_LAYERS
    flops = L * (2 * B * S * D * (2 * D + D + D) + 4 * B * S * S * D + 4 * B * S * D * F)
    transc = L * NHEAD * B * S * S
    out_shape = (bs, s_total, D_MODEL)

    img_memory_b = pl.pallas_call(
        functools.partial(_encoder_kernel, hw=hw, num_layers=NUM_ENC_LAYERS),
        out_shape=jax.ShapeDtypeStruct(out_shape, jnp.float32),
        in_specs=[_VMEM_SPEC] * len(enc_args),
        out_specs=_VMEM_SPEC,
        compiler_params=_COMPILER_PARAMS,
        cost_estimate=_cost_estimate(flops, transc, enc_args, out_shape),
    )(*enc_args)

    # seq-major view only for API parity with the torch module; the decoder
    # consumes the (B,S,D) slab directly (no transpose round-trip).
    img_memory = img_memory_b.transpose(1, 0, 2)                 # (S, B, D)
    pos_cat = pos_cat_b.transpose(1, 0, 2)                       # (S, B, D)
    text_memory = img_memory[-t_txt:]
    assert img_memory.shape[1] == text_memory.shape[1] == tgt.shape[1]
    return {'text_memory_resized': text_memory_resized, 'text_memory': text_memory,
            'img_memory': img_memory, 'img_memory_bsd': img_memory_b,
            'text_pooled_op': None, 'img_pooled_op': None,
            'mask': mask_cat, 'text_attention_mask': text_attention_mask,
            'pos_embed': pos_cat, 'pos_embed_bsd': pos_cat_b,
            'query_embed': query_embed_t, 'tokenized': tokenized}


@jax.jit
def transformer_decode(params, prev_indx, img_memory_bsd, text_memory, mask,
                       text_attention_mask, pos_embed_bsd):
    """encode_and_save=False branch (memory in batch-major (B, Sm, D))."""
    emb = params['embedding']
    b, s = prev_indx.shape
    sm = img_memory_bsd.shape[1]
    # embedding gathers (word + position) are plain-JAX glue; LN fused in-kernel
    word = jnp.take(emb['word_emb'], prev_indx, axis=0)          # (B, S, D)
    posw = emb['pos_emb'][:s]                                    # (S, D)
    tgt_in = word + posw[None, :, :]                             # (B, S, D)
    query_pos = emb['pos_emb'][:s][None, :, :]                   # (1, S, D)

    assert img_memory_bsd.shape[0] == text_memory.shape[1] == b

    dec = params['dec']
    bf16 = jnp.bfloat16
    dec_args = (
        tgt_in, query_pos, img_memory_bsd, pos_embed_bsd, mask.astype(jnp.float32),
        emb['ln_g'], emb['ln_b'],
        dec['sa_wqk'].astype(bf16), dec['sa_bqk'],
        dec['sa_wv'].astype(bf16), dec['sa_bv'],
        dec['sa_wo'].reshape(NUM_DEC_LAYERS, NHEAD, HEAD_DIM, D_MODEL).astype(bf16),
        dec['sa_bo'],
        dec['ca_wq'].astype(bf16), dec['ca_bq'],
        dec['ca_wk'].astype(bf16), dec['ca_bk'],
        dec['ca_wv'].astype(bf16), dec['ca_bv'],
        dec['ca_wo'].reshape(NUM_DEC_LAYERS, NHEAD, HEAD_DIM, D_MODEL).astype(bf16),
        dec['ca_bo'],
        dec['w1'].astype(bf16), dec['b1'], dec['w2'].astype(bf16), dec['b2'],
        dec['n1g'], dec['n1b'], dec['n3g'], dec['n3b'], dec['n4g'], dec['n4b'],
    )

    B, Sd, Sm, D, F, L = b, s, sm, D_MODEL, DIM_FF, NUM_DEC_LAYERS
    flops = L * (2 * B * Sd * D * (2 * D + D + D) + 4 * B * Sd * Sd * D
                 + 2 * B * Sd * D * D + 4 * B * Sm * D * D
                 + 4 * B * Sd * Sm * D + 2 * B * Sd * D * D
                 + 4 * B * Sd * D * F)
    transc = L * NHEAD * B * (Sd * Sd + Sd * Sm)
    out_shape = (b, s, D_MODEL)

    hs_b = pl.pallas_call(
        functools.partial(_decoder_kernel, num_layers=NUM_DEC_LAYERS),
        out_shape=jax.ShapeDtypeStruct(out_shape, jnp.float32),
        in_specs=[_VMEM_SPEC] * len(dec_args),
        out_specs=_VMEM_SPEC,
        compiler_params=_COMPILER_PARAMS,
        cost_estimate=_cost_estimate(flops, transc, dec_args, out_shape),
    )(*dec_args)

    # torch: hs is (S, B, D); returns hs.transpose(1, 2) == (S, D, B)
    return hs_b.transpose(1, 2, 0)


# ------------------------------ parameters ----------------------------------
def init_params(key):
    keys = iter(jax.random.split(key, 256))

    def nrm(shape, scale=0.1):
        return scale * jax.random.normal(next(keys), shape, jnp.float32)

    D, F = D_MODEL, DIM_FF
    Le, Ld = NUM_ENC_LAYERS, NUM_DEC_LAYERS

    enc = dict(
        # fused Q/K projection (same input in self-attention); V separate
        wqk=nrm((Le, D, 2 * D)), bqk=nrm((Le, 1, 2 * D)),
        wv=nrm((Le, D, D)), bv=nrm((Le, 1, D)),
        wo=nrm((Le, D, D)), bo=nrm((Le, 1, D)),
        w1=nrm((Le, D, F)), b1=nrm((Le, 1, F)),
        w2=nrm((Le, F, D)), b2=nrm((Le, 1, D)),
        n1g=jnp.ones((Le, 1, D)), n1b=jnp.zeros((Le, 1, D)),
        n2g=jnp.ones((Le, 1, D)), n2b=jnp.zeros((Le, 1, D)),
    )
    dec = dict(
        sa_wqk=nrm((Ld, D, 2 * D)), sa_bqk=nrm((Ld, 1, 2 * D)),
        sa_wv=nrm((Ld, D, D)), sa_bv=nrm((Ld, 1, D)),
        sa_wo=nrm((Ld, D, D)), sa_bo=nrm((Ld, 1, D)),
        ca_wq=nrm((Ld, D, D)), ca_bq=nrm((Ld, 1, D)),
        ca_wk=nrm((Ld, D, D)), ca_bk=nrm((Ld, 1, D)),
        ca_wv=nrm((Ld, D, D)), ca_bv=nrm((Ld, 1, D)),
        ca_wo=nrm((Ld, D, D)), ca_bo=nrm((Ld, 1, D)),
        w1=nrm((Ld, D, F)), b1=nrm((Ld, 1, F)),
        w2=nrm((Ld, F, D)), b2=nrm((Ld, 1, D)),
        n1g=jnp.ones((Ld, 1, D)), n1b=jnp.zeros((Ld, 1, D)),
        n3g=jnp.ones((Ld, 1, D)), n3b=jnp.zeros((Ld, 1, D)),
        n4g=jnp.ones((Ld, 1, D)), n4b=jnp.zeros((Ld, 1, D)),
    )
    emb = dict(word_emb=nrm((VOCAB, D)), pos_emb=nrm((MAX_DEC_STEP, D)),
               ln_g=jnp.ones((1, D)), ln_b=jnp.zeros((1, D)))

    return dict(
        norm_g=jnp.ones((1, D)), norm_b=jnp.zeros((1, D)),
        enc=enc, dec=dec, embedding=emb,
        # TODO(synk): RoBERTa text encoder + FeatureResizer are bypassed (the
        # forward is exercised via the pre-encoded-tensor `text` branch).
    )


# --------------------------------- main --------------------------------------
if __name__ == "__main__":
    key = jax.random.PRNGKey(0)
    kp, ks, kpos, kq, ktm, kidx = jax.random.split(key, 6)
    params = init_params(kp)

    bs, c, h, w = 2, D_MODEL, 4, 4
    num_queries = 8
    t_text = 8

    src = jax.random.normal(ks, (bs, c, h, w), jnp.float32)
    pos_embed = jax.random.normal(kpos, (bs, c, h, w), jnp.float32)
    mask = jnp.zeros((bs, h, w), jnp.bool_)
    query_embed = jax.random.normal(kq, (num_queries, D_MODEL), jnp.float32)

    text_memory_resized = jax.random.normal(ktm, (t_text, bs, D_MODEL), jnp.float32)
    text_attention_mask = jnp.zeros((bs, t_text), jnp.bool_).at[:, -2:].set(True)
    text = (text_attention_mask, text_memory_resized, None)

    # encode_and_save=True
    cache = transformer_encode(params, src, mask, query_embed, pos_embed, text)

    # encode_and_save=False
    prev_indx = jax.random.randint(kidx, (bs, 8), 0, VOCAB)
    hs = transformer_decode(params, prev_indx, cache['img_memory_bsd'],
                            cache['text_memory'], cache['mask'],
                            cache['text_attention_mask'], cache['pos_embed_bsd'])

    jax.block_until_ready(hs)
    jax.block_until_ready([v for v in jax.tree_util.tree_leaves(cache)])
    assert cache['img_memory'].shape == (h * w + t_text, bs, D_MODEL)
    assert cache['img_memory_bsd'].shape == (bs, h * w + t_text, D_MODEL)
    assert hs.shape == (8, D_MODEL, bs)
    assert bool(jnp.all(jnp.isfinite(hs)))
    print("KERNEL_OK")
</pallas_src>

<mosaic_0001>
module attributes {stable_mosaic.version = 11 : i64} {
  func.func @_encoder_kernel(%arg0: memref<2x24x32xf32, #tpu.memory_space<vmem>>, %arg1: memref<2x24x32xf32, #tpu.memory_space<vmem>>, %arg2: memref<2x24xf32, #tpu.memory_space<vmem>>, %arg3: memref<1x32xf32, #tpu.memory_space<vmem>>, %arg4: memref<1x32xf32, #tpu.memory_space<vmem>>, %arg5: memref<2x32x64xbf16, #tpu.memory_space<vmem>>, %arg6: memref<2x1x64xf32, #tpu.memory_space<vmem>>, %arg7: memref<2x32x32xbf16, #tpu.memory_space<vmem>>, %arg8: memref<2x1x32xf32, #tpu.memory_space<vmem>>, %arg9: memref<2x4x8x32xbf16, #tpu.memory_space<vmem>>, %arg10: memref<2x1x32xf32, #tpu.memory_space<vmem>>, %arg11: memref<2x32x64xbf16, #tpu.memory_space<vmem>>, %arg12: memref<2x1x64xf32, #tpu.memory_space<vmem>>, %arg13: memref<2x64x32xbf16, #tpu.memory_space<vmem>>, %arg14: memref<2x1x32xf32, #tpu.memory_space<vmem>>, %arg15: memref<2x1x32xf32, #tpu.memory_space<vmem>>, %arg16: memref<2x1x32xf32, #tpu.memory_space<vmem>>, %arg17: memref<2x1x32xf32, #tpu.memory_space<vmem>>, %arg18: memref<2x1x32xf32, #tpu.memory_space<vmem>>, %arg19: memref<2x24x32xf32, #tpu.memory_space<vmem>>) attributes {dimension_semantics = [], scalar_prefetch = 0 : i64, scratch_operands = 0 : i64, tpu.core_type = #tpu.core_type<tc>} {
    %c0 = arith.constant 0 : index
    %c0_0 = arith.constant 0 : index
    %c0_1 = arith.constant 0 : index
    %0 = vector.load %arg0[%c0, %c0_0, %c0_1] : memref<2x24x32xf32, #tpu.memory_space<vmem>>, vector<2x24x32xf32>
    %c0_2 = arith.constant 0 : index
    %c0_3 = arith.constant 0 : index
    %c0_4 = arith.constant 0 : index
    %1 = vector.load %arg1[%c0_2, %c0_3, %c0_4] : memref<2x24x32xf32, #tpu.memory_space<vmem>>, vector<2x24x32xf32>
    %2 = tpu.iota {dimensions = array<i32: 1>} : vector<2x24x32xi32>
    %c16_i32 = arith.constant 16 : i32
    %3 = vector.broadcast %c16_i32 : i32 to vector<2x24x32xi32>
    %4 = arith.cmpi slt, %2, %3 : vector<2x24x32xi32>
    %c0_5 = arith.constant 0 : index
    %c0_6 = arith.constant 0 : index
    %5 = vector.load %arg3[%c0_5, %c0_6] : memref<1x32xf32, #tpu.memory_space<vmem>>, vector<1x32xf32>
    %c0_7 = arith.constant 0 : index
    %c0_8 = arith.constant 0 : index
    %6 = vector.load %arg4[%c0_7, %c0_8] : memref<1x32xf32, #tpu.memory_space<vmem>>, vector<1x32xf32>
    %cst = arith.constant dense<0.000000e+00> : vector<2x24xf32>
    %7 = vector.multi_reduction <add>, %0, %cst [2] : vector<2x24x32xf32> to vector<2x24xf32>
    %8 = vector.shape_cast %7 : vector<2x24xf32> to vector<2x24x1xf32>
    %cst_9 = arith.constant 3.200000e+01 : f32
    %9 = vector.broadcast %cst_9 : f32 to vector<2x24x1xf32>
    %10 = arith.divf %8, %9 : vector<2x24x1xf32>
    %11 = vector.broadcast %10 : vector<2x24x1xf32> to vector<2x24x32xf32>
    %12 = arith.subf %0, %11 : vector<2x24x32xf32>
    %13 = arith.mulf %12, %12 : vector<2x24x32xf32>
    %cst_10 = arith.constant dense<0.000000e+00> : vector<2x24xf32>
    %14 = vector.multi_reduction <add>, %13, %cst_10 [2] : vector<2x24x32xf32> to vector<2x24xf32>
    %15 = vector.shape_cast %14 : vector<2x24xf32> to vector<2x24x1xf32>
    %cst_11 = arith.constant 3.200000e+01 : f32
    %16 = vector.broadcast %cst_11 : f32 to vector<2x24x1xf32>
    %17 = arith.divf %15, %16 : vector<2x24x1xf32>
    %18 = vector.broadcast %10 : vector<2x24x1xf32> to vector<2x24x32xf32>
    %19 = arith.subf %0, %18 : vector<2x24x32xf32>
    %cst_12 = arith.constant 9.99999974E-6 : f32
    %20 = vector.broadcast %cst_12 : f32 to vector<2x24x1xf32>
    %21 = arith.addf %17, %20 : vector<2x24x1xf32>
    %22 = math.rsqrt %21 : vector<2x24x1xf32>
    %23 = vector.broadcast %22 : vector<2x24x1xf32> to vector<2x24x32xf32>
    %24 = arith.mulf %19, %23 : vector<2x24x32xf32>
    %25 = vector.shape_cast %5 : vector<1x32xf32> to vector<1x1x32xf32>
    %26 = vector.broadcast %25 : vector<1x1x32xf32> to vector<2x24x32xf32>
    %27 = arith.mulf %24, %26 : vector<2x24x32xf32>
    %28 = vector.shape_cast %6 : vector<1x32xf32> to vector<1x1x32xf32>
    %29 = vector.broadcast %28 : vector<1x1x32xf32> to vector<2x24x32xf32>
    %30 = arith.addf %27, %29 : vector<2x24x32xf32>
    %31 = arith.select %4, %30, %0 : vector<2x24x32xi1>, vector<2x24x32xf32>
    %c0_13 = arith.constant 0 : index
    %c0_14 = arith.constant 0 : index
    %32 = vector.load %arg2[%c0_13, %c0_14] : memref<2x24xf32, #tpu.memory_space<vmem>>, vector<2x24xf32>
    %33 = vector.shape_cast %32 : vector<2x24xf32> to vector<2x1x24xf32>
    %cst_15 = arith.constant 5.000000e-01 : f32
    %34 = vector.broadcast %cst_15 : f32 to vector<2x1x24xf32>
    %35 = arith.cmpf ogt, %33, %34 : vector<2x1x24xf32>
    %cst_16 = arith.constant -1.000000e+30 : f32
    %cst_17 = arith.constant 0.000000e+00 : f32
    %36 = vector.broadcast %cst_16 : f32 to vector<2x1x24xf32>
    %37 = vector.broadcast %cst_17 : f32 to vector<2x1x24xf32>
    %38 = arith.select %35, %36, %37 : vector<2x1x24xi1>, vector<2x1x24xf32>
    %39 = vector.shape_cast %38 : vector<2x1x24xf32> to vector<2x1x24xf32>
    %40 = vector.broadcast %39 : vector<2x1x24xf32> to vector<2x24x24xf32>
    %41 = tpu.concatenate %40, %40, %40, %40 in 0 : vector<2x24x24xf32>, vector<2x24x24xf32>, vector<2x24x24xf32>, vector<2x24x24xf32> -> vector<8x24x24xf32>
    %42 = arith.addf %31, %1 : vector<2x24x32xf32>
    %c0_18 = arith.constant 0 : index
    %c0_19 = arith.constant 0 : index
    %c0_20 = arith.constant 0 : index
    %43 = vector.load %arg5[%c0_18, %c0_19, %c0_20] : memref<2x32x64xbf16, #tpu.memory_space<vmem>>, vector<1x32x64xbf16>
    %44 = vector.shape_cast %43 : vector<1x32x64xbf16> to vector<32x64xbf16>
    %c0_21 = arith.constant 0 : index
    %c0_22 = arith.constant 0 : index
    %c0_23 = arith.constant 0 : index
    %45 = vector.load %arg6[%c0_21, %c0_22, %c0_23] : memref<2x1x64xf32, #tpu.memory_space<vmem>>, vector<1x1x64xf32>
    %46 = vector.shape_cast %45 : vector<1x1x64xf32> to vector<1x64xf32>
    %c0_24 = arith.constant 0 : index
    %c0_25 = arith.constant 0 : index
    %c0_26 = arith.constant 0 : index
    %47 = vector.load %arg7[%c0_24, %c0_25, %c0_26] : memref<2x32x32xbf16, #tpu.memory_space<vmem>>, vector<1x32x32xbf16>
    %48 = vector.shape_cast %47 : vector<1x32x32xbf16> to vector<32x32xbf16>
    %c0_27 = arith.constant 0 : index
    %c0_28 = arith.constant 0 : index
    %c0_29 = arith.constant 0 : index
    %49 = vector.load %arg8[%c0_27, %c0_28, %c0_29] : memref<2x1x32xf32, #tpu.memory_space<vmem>>, vector<1x1x32xf32>
    %50 = vector.shape_cast %49 : vector<1x1x32xf32> to vector<1x32xf32>
    %c0_30 = arith.constant 0 : index
    %c0_31 = arith.constant 0 : index
    %c0_32 = arith.constant 0 : index
    %c0_33 = arith.constant 0 : index
    %51 = vector.load %arg9[%c0_30, %c0_31, %c0_32, %c0_33] : memref<2x4x8x32xbf16, #tpu.memory_space<vmem>>, vector<1x4x8x32xbf16>
    %52 = vector.shape_cast %51 : vector<1x4x8x32xbf16> to vector<4x8x32xbf16>
    %c0_34 = arith.constant 0 : index
    %c0_35 = arith.constant 0 : index
    %c0_36 = arith.constant 0 : index
    %53 = vector.load %arg10[%c0_34, %c0_35, %c0_36] : memref<2x1x32xf32, #tpu.memory_space<vmem>>, vector<1x1x32xf32>
    %54 = vector.shape_cast %53 : vector<1x1x32xf32> to vector<1x32xf32>
    %55 = vector.shape_cast %42 : vector<2x24x32xf32> to vector<48x32xf32>
    %56 = arith.truncf %55 : vector<48x32xf32> to vector<48x32xbf16>
    %cst_37 = arith.constant dense<0.000000e+00> : vector<48x64xf32>
    %57 = tpu.matmul %56, %44, %cst_37 {dimension_numbers = #tpu.dot_dimension_numbers<[1], [0], [0], [1], [0, 0, 1, 1], [], []>} : vector<48x32xbf16>, vector<32x64xbf16>, vector<48x64xf32> -> vector<48x64xf32>
    %58 = vector.broadcast %46 : vector<1x64xf32> to vector<48x64xf32>
    %59 = arith.addf %57, %58 : vector<48x64xf32>
    %60 = vector.shape_cast %59 : vector<48x64xf32> to vector<2x24x64xf32>
    %61 = vector.shape_cast %31 : vector<2x24x32xf32> to vector<48x32xf32>
    %62 = arith.truncf %61 : vector<48x32xf32> to vector<48x32xbf16>
    %cst_38 = arith.constant dense<0.000000e+00> : vector<48x32xf32>
    %63 = tpu.matmul %62, %48, %cst_38 {dimension_numbers = #tpu.dot_dimension_numbers<[1], [0], [0], [1], [0, 0, 1, 1], [], []>} : vector<48x32xbf16>, vector<32x32xbf16>, vector<48x32xf32> -> vector<48x32xf32>
    %64 = vector.broadcast %50 : vector<1x32xf32> to vector<48x32xf32>
    %65 = arith.addf %63, %64 : vector<48x32xf32>
    %66 = vector.shape_cast %65 : vector<48x32xf32> to vector<2x24x32xf32>
    %67 = vector.extract_strided_slice %60 {offsets = [0, 0, 0], sizes = [2, 24, 32], strides = [1, 1, 1]} : vector<2x24x64xf32> to vector<2x24x32xf32>
    %68 = vector.extract_strided_slice %60 {offsets = [0, 0, 32], sizes = [2, 24, 32], strides = [1, 1, 1]} : vector<2x24x64xf32> to vector<2x24x32xf32>
    %69 = vector.extract_strided_slice %67 {offsets = [0, 0, 0], sizes = [2, 24, 8], strides = [1, 1, 1]} : vector<2x24x32xf32> to vector<2x24x8xf32>
    %70 = vector.extract_strided_slice %67 {offsets = [0, 0, 8], sizes = [2, 24, 8], strides = [1, 1, 1]} : vector<2x24x32xf32> to vector<2x24x8xf32>
    %71 = vector.extract_strided_slice %67 {offsets = [0, 0, 16], sizes = [2, 24, 8], strides = [1, 1, 1]} : vector<2x24x32xf32> to vector<2x24x8xf32>
    %72 = vector.extract_strided_slice %67 {offsets = [0, 0, 24], sizes = [2, 24, 8], strides = [1, 1, 1]} : vector<2x24x32xf32> to vector<2x24x8xf32>
    %73 = tpu.concatenate %69, %70, %71, %72 in 0 : vector<2x24x8xf32>, vector<2x24x8xf32>, vector<2x24x8xf32>, vector<2x24x8xf32> -> vector<8x24x8xf32>
    %74 = arith.truncf %73 : vector<8x24x8xf32> to vector<8x24x8xbf16>
    %75 = vector.extract_strided_slice %68 {offsets = [0, 0, 0], sizes = [2, 24, 8], strides = [1, 1, 1]} : vector<2x24x32xf32> to vector<2x24x8xf32>
    %76 = vector.extract_strided_slice %68 {offsets = [0, 0, 8], sizes = [2, 24, 8], strides = [1, 1, 1]} : vector<2x24x32xf32> to vector<2x24x8xf32>
    %77 = vector.extract_strided_slice %68 {offsets = [0, 0, 16], sizes = [2, 24, 8], strides = [1, 1, 1]} : vector<2x24x32xf32> to vector<2x24x8xf32>
    %78 = vector.extract_strided_slice %68 {offsets = [0, 0, 24], sizes = [2, 24, 8], strides = [1, 1, 1]} : vector<2x24x32xf32> to vector<2x24x8xf32>
    %79 = tpu.concatenate %75, %76, %77, %78 in 0 : vector<2x24x8xf32>, vector<2x24x8xf32>, vector<2x24x8xf32>, vector<2x24x8xf32> -> vector<8x24x8xf32>
    %80 = arith.truncf %79 : vector<8x24x8xf32> to vector<8x24x8xbf16>
    %81 = vector.extract_strided_slice %66 {offsets = [0, 0, 0], sizes = [2, 24, 8], strides = [1, 1, 1]} : vector<2x24x32xf32> to vector<2x24x8xf32>
    %82 = vector.extract_strided_slice %66 {offsets = [0, 0, 8], sizes = [2, 24, 8], strides = [1, 1, 1]} : vector<2x24x32xf32> to vector<2x24x8xf32>
    %83 = vector.extract_strided_slice %66 {offsets = [0, 0, 16], sizes = [2, 24, 8], strides = [1, 1, 1]} : vector<2x24x32xf32> to vector<2x24x8xf32>
    %84 = vector.extract_strided_slice %66 {offsets = [0, 0, 24], sizes = [2, 24, 8], strides = [1, 1, 1]} : vector<2x24x32xf32> to vector<2x24x8xf32>
    %85 = tpu.concatenate %81, %82, %83, %84 in 0 : vector<2x24x8xf32>, vector<2x24x8xf32>, vector<2x24x8xf32>, vector<2x24x8xf32> -> vector<8x24x8xf32>
    %86 = arith.truncf %85 : vector<8x24x8xf32> to vector<8x24x8xbf16>
    "tpu.trace_start"() <{level = 10 : i32, message = "bqd,bkd->bqk"}> : () -> ()
    %cst_39 = arith.constant dense<0.000000e+00> : vector<8x24x24xf32>
    %87 = tpu.matmul %74, %80, %cst_39 {dimension_numbers = #tpu.dot_dimension_numbers<[2], [2], [1], [1], [0, 0, 0, 1, 1, 1], [0], [0]>} : vector<8x24x8xbf16>, vector<8x24x8xbf16>, vector<8x24x24xf32> -> vector<8x24x24xf32>
    "tpu.trace_stop"() : () -> ()
    %cst_40 = arith.constant 2.82842708 : f32
    %88 = vector.broadcast %cst_40 : f32 to vector<8x24x24xf32>
    %89 = arith.mulf %87, %88 : vector<8x24x24xf32>
    %90 = arith.addf %89, %41 : vector<8x24x24xf32>
    %cst_41 = arith.constant dense<0xFF800000> : vector<8x24xf32>
    %91 = vector.multi_reduction <maximumf>, %90, %cst_41 [2] : vector<8x24x24xf32> to vector<8x24xf32>
    %92 = vector.shape_cast %91 : vector<8x24xf32> to vector<8x24x1xf32>
    %93 = vector.broadcast %92 : vector<8x24x1xf32> to vector<8x24x24xf32>
    %94 = arith.subf %90, %93 : vector<8x24x24xf32>
    %95 = math.exp %94 : vector<8x24x24xf32>
    %cst_42 = arith.constant dense<0.000000e+00> : vector<8x24xf32>
    %96 = vector.multi_reduction <add>, %95, %cst_42 [2] : vector<8x24x24xf32> to vector<8x24xf32>
    %97 = vector.shape_cast %96 : vector<8x24xf32> to vector<8x24x1xf32>
    %98 = tpu.reciprocal %97 {approx = true} : vector<8x24x1xf32> -> vector<8x24x1xf32>
    %99 = vector.broadcast %98 : vector<8x24x1xf32> to vector<8x24x24xf32>
    %100 = arith.mulf %95, %99 : vector<8x24x24xf32>
    %101 = arith.truncf %100 : vector<8x24x24xf32> to vector<8x24x24xbf16>
    "tpu.trace_start"() <{level = 10 : i32, message = "bqk,bkd->bqd"}> : () -> ()
    %cst_43 = arith.constant dense<0.000000e+00> : vector<8x24x8xf32>
    %102 = tpu.matmul %101, %86, %cst_43 {dimension_numbers = #tpu.dot_dimension_numbers<[2], [1], [1], [2], [0, 0, 0, 1, 1, 2], [0], [0]>} : vector<8x24x24xbf16>, vector<8x24x8xbf16>, vector<8x24x8xf32> -> vector<8x24x8xf32>
    "tpu.trace_stop"() : () -> ()
    %103 = vector.shape_cast %102 : vector<8x24x8xf32> to vector<4x48x8xf32>
    %104 = arith.truncf %103 : vector<4x48x8xf32> to vector<4x48x8xbf16>
    "tpu.trace_start"() <{level = 10 : i32, message = "hqd,hde->hqe"}> : () -> ()
    %cst_44 = arith.constant dense<0.000000e+00> : vector<4x48x32xf32>
    %105 = tpu.matmul %104, %52, %cst_44 {dimension_numbers = #tpu.dot_dimension_numbers<[2], [1], [1], [2], [0, 0, 0, 1, 1, 2], [0], [0]>} : vector<4x48x8xbf16>, vector<4x8x32xbf16>, vector<4x48x32xf32> -> vector<4x48x32xf32>
    "tpu.trace_stop"() : () -> ()
    %cst_45 = arith.constant dense<0.000000e+00> : vector<48x32xf32>
    %106 = vector.multi_reduction <add>, %105, %cst_45 [0] : vector<4x48x32xf32> to vector<48x32xf32>
    %107 = vector.broadcast %54 : vector<1x32xf32> to vector<48x32xf32>
    %108 = arith.addf %106, %107 : vector<48x32xf32>
    %109 = vector.shape_cast %108 : vector<48x32xf32> to vector<2x24x32xf32>
    %110 = arith.addf %31, %109 : vector<2x24x32xf32>
    %c0_46 = arith.constant 0 : index
    %c0_47 = arith.constant 0 : index
    %c0_48 = arith.constant 0 : index
    %111 = vector.load %arg15[%c0_46, %c0_47, %c0_48] : memref<2x1x32xf32, #tpu.memory_space<vmem>>, vector<1x1x32xf32>
    %112 = vector.shape_cast %111 : vector<1x1x32xf32> to vector<1x32xf32>
    %c0_49 = arith.constant 0 : index
    %c0_50 = arith.constant 0 : index
    %c0_51 = arith.constant 0 : index
    %113 = vector.load %arg16[%c0_49, %c0_50, %c0_51] : memref<2x1x32xf32, #tpu.memory_space<vmem>>, vector<1x1x32xf32>
    %114 = vector.shape_cast %113 : vector<1x1x32xf32> to vector<1x32xf32>
    %cst_52 = arith.constant dense<0.000000e+00> : vector<2x24xf32>
    %115 = vector.multi_reduction <add>, %110, %cst_52 [2] : vector<2x24x32xf32> to vector<2x24xf32>
    %116 = vector.shape_cast %115 : vector<2x24xf32> to vector<2x24x1xf32>
    %cst_53 = arith.constant 3.200000e+01 : f32
    %117 = vector.broadcast %cst_53 : f32 to vector<2x24x1xf32>
    %118 = arith.divf %116, %117 : vector<2x24x1xf32>
    %119 = vector.broadcast %118 : vector<2x24x1xf32> to vector<2x24x32xf32>
    %120 = arith.subf %110, %119 : vector<2x24x32xf32>
    %121 = arith.mulf %120, %120 : vector<2x24x32xf32>
    %cst_54 = arith.constant dense<0.000000e+00> : vector<2x24xf32>
    %122 = vector.multi_reduction <add>, %121, %cst_54 [2] : vector<2x24x32xf32> to vector<2x24xf32>
    %123 = vector.shape_cast %122 : vector<2x24xf32> to vector<2x24x1xf32>
    %cst_55 = arith.constant 3.200000e+01 : f32
    %124 = vector.broadcast %cst_55 : f32 to vector<2x24x1xf32>
    %125 = arith.divf %123, %124 : vector<2x24x1xf32>
    %126 = vector.broadcast %118 : vector<2x24x1xf32> to vector<2x24x32xf32>
    %127 = arith.subf %110, %126 : vector<2x24x32xf32>
    %cst_56 = arith.constant 9.99999974E-6 : f32
    %128 = vector.broadcast %cst_56 : f32 to vector<2x24x1xf32>
    %129 = arith.addf %125, %128 : vector<2x24x1xf32>
    %130 = math.rsqrt %129 : vector<2x24x1xf32>
    %131 = vector.broadcast %130 : vector<2x24x1xf32> to vector<2x24x32xf32>
    %132 = arith.mulf %127, %131 : vector<2x24x32xf32>
    %133 = vector.shape_cast %112 : vector<1x32xf32> to vector<1x1x32xf32>
    %134 = vector.broadcast %133 : vector<1x1x32xf32> to vector<2x24x32xf32>
    %135 = arith.mulf %132, %134 : vector<2x24x32xf32>
    %136 = vector.shape_cast %114 : vector<1x32xf32> to vector<1x1x32xf32>
    %137 = vector.broadcast %136 : vector<1x1x32xf32> to vector<2x24x32xf32>
    %138 = arith.addf %135, %137 : vector<2x24x32xf32>
    %c0_57 = arith.constant 0 : index
    %c0_58 = arith.constant 0 : index
    %c0_59 = arith.constant 0 : index
    %139 = vector.load %arg11[%c0_57, %c0_58, %c0_59] : memref<2x32x64xbf16, #tpu.memory_space<vmem>>, vector<1x32x64xbf16>
    %140 = vector.shape_cast %139 : vector<1x32x64xbf16> to vector<32x64xbf16>
    %c0_60 = arith.constant 0 : index
    %c0_61 = arith.constant 0 : index
    %c0_62 = arith.constant 0 : index
    %141 = vector.load %arg12[%c0_60, %c0_61, %c0_62] : memref<2x1x64xf32, #tpu.memory_space<vmem>>, vector<1x1x64xf32>
    %142 = vector.shape_cast %141 : vector<1x1x64xf32> to vector<1x64xf32>
    %c0_63 = arith.constant 0 : index
    %c0_64 = arith.constant 0 : index
    %c0_65 = arith.constant 0 : index
    %143 = vector.load %arg13[%c0_63, %c0_64, %c0_65] : memref<2x64x32xbf16, #tpu.memory_space<vmem>>, vector<1x64x32xbf16>
    %144 = vector.shape_cast %143 : vector<1x64x32xbf16> to vector<64x32xbf16>
    %c0_66 = arith.constant 0 : index
    %c0_67 = arith.constant 0 : index
    %c0_68 = arith.constant 0 : index
    %145 = vector.load %arg14[%c0_66, %c0_67, %c0_68] : memref<2x1x32xf32, #tpu.memory_space<vmem>>, vector<1x1x32xf32>
    %146 = vector.shape_cast %145 : vector<1x1x32xf32> to vector<1x32xf32>
    %147 = vector.shape_cast %138 : vector<2x24x32xf32> to vector<48x32xf32>
    %148 = arith.truncf %147 : vector<48x32xf32> to vector<48x32xbf16>
    %cst_69 = arith.constant dense<0.000000e+00> : vector<48x64xf32>
    %149 = tpu.matmul %148, %140, %cst_69 {dimension_numbers = #tpu.dot_dimension_numbers<[1], [0], [0], [1], [0, 0, 1, 1], [], []>} : vector<48x32xbf16>, vector<32x64xbf16>, vector<48x64xf32> -> vector<48x64xf32>
    %150 = vector.broadcast %142 : vector<1x64xf32> to vector<48x64xf32>
    %151 = arith.addf %149, %150 : vector<48x64xf32>
    %152 = vector.shape_cast %151 : vector<48x64xf32> to vector<2x24x64xf32>
    %cst_70 = arith.constant 0.000000e+00 : f32
    %153 = vector.broadcast %cst_70 : f32 to vector<2x24x64xf32>
    %154 = arith.maximumf %152, %153 : vector<2x24x64xf32>
    %155 = vector.shape_cast %154 : vector<2x24x64xf32> to vector<48x64xf32>
    %156 = arith.truncf %155 : vector<48x64xf32> to vector<48x64xbf16>
    %cst_71 = arith.constant dense<0.000000e+00> : vector<48x32xf32>
    %157 = tpu.matmul %156, %144, %cst_71 {dimension_numbers = #tpu.dot_dimension_numbers<[1], [0], [0], [1], [0, 0, 1, 1], [], []>} : vector<48x64xbf16>, vector<64x32xbf16>, vector<48x32xf32> -> vector<48x32xf32>
    %158 = vector.broadcast %146 : vector<1x32xf32> to vector<48x32xf32>
    %159 = arith.addf %157, %158 : vector<48x32xf32>
    %160 = vector.shape_cast %159 : vector<48x32xf32> to vector<2x24x32xf32>
    %161 = arith.addf %138, %160 : vector<2x24x32xf32>
    %c0_72 = arith.constant 0 : index
    %c0_73 = arith.constant 0 : index
    %c0_74 = arith.constant 0 : index
    %162 = vector.load %arg17[%c0_72, %c0_73, %c0_74] : memref<2x1x32xf32, #tpu.memory_space<vmem>>, vector<1x1x32xf32>
    %163 = vector.shape_cast %162 : vector<1x1x32xf32> to vector<1x32xf32>
    %c0_75 = arith.constant 0 : index
    %c0_76 = arith.constant 0 : index
    %c0_77 = arith.constant 0 : index
    %164 = vector.load %arg18[%c0_75, %c0_76, %c0_77] : memref<2x1x32xf32, #tpu.memory_space<vmem>>, vector<1x1x32xf32>
    %165 = vector.shape_cast %164 : vector<1x1x32xf32> to vector<1x32xf32>
    %cst_78 = arith.constant dense<0.000000e+00> : vector<2x24xf32>
    %166 = vector.multi_reduction <add>, %161, %cst_78 [2] : vector<2x24x32xf32> to vector<2x24xf32>
    %167 = vector.shape_cast %166 : vector<2x24xf32> to vector<2x24x1xf32>
    %cst_79 = arith.constant 3.200000e+01 : f32
    %168 = vector.broadcast %cst_79 : f32 to vector<2x24x1xf32>
    %169 = arith.divf %167, %168 : vector<2x24x1xf32>
    %170 = vector.broadcast %169 : vector<2x24x1xf32> to vector<2x24x32xf32>
    %171 = arith.subf %161, %170 : vector<2x24x32xf32>
    %172 = arith.mulf %171, %171 : vector<2x24x32xf32>
    %cst_80 = arith.constant dense<0.000000e+00> : vector<2x24xf32>
    %173 = vector.multi_reduction <add>, %172, %cst_80 [2] : vector<2x24x32xf32> to vector<2x24xf32>
    %174 = vector.shape_cast %173 : vector<2x24xf32> to vector<2x24x1xf32>
    %cst_81 = arith.constant 3.200000e+01 : f32
    %175 = vector.broadcast %cst_81 : f32 to vector<2x24x1xf32>
    %176 = arith.divf %174, %175 : vector<2x24x1xf32>
    %177 = vector.broadcast %169 : vector<2x24x1xf32> to vector<2x24x32xf32>
    %178 = arith.subf %161, %177 : vector<2x24x32xf32>
    %cst_82 = arith.constant 9.99999974E-6 : f32
    %179 = vector.broadcast %cst_82 : f32 to vector<2x24x1xf32>
    %180 = arith.addf %176, %179 : vector<2x24x1xf32>
    %181 = math.rsqrt %180 : vector<2x24x1xf32>
    %182 = vector.broadcast %181 : vector<2x24x1xf32> to vector<2x24x32xf32>
    %183 = arith.mulf %178, %182 : vector<2x24x32xf32>
    %184 = vector.shape_cast %163 : vector<1x32xf32> to vector<1x1x32xf32>
    %185 = vector.broadcast %184 : vector<1x1x32xf32> to vector<2x24x32xf32>
    %186 = arith.mulf %183, %185 : vector<2x24x32xf32>
    %187 = vector.shape_cast %165 : vector<1x32xf32> to vector<1x1x32xf32>
    %188 = vector.broadcast %187 : vector<1x1x32xf32> to vector<2x24x32xf32>
    %189 = arith.addf %186, %188 : vector<2x24x32xf32>
    %190 = arith.addf %189, %1 : vector<2x24x32xf32>
    %c1 = arith.constant 1 : index
    %c0_83 = arith.constant 0 : index
    %c0_84 = arith.constant 0 : index
    %191 = vector.load %arg5[%c1, %c0_83, %c0_84] : memref<2x32x64xbf16, #tpu.memory_space<vmem>>, vector<1x32x64xbf16>
    %192 = vector.shape_cast %191 : vector<1x32x64xbf16> to vector<32x64xbf16>
    %c1_85 = arith.constant 1 : index
    %c0_86 = arith.constant 0 : index
    %c0_87 = arith.constant 0 : index
    %193 = vector.load %arg6[%c1_85, %c0_86, %c0_87] : memref<2x1x64xf32, #tpu.memory_space<vmem>>, vector<1x1x64xf32>
    %194 = vector.shape_cast %193 : vector<1x1x64xf32> to vector<1x64xf32>
    %c1_88 = arith.constant 1 : index
    %c0_89 = arith.constant 0 : index
    %c0_90 = arith.constant 0 : index
    %195 = vector.load %arg7[%c1_88, %c0_89, %c0_90] : memref<2x32x32xbf16, #tpu.memory_space<vmem>>, vector<1x32x32xbf16>
    %196 = vector.shape_cast %195 : vector<1x32x32xbf16> to vector<32x32xbf16>
    %c1_91 = arith.constant 1 : index
    %c0_92 = arith.constant 0 : index
    %c0_93 = arith.constant 0 : index
    %197 = vector.load %arg8[%c1_91, %c0_92, %c0_93] : memref<2x1x32xf32, #tpu.memory_space<vmem>>, vector<1x1x32xf32>
    %198 = vector.shape_cast %197 : vector<1x1x32xf32> to vector<1x32xf32>
    %c1_94 = arith.constant 1 : index
    %c0_95 = arith.constant 0 : index
    %c0_96 = arith.constant 0 : index
    %c0_97 = arith.constant 0 : index
    %199 = vector.load %arg9[%c1_94, %c0_95, %c0_96, %c0_97] : memref<2x4x8x32xbf16, #tpu.memory_space<vmem>>, vector<1x4x8x32xbf16>
    %200 = vector.shape_cast %199 : vector<1x4x8x32xbf16> to vector<4x8x32xbf16>
    %c1_98 = arith.constant 1 : index
    %c0_99 = arith.constant 0 : index
    %c0_100 = arith.constant 0 : index
    %201 = vector.load %arg10[%c1_98, %c0_99, %c0_100] : memref<2x1x32xf32, #tpu.memory_space<vmem>>, vector<1x1x32xf32>
    %202 = vector.shape_cast %201 : vector<1x1x32xf32> to vector<1x32xf32>
    %203 = vector.shape_cast %190 : vector<2x24x32xf32> to vector<48x32xf32>
    %204 = arith.truncf %203 : vector<48x32xf32> to vector<48x32xbf16>
    %cst_101 = arith.constant dense<0.000000e+00> : vector<48x64xf32>
    %205 = tpu.matmul %204, %192, %cst_101 {dimension_numbers = #tpu.dot_dimension_numbers<[1], [0], [0], [1], [0, 0, 1, 1], [], []>} : vector<48x32xbf16>, vector<32x64xbf16>, vector<48x64xf32> -> vector<48x64xf32>
    %206 = vector.broadcast %194 : vector<1x64xf32> to vector<48x64xf32>
    %207 = arith.addf %205, %206 : vector<48x64xf32>
    %208 = vector.shape_cast %207 : vector<48x64xf32> to vector<2x24x64xf32>
    %209 = vector.shape_cast %189 : vector<2x24x32xf32> to vector<48x32xf32>
    %210 = arith.truncf %209 : vector<48x32xf32> to vector<48x32xbf16>
    %cst_102 = arith.constant dense<0.000000e+00> : vector<48x32xf32>
    %211 = tpu.matmul %210, %196, %cst_102 {dimension_numbers = #tpu.dot_dimension_numbers<[1], [0], [0], [1], [0, 0, 1, 1], [], []>} : vector<48x32xbf16>, vector<32x32xbf16>, vector<48x32xf32> -> vector<48x32xf32>
    %212 = vector.broadcast %198 : vector<1x32xf32> to vector<48x32xf32>
    %213 = arith.addf %211, %212 : vector<48x32xf32>
    %214 = vector.shape_cast %213 : vector<48x32xf32> to vector<2x24x32xf32>
    %215 = vector.extract_strided_slice %208 {offsets = [0, 0, 0], sizes = [2, 24, 32], strides = [1, 1, 1]} : vector<2x24x64xf32> to vector<2x24x32xf32>
    %216 = vector.extract_strided_slice %208 {offsets = [0, 0, 32], sizes = [2, 24, 32], strides = [1, 1, 1]} : vector<2x24x64xf32> to vector<2x24x32xf32>
    %217 = vector.extract_strided_slice %215 {offsets = [0, 0, 0], sizes = [2, 24, 8], strides = [1, 1, 1]} : vector<2x24x32xf32> to vector<2x24x8xf32>
    %218 = vector.extract_strided_slice %215 {offsets = [0, 0, 8], sizes = [2, 24, 8], strides = [1, 1, 1]} : vector<2x24x32xf32> to vector<2x24x8xf32>
    %219 = vector.extract_strided_slice %215 {offsets = [0, 0, 16], sizes = [2, 24, 8], strides = [1, 1, 1]} : vector<2x24x32xf32> to vector<2x24x8xf32>
    %220 = vector.extract_strided_slice %215 {offsets = [0, 0, 24], sizes = [2, 24, 8], strides = [1, 1, 1]} : vector<2x24x32xf32> to vector<2x24x8xf32>
    %221 = tpu.concatenate %217, %218, %219, %220 in 0 : vector<2x24x8xf32>, vector<2x24x8xf32>, vector<2x24x8xf32>, vector<2x24x8xf32> -> vector<8x24x8xf32>
    %222 = arith.truncf %221 : vector<8x24x8xf32> to vector<8x24x8xbf16>
    %223 = vector.extract_strided_slice %216 {offsets = [0, 0, 0], sizes = [2, 24, 8], strides = [1, 1, 1]} : vector<2x24x32xf32> to vector<2x24x8xf32>
    %224 = vector.extract_strided_slice %216 {offsets = [0, 0, 8], sizes = [2, 24, 8], strides = [1, 1, 1]} : vector<2x24x32xf32> to vector<2x24x8xf32>
    %225 = vector.extract_strided_slice %216 {offsets = [0, 0, 16], sizes = [2, 24, 8], strides = [1, 1, 1]} : vector<2x24x32xf32> to vector<2x24x8xf32>
    %226 = vector.extract_strided_slice %216 {offsets = [0, 0, 24], sizes = [2, 24, 8], strides = [1, 1, 1]} : vector<2x24x32xf32> to vector<2x24x8xf32>
    %227 = tpu.concatenate %223, %224, %225, %226 in 0 : vector<2x24x8xf32>, vector<2x24x8xf32>, vector<2x24x8xf32>, vector<2x24x8xf32> -> vector<8x24x8xf32>
    %228 = arith.truncf %227 : vector<8x24x8xf32> to vector<8x24x8xbf16>
    %229 = vector.extract_strided_slice %214 {offsets = [0, 0, 0], sizes = [2, 24, 8], strides = [1, 1, 1]} : vector<2x24x32xf32> to vector<2x24x8xf32>
    %230 = vector.extract_strided_slice %214 {offsets = [0, 0, 8], sizes = [2, 24, 8], strides = [1, 1, 1]} : vector<2x24x32xf32> to vector<2x24x8xf32>
    %231 = vector.extract_strided_slice %214 {offsets = [0, 0, 16], sizes = [2, 24, 8], strides = [1, 1, 1]} : vector<2x24x32xf32> to vector<2x24x8xf32>
    %232 = vector.extract_strided_slice %214 {offsets = [0, 0, 24], sizes = [2, 24, 8], strides = [1, 1, 1]} : vector<2x24x32xf32> to vector<2x24x8xf32>
    %233 = tpu.concatenate %229, %230, %231, %232 in 0 : vector<2x24x8xf32>, vector<2x24x8xf32>, vector<2x24x8xf32>, vector<2x24x8xf32> -> vector<8x24x8xf32>
    %234 = arith.truncf %233 : vector<8x24x8xf32> to vector<8x24x8xbf16>
    "tpu.trace_start"() <{level = 10 : i32, message = "bqd,bkd->bqk"}> : () -> ()
    %cst_103 = arith.constant dense<0.000000e+00> : vector<8x24x24xf32>
    %235 = tpu.matmul %222, %228, %cst_103 {dimension_numbers = #tpu.dot_dimension_numbers<[2], [2], [1], [1], [0, 0, 0, 1, 1, 1], [0], [0]>} : vector<8x24x8xbf16>, vector<8x24x8xbf16>, vector<8x24x24xf32> -> vector<8x24x24xf32>
    "tpu.trace_stop"() : () -> ()
    %cst_104 = arith.constant 2.82842708 : f32
    %236 = vector.broadcast %cst_104 : f32 to vector<8x24x24xf32>
    %237 = arith.mulf %235, %236 : vector<8x24x24xf32>
    %238 = arith.addf %237, %41 : vector<8x24x24xf32>
    %cst_105 = arith.constant dense<0xFF800000> : vector<8x24xf32>
    %239 = vector.multi_reduction <maximumf>, %238, %cst_105 [2] : vector<8x24x24xf32> to vector<8x24xf32>
    %240 = vector.shape_cast %239 : vector<8x24xf32> to vector<8x24x1xf32>
    %241 = vector.broadcast %240 : vector<8x24x1xf32> to vector<8x24x24xf32>
    %242 = arith.subf %238, %241 : vector<8x24x24xf32>
    %243 = math.exp %242 : vector<8x24x24xf32>
    %cst_106 = arith.constant dense<0.000000e+00> : vector<8x24xf32>
    %244 = vector.multi_reduction <add>, %243, %cst_106 [2] : vector<8x24x24xf32> to vector<8x24xf32>
    %245 = vector.shape_cast %244 : vector<8x24xf32> to vector<8x24x1xf32>
    %246 = tpu.reciprocal %245 {approx = true} : vector<8x24x1xf32> -> vector<8x24x1xf32>
    %247 = vector.broadcast %246 : vector<8x24x1xf32> to vector<8x24x24xf32>
    %248 = arith.mulf %243, %247 : vector<8x24x24xf32>
    %249 = arith.truncf %248 : vector<8x24x24xf32> to vector<8x24x24xbf16>
    "tpu.trace_start"() <{level = 10 : i32, message = "bqk,bkd->bqd"}> : () -> ()
    %cst_107 = arith.constant dense<0.000000e+00> : vector<8x24x8xf32>
    %250 = tpu.matmul %249, %234, %cst_107 {dimension_numbers = #tpu.dot_dimension_numbers<[2], [1], [1], [2], [0, 0, 0, 1, 1, 2], [0], [0]>} : vector<8x24x24xbf16>, vector<8x24x8xbf16>, vector<8x24x8xf32> -> vector<8x24x8xf32>
    "tpu.trace_stop"() : () -> ()
    %251 = vector.shape_cast %250 : vector<8x24x8xf32> to vector<4x48x8xf32>
    %252 = arith.truncf %251 : vector<4x48x8xf32> to vector<4x48x8xbf16>
    "tpu.trace_start"() <{level = 10 : i32, message = "hqd,hde->hqe"}> : () -> ()
    %cst_108 = arith.constant dense<0.000000e+00> : vector<4x48x32xf32>
    %253 = tpu.matmul %252, %200, %cst_108 {dimension_numbers = #tpu.dot_dimension_numbers<[2], [1], [1], [2], [0, 0, 0, 1, 1, 2], [0], [0]>} : vector<4x48x8xbf16>, vector<4x8x32xbf16>, vector<4x48x32xf32> -> vector<4x48x32xf32>
    "tpu.trace_stop"() : () -> ()
    %cst_109 = arith.constant dense<0.000000e+00> : vector<48x32xf32>
    %254 = vector.multi_reduction <add>, %253, %cst_109 [0] : vector<4x48x32xf32> to vector<48x32xf32>
    %255 = vector.broadcast %202 : vector<1x32xf32> to vector<48x32xf32>
    %256 = arith.addf %254, %255 : vector<48x32xf32>
    %257 = vector.shape_cast %256 : vector<48x32xf32> to vector<2x24x32xf32>
    %258 = arith.addf %189, %257 : vector<2x24x32xf32>
    %c1_110 = arith.constant 1 : index
    %c0_111 = arith.constant 0 : index
    %c0_112 = arith.constant 0 : index
    %259 = vector.load %arg15[%c1_110, %c0_111, %c0_112] : memref<2x1x32xf32, #tpu.memory_space<vmem>>, vector<1x1x32xf32>
    %260 = vector.shape_cast %259 : vector<1x1x32xf32> to vector<1x32xf32>
    %c1_113 = arith.constant 1 : index
    %c0_114 = arith.constant 0 : index
    %c0_115 = arith.constant 0 : index
    %261 = vector.load %arg16[%c1_113, %c0_114, %c0_115] : memref<2x1x32xf32, #tpu.memory_space<vmem>>, vector<1x1x32xf32>
    %262 = vector.shape_cast %261 : vector<1x1x32xf32> to vector<1x32xf32>
    %cst_116 = arith.constant dense<0.000000e+00> : vector<2x24xf32>
    %263 = vector.multi_reduction <add>, %258, %cst_116 [2] : vector<2x24x32xf32> to vector<2x24xf32>
    %264 = vector.shape_cast %263 : vector<2x24xf32> to vector<2x24x1xf32>
    %cst_117 = arith.constant 3.200000e+01 : f32
    %265 = vector.broadcast %cst_117 : f32 to vector<2x24x1xf32>
    %266 = arith.divf %264, %265 : vector<2x24x1xf32>
    %267 = vector.broadcast %266 : vector<2x24x1xf32> to vector<2x24x32xf32>
    %268 = arith.subf %258, %267 : vector<2x24x32xf32>
    %269 = arith.mulf %268, %268 : vector<2x24x32xf32>
    %cst_118 = arith.constant dense<0.000000e+00> : vector<2x24xf32>
    %270 = vector.multi_reduction <add>, %269, %cst_118 [2] : vector<2x24x32xf32> to vector<2x24xf32>
    %271 = vector.shape_cast %270 : vector<2x24xf32> to vector<2x24x1xf32>
    %cst_119 = arith.constant 3.200000e+01 : f32
    %272 = vector.broadcast %cst_119 : f32 to vector<2x24x1xf32>
    %273 = arith.divf %271, %272 : vector<2x24x1xf32>
    %274 = vector.broadcast %266 : vector<2x24x1xf32> to vector<2x24x32xf32>
    %275 = arith.subf %258, %274 : vector<2x24x32xf32>
    %cst_120 = arith.constant 9.99999974E-6 : f32
    %276 = vector.broadcast %cst_120 : f32 to vector<2x24x1xf32>
    %277 = arith.addf %273, %276 : vector<2x24x1xf32>
    %278 = math.rsqrt %277 : vector<2x24x1xf32>
    %279 = vector.broadcast %278 : vector<2x24x1xf32> to vector<2x24x32xf32>
    %280 = arith.mulf %275, %279 : vector<2x24x32xf32>
    %281 = vector.shape_cast %260 : vector<1x32xf32> to vector<1x1x32xf32>
    %282 = vector.broadcast %281 : vector<1x1x32xf32> to vector<2x24x32xf32>
    %283 = arith.mulf %280, %282 : vector<2x24x32xf32>
    %284 = vector.shape_cast %262 : vector<1x32xf32> to vector<1x1x32xf32>
    %285 = vector.broadcast %284 : vector<1x1x32xf32> to vector<2x24x32xf32>
    %286 = arith.addf %283, %285 : vector<2x24x32xf32>
    %c1_121 = arith.constant 1 : index
    %c0_122 = arith.constant 0 : index
    %c0_123 = arith.constant 0 : index
    %287 = vector.load %arg11[%c1_121, %c0_122, %c0_123] : memref<2x32x64xbf16, #tpu.memory_space<vmem>>, vector<1x32x64xbf16>
    %288 = vector.shape_cast %287 : vector<1x32x64xbf16> to vector<32x64xbf16>
    %c1_124 = arith.constant 1 : index
    %c0_125 = arith.constant 0 : index
    %c0_126 = arith.constant 0 : index
    %289 = vector.load %arg12[%c1_124, %c0_125, %c0_126] : memref<2x1x64xf32, #tpu.memory_space<vmem>>, vector<1x1x64xf32>
    %290 = vector.shape_cast %289 : vector<1x1x64xf32> to vector<1x64xf32>
    %c1_127 = arith.constant 1 : index
    %c0_128 = arith.constant 0 : index
    %c0_129 = arith.constant 0 : index
    %291 = vector.load %arg13[%c1_127, %c0_128, %c0_129] : memref<2x64x32xbf16, #tpu.memory_space<vmem>>, vector<1x64x32xbf16>
    %292 = vector.shape_cast %291 : vector<1x64x32xbf16> to vector<64x32xbf16>
    %c1_130 = arith.constant 1 : index
    %c0_131 = arith.constant 0 : index
    %c0_132 = arith.constant 0 : index
    %293 = vector.load %arg14[%c1_130, %c0_131, %c0_132] : memref<2x1x32xf32, #tpu.memory_space<vmem>>, vector<1x1x32xf32>
    %294 = vector.shape_cast %293 : vector<1x1x32xf32> to vector<1x32xf32>
    %295 = vector.shape_cast %286 : vector<2x24x32xf32> to vector<48x32xf32>
    %296 = arith.truncf %295 : vector<48x32xf32> to vector<48x32xbf16>
    %cst_133 = arith.constant dense<0.000000e+00> : vector<48x64xf32>
    %297 = tpu.matmul %296, %288, %cst_133 {dimension_numbers = #tpu.dot_dimension_numbers<[1], [0], [0], [1], [0, 0, 1, 1], [], []>} : vector<48x32xbf16>, vector<32x64xbf16>, vector<48x64xf32> -> vector<48x64xf32>
    %298 = vector.broadcast %290 : vector<1x64xf32> to vector<48x64xf32>
    %299 = arith.addf %297, %298 : vector<48x64xf32>
    %300 = vector.shape_cast %299 : vector<48x64xf32> to vector<2x24x64xf32>
    %cst_134 = arith.constant 0.000000e+00 : f32
    %301 = vector.broadcast %cst_134 : f32 to vector<2x24x64xf32>
    %302 = arith.maximumf %300, %301 : vector<2x24x64xf32>
    %303 = vector.shape_cast %302 : vector<2x24x64xf32> to vector<48x64xf32>
    %304 = arith.truncf %303 : vector<48x64xf32> to vector<48x64xbf16>
    %cst_135 = arith.constant dense<0.000000e+00> : vector<48x32xf32>
    %305 = tpu.matmul %304, %292, %cst_135 {dimension_numbers = #tpu.dot_dimension_numbers<[1], [0], [0], [1], [0, 0, 1, 1], [], []>} : vector<48x64xbf16>, vector<64x32xbf16>, vector<48x32xf32> -> vector<48x32xf32>
    %306 = vector.broadcast %294 : vector<1x32xf32> to vector<48x32xf32>
    %307 = arith.addf %305, %306 : vector<48x32xf32>
    %308 = vector.shape_cast %307 : vector<48x32xf32> to vector<2x24x32xf32>
    %309 = arith.addf %286, %308 : vector<2x24x32xf32>
    %c1_136 = arith.constant 1 : index
    %c0_137 = arith.constant 0 : index
    %c0_138 = arith.constant 0 : index
    %310 = vector.load %arg17[%c1_136, %c0_137, %c0_138] : memref<2x1x32xf32, #tpu.memory_space<vmem>>, vector<1x1x32xf32>
    %311 = vector.shape_cast %310 : vector<1x1x32xf32> to vector<1x32xf32>
    %c1_139 = arith.constant 1 : index
    %c0_140 = arith.constant 0 : index
    %c0_141 = arith.constant 0 : index
    %312 = vector.load %arg18[%c1_139, %c0_140, %c0_141] : memref<2x1x32xf32, #tpu.memory_space<vmem>>, vector<1x1x32xf32>
    %313 = vector.shape_cast %312 : vector<1x1x32xf32> to vector<1x32xf32>
    %cst_142 = arith.constant dense<0.000000e+00> : vector<2x24xf32>
    %314 = vector.multi_reduction <add>, %309, %cst_142 [2] : vector<2x24x32xf32> to vector<2x24xf32>
    %315 = vector.shape_cast %314 : vector<2x24xf32> to vector<2x24x1xf32>
    %cst_143 = arith.constant 3.200000e+01 : f32
    %316 = vector.broadcast %cst_143 : f32 to vector<2x24x1xf32>
    %317 = arith.divf %315, %316 : vector<2x24x1xf32>
    %318 = vector.broadcast %317 : vector<2x24x1xf32> to vector<2x24x32xf32>
    %319 = arith.subf %309, %318 : vector<2x24x32xf32>
    %320 = arith.mulf %319, %319 : vector<2x24x32xf32>
    %cst_144 = arith.constant dense<0.000000e+00> : vector<2x24xf32>
    %321 = vector.multi_reduction <add>, %320, %cst_144 [2] : vector<2x24x32xf32> to vector<2x24xf32>
    %322 = vector.shape_cast %321 : vector<2x24xf32> to vector<2x24x1xf32>
    %cst_145 = arith.constant 3.200000e+01 : f32
    %323 = vector.broadcast %cst_145 : f32 to vector<2x24x1xf32>
    %324 = arith.divf %322, %323 : vector<2x24x1xf32>
    %325 = vector.broadcast %317 : vector<2x24x1xf32> to vector<2x24x32xf32>
    %326 = arith.subf %309, %325 : vector<2x24x32xf32>
    %cst_146 = arith.constant 9.99999974E-6 : f32
    %327 = vector.broadcast %cst_146 : f32 to vector<2x24x1xf32>
    %328 = arith.addf %324, %327 : vector<2x24x1xf32>
    %329 = math.rsqrt %328 : vector<2x24x1xf32>
    %330 = vector.broadcast %329 : vector<2x24x1xf32> to vector<2x24x32xf32>
    %331 = arith.mulf %326, %330 : vector<2x24x32xf32>
    %332 = vector.shape_cast %311 : vector<1x32xf32> to vector<1x1x32xf32>
    %333 = vector.broadcast %332 : vector<1x1x32xf32> to vector<2x24x32xf32>
    %334 = arith.mulf %331, %333 : vector<2x24x32xf32>
    %335 = vector.shape_cast %313 : vector<1x32xf32> to vector<1x1x32xf32>
    %336 = vector.broadcast %335 : vector<1x1x32xf32> to vector<2x24x32xf32>
    %337 = arith.addf %334, %336 : vector<2x24x32xf32>
    %c0_147 = arith.constant 0 : index
    %c0_148 = arith.constant 0 : index
    %c0_149 = arith.constant 0 : index
    %338 = vector.load %arg19[%c0_147, %c0_148, %c0_149] : memref<2x24x32xf32, #tpu.memory_space<vmem>>, vector<2x24x32xf32>
    tpu.vector_store %arg19[%c0_147, %c0_148, %c0_149], %337 {strides = array<i32>} : memref<2x24x32xf32, #tpu.memory_space<vmem>>, vector<2x24x32xf32>,
    return
  }
}

</mosaic_0001>

<bundles_post_ra>
// kernel: transformer_encode.1
= control target key start
LH: loop header
LB: loop body
LE: loop exit
PB: predicated region body
PF: predicated region fallthrough
CT: control target
= control target key end

     0   :  { %vm84_vm0 = vcmask 261120   ;;  %v5091_v8 = vmov 32.0   ;;  %s5092_s30 = smov 120   ;;  %s5093_s21 = smov 96   ;;  %vm565_vm14 = vcmask 64512   ;;  %s7003_s0 = inlined_call_operand.vmem [shape: f32[2,24,32], index: 0, kind: input, shape index: {}]   ;;  %s7004_s3 = inlined_call_operand.vmem [shape: f32[1,32], index: 3, kind: input, shape index: {}]   ;;  %s7005_s4 = inlined_call_operand.vmem [shape: f32[1,32], index: 4, kind: input, shape index: {}]   ;;  %s7006_s8 = inlined_call_operand.vmem [shape: f32[2,1,32], index: 8, kind: input, shape index: {}]   ;;  %s7007_s7 = inlined_call_operand.vmem [shape: bf16[2,32,32], index: 7, kind: input, shape index: {}]   ;;  %s7008_s5 = inlined_call_operand.vmem [shape: bf16[2,32,64], index: 5, kind: input, shape index: {}]   ;;  %s7009_s1 = inlined_call_operand.vmem [shape: f32[2,24,32], index: 1, kind: input, shape index: {}]   ;;  %s7010_s6 = inlined_call_operand.vmem [shape: f32[2,1,64], index: 6, kind: input, shape index: {}]   ;;  %s7011_s2 = inlined_call_operand.vmem [shape: f32[2,24], index: 2, kind: input, shape index: {}]   ;;  %s7012_s9 = inlined_call_operand.vmem [shape: bf16[2,4,8,32], index: 9, kind: input, shape index: {}]   ;;  %s7013_s10 = inlined_call_operand.vmem [shape: f32[2,1,32], index: 10, kind: input, shape index: {}]   ;;  %s7014_s15 = inlined_call_operand.vmem [shape: f32[2,1,32], index: 15, kind: input, shape index: {}]   ;;  %s7015_s16 = inlined_call_operand.vmem [shape: f32[2,1,32], index: 16, kind: input, shape index: {}]   ;;  %s7016_s12 = inlined_call_operand.vmem [shape: f32[2,1,64], index: 12, kind: input, shape index: {}]   ;;  %s7017_s11 = inlined_call_operand.vmem [shape: bf16[2,32,64], index: 11, kind: input, shape index: {}]   ;;  %s7018_s14 = inlined_call_operand.vmem [shape: f32[2,1,32], index: 14, kind: input, shape index: {}]   ;;  %s7019_s13 = inlined_call_operand.vmem [shape: bf16[2,64,32], index: 13, kind: input, shape index: {}]   ;;  %s7020_s17 = inlined_call_operand.vmem [shape: f32[2,1,32], index: 17, kind: input, shape index: {}]   ;;  %s7021_s18 = inlined_call_operand.vmem [shape: f32[2,1,32], index: 18, kind: input, shape index: {}]   ;;  %s7022_s19 = inlined_call_operand.vmem [shape: f32[2,24,32], index: 19, kind: output, shape index: {}]  }
   0x1   :  { %7025 = sst [smem:[#allocation2_spill]] %s7003_s0  ;;  %4833 = vrcp.f32 %v5091_v8  ;;  %v4606_v35 = vld [vmem:[%s7007_s7 + $0x8] sm:$0xff]  ;;  %v4605_v41 = vld [vmem:[%s7007_s7] sm:$0xff] }
   0x2   :  { %7026 = sst [smem:[#allocation3_spill]] %s7004_s3  ;;  %v4604_v38 = vld [vmem:[%s7008_s5 + $0x8] sm:$0xff]  ;;  %367 = vmatpush.bf16.msra.mxu1 %v4606_v35  ;;  %v4603_v42 = vld [vmem:[%s7008_s5] sm:$0xff]  ;;  %v72_v35 = vld [vmem:[%s7009_s1 + $0x18] sm:$0xff]  ;;  %s5094_s3 = smov 112  }
   0x3   :  { %7027 = sst [smem:[#allocation4_spill]] %s7005_s4  ;;  %316 = vmatpush.bf16.msra.mxu0 %v4604_v38 }
   0x4   :  { %7028 = sst [smem:[#allocation5_spill]] %s7006_s8 }
   0x5   :  { %s7029_s20 = sld [smem:[#allocation2_spill]] }
   0x6   :  { %368 = vmatpush.bf16.msra.mxu1 %v4605_v41  ;;  %s7030_s22 = sld [smem:[#allocation3_spill]] }
   0x7   :  { %v4834_v9 = vpop.eup %4833  ;;  %317 = vmatpush.bf16.msra.mxu0 %v4603_v42  ;;  %s7031_s24 = sld [smem:[#allocation4_spill]] }
   0x8   :  { %v104_v10 = vmul.f32 32.0, %v4834_v9  ;;  %vm108_vm1 = vweird.f32 %v4834_v9  ;;  %s7032_s28 = sld [smem:[#allocation5_spill]] }
   0xa   :  { %v105_v11 = vsub.f32 1.0, %v104_v10 }
   0xb   :  { %v66_v0 = vld [vmem:[%s7029_s20 + $0x18] sm:$0xff]  ;;  %v63_v1 = vld [vmem:[%s7029_s20] sm:$0xff]  ;;  %v64_v5 = vld [vmem:[%s7029_s20 + $0x8] sm:$0xff] }
   0xc   :  { %v94_v2 = vsel %vm84_vm0, %v66_v0, 0.0  ;;  %v85_v3 = vsel %vm84_vm0, %v63_v1, 0.0  ;;  %v67_v4 = vld [vmem:[%s7029_s20 + $0x20] sm:$0xff]  ;;  %v88_v7 = vsel %vm84_vm0, %v64_v5, 0.0  ;;  %v106_v12 = vmul.f32 %v4834_v9, %v105_v11 }
   0xd   :  { %95 = vadd.xlane.f32.xlu1 %v94_v2  ;;  %86 = vadd.xlane.f32.xlu0 %v85_v3  ;;  %v97_v6 = vsel %vm84_vm0, %v67_v4, 0.0  ;;  %v4813_v3 = vld [vmem:[%s7030_s22] ss:$0 sm:$0xff]  ;;  %s5095_s22 = smov 104  }
   0xe   :  { %v107_v13 = vadd.f32 %v4834_v9, %v106_v12 }
  0x10   :  { %v5213_v14 = vsel %vm108_vm1, %v4834_v9, %v107_v13  ;;  %v4814_v9 = vld [vmem:[%s7031_s24] ss:$0 sm:$0xff]  ;;  %vm1250_vm1 = vcmask 1043456  }
  0x15   :  { %98 = vadd.xlane.f32.xlu1 %v97_v6  ;;  %89 = vadd.xlane.f32.xlu0 %v88_v7 }
  0x80   :  { %v96_v15 = vpop.xlane.xlu1 %95  ;;  %v87_v16 = vpop.xlane.xlu0 %86 }
  0x81   :  { %v113_v17 = vmul.f32 %v5213_v14, %v96_v15  ;;  %v110_v18 = vmul.f32 %v5213_v14, %v87_v16 }
  0x83   :  { %v5217_v19 = vsub.f32 %v66_v0, %v113_v17  ;;  %v5219_v20 = vsub.f32 %v63_v1, %v110_v18  ;;  %v69_v17 = vld [vmem:[%s7009_s1] sm:$0xff]  ;;  %v70_v18 = vld [vmem:[%s7009_s1 + $0x8] sm:$0xff] }
  0x85   :  { %v125_v21 = vmul.f32 %v5217_v19, %v5217_v19  ;;  %v122_v22 = vmul.f32 %v5219_v20, %v5219_v20 }
  0x87   :  { %v137_v23 = vsel %vm84_vm0, %v125_v21, 0.0  ;;  %v128_v24 = vsel %vm84_vm0, %v122_v22, 0.0 }
  0x88   :  { %v99_v25 = vpop.xlane.xlu1 %98  ;;  %138 = vadd.xlane.f32.xlu0 %v137_v23  ;;  %129 = vadd.xlane.f32.xlu2 %v128_v24  ;;  %v90_v26 = vpop.xlane.xlu0 %89 }
  0x89   :  { %v114_v27 = vmul.f32 %v5213_v14, %v99_v25  ;;  %v111_v28 = vmul.f32 %v5213_v14, %v90_v26 }
  0x8b   :  { %v5229_v29 = vsub.f32 %v67_v4, %v114_v27  ;;  %v5231_v30 = vsub.f32 %v64_v5, %v111_v28 }
  0x8d   :  { %v126_v31 = vmul.f32 %v5229_v29, %v5229_v29  ;;  %v123_v32 = vmul.f32 %v5231_v30, %v5231_v30 }
  0x8f   :  { %v140_v33 = vsel %vm84_vm0, %v126_v31, 0.0  ;;  %v131_v34 = vsel %vm84_vm0, %v123_v32, 0.0 }
  0x90   :  { %141 = vadd.xlane.f32.xlu1 %v140_v33  ;;  %132 = vadd.xlane.f32.xlu2 %v131_v34  ;;  %v65_v34 = vld [vmem:[%s7029_s20 + $0x10] sm:$0xff] }
  0xfb   :  { %v130_v36 = vpop.xlane.xlu2 %129  ;;  %v139_v37 = vpop.xlane.xlu0 %138 }
  0xfc   :  { %v146_v39 = vmul.f32 %v130_v36, %v5213_v14  ;;  %v149_v40 = vmul.f32 %v139_v37, %v5213_v14 }
  0xfe   :  { %v152_v43 = vadd.f32 1e-05, %v146_v39  ;;  %v155_v44 = vadd.f32 1e-05, %v149_v40 }
 0x100   :  { %4835 = vrsqrt.f32 %v152_v43  ;;  %vm164_vm3 = vweird.f32 %v152_v43  ;;  %vm194_vm8 = vweird.f32 %v155_v44 }
 0x101   :  { %4837 = vrsqrt.f32 %v155_v44 }
 0x103   :  { %v133_v45 = vpop.xlane.xlu2 %132  ;;  %v142_v50 = vpop.xlane.xlu1 %141 }
 0x104   :  { %v147_v46 = vmul.f32 %v133_v45, %v5213_v14  ;;  %v150_v54 = vmul.f32 %v142_v50, %v5213_v14  ;;  %v73_v45 = vld [vmem:[%s7009_s1 + $0x20] sm:$0xff] }
 0x106   :  { %v4836_v47 = vpop.eup %4835  ;;  %v153_v48 = vadd.f32 1e-05, %v147_v46  ;;  %v156_v59 = vadd.f32 1e-05, %v150_v54 }
 0x107   :  { %v159_v49 = vmul.f32 %v4836_v47, %v152_v43  ;;  %v4838_v51 = vpop.eup %4837  ;;  %vm165_vm2 = vweird.f32 %v4836_v47 }
 0x108   :  { %4839 = vrsqrt.f32 %v153_v48  ;;  %v189_v55 = vmul.f32 %v4838_v51, %v155_v44  ;;  %vm166_vm4 = vmor %vm164_vm3, %vm165_vm2  ;;  %vm174_vm6 = vweird.f32 %v153_v48  ;;  %vm195_vm9 = vweird.f32 %v4838_v51  ;;  %v68_v44 = vld [vmem:[%s7029_s20 + $0x28] sm:$0xff] }
 0x109   :  { %v160_v52 = vmul.f32 %v4836_v47, %v159_v49  ;;  %4841 = vrsqrt.f32 %v156_v59  ;;  %vm196_vm10 = vmor %vm194_vm8, %vm195_vm9  ;;  %vm204_vm11 = vweird.f32 %v156_v59  ;;  %vm938_vm2 = vcmask 195584  }
 0x10a   :  { %v190_v60 = vmul.f32 %v4838_v51, %v189_v55 }
 0x10b   :  { %v161_v53 = vmul.f32 0.5, %v160_v52 }
 0x10c   :  { %v191_v0 = vmul.f32 0.5, %v190_v60 }
 0x10d   :  { %v162_v56 = vsub.f32 1.5, %v161_v53 }
 0x10e   :  { %v4840_v57 = vpop.eup %4839  ;;  %v192_v5 = vsub.f32 1.5, %v191_v0 }
 0x10f   :  { %v163_v58 = vmul.f32 %v4836_v47, %v162_v56  ;;  %v169_v61 = vmul.f32 %v4840_v57, %v153_v48  ;;  %vm175_vm5 = vweird.f32 %v4840_v57  ;;  %v4842_v7 = vpop.eup %4841 }
 0x110   :  { %vm176_vm7 = vmor %vm174_vm6, %vm175_vm5  ;;  %v193_v12 = vmul.f32 %v4838_v51, %v192_v5  ;;  %v199_v13 = vmul.f32 %v4842_v7, %v156_v59  ;;  %vm205_vm12 = vweird.f32 %v4842_v7 }
 0x111   :  { %v167_v62 = vsel %vm166_vm4, %v4836_v47, %v163_v58  ;;  %v170_v63 = vmul.f32 %v4840_v57, %v169_v61  ;;  %vm206_vm13 = vmor %vm204_vm11, %vm205_vm12  ;;  %v4816_v61 = vld [vmem:[%s7010_s6] ss:$0 sm:$0xff] }
 0x112   :  { %v218_v2 = vmul.f32 %v167_v62, %v5219_v20  ;;  %v197_v21 = vsel %vm196_vm10, %v4838_v51, %v193_v12  ;;  %v200_v22 = vmul.f32 %v4842_v7, %v199_v13  ;;  %v4815_v51 = vld [vmem:[%s7032_s28] ss:$0 sm:$0xff] }
 0x113   :  { %v171_v1 = vmul.f32 0.5, %v170_v63  ;;  %v221_v26 = vmul.f32 %v197_v21, %v5217_v19  ;;  %v71_v19 = vld [vmem:[%s7009_s1 + $0x10] sm:$0xff] }
 0x114   :  { %v227_v8 = vmul.f32 %v4813_v3, %v218_v2  ;;  %v201_v28 = vmul.f32 0.5, %v200_v22  ;;  %v264_v36 = vadd.f32 %v71_v19, %v65_v34 }
 0x115   :  { %v172_v4 = vsub.f32 1.5, %v171_v1 }
 0x116   :  { %v5263_v16 = vadd.f32 %v4814_v9, %v227_v8  ;;  %v202_v31 = vsub.f32 1.5, %v201_v28 }
 0x117   :  { %v173_v6 = vmul.f32 %v4840_v57, %v172_v4 }
 0x118   :  { %v262_v24 = vadd.f32 %v5263_v16, %v69_v17  ;;  %v203_v33 = vmul.f32 %v4842_v7, %v202_v31 }
 0x119   :  { %v177_v10 = vsel %vm176_vm7, %v4840_v57, %v173_v6 }
 0x11a   :  { %v219_v11 = vmul.f32 %v177_v10, %v5231_v30  ;;  %v230_v30 = vmul.f32 %v4813_v3, %v221_v26  ;;  %v207_v38 = vsel %vm206_vm13, %v4842_v7, %v203_v33 }
 0x11b   :  { %v222_v40 = vmul.f32 %v207_v38, %v5229_v29  ;;  %v74_v29 = vld [vmem:[%s7009_s1 + $0x28] sm:$0xff] }
 0x11c   :  { %v228_v15 = vmul.f32 %v4813_v3, %v219_v11  ;;  %v5280_v32 = vadd.f32 %v4814_v9, %v230_v30  ;;  %v267_v47 = vadd.f32 %v74_v29, %v68_v44 }
 0x11d   :  { %v231_v42 = vmul.f32 %v4813_v3, %v222_v40 }
 0x11e   :  { %v5271_v20 = vadd.f32 %v4814_v9, %v228_v15  ;;  %v265_v37 = vadd.f32 %v5280_v32, %v72_v35  ;;  %v335_v39 = vpack.c.bf16 %v5280_v32, %v65_v34 }
 0x11f   :  { %v5296_v43 = vadd.f32 %v4814_v9, %v231_v42 }
 0x120   :  { %v334_v23 = vpack.c.bf16 %v5271_v20, %v5263_v16  ;;  %v263_v25 = vadd.f32 %v5271_v20, %v70_v18  ;;  %v284_v41 = vpack.c.bf16 %v265_v37, %v264_v36 }
 0x121   :  { %v266_v46 = vadd.f32 %v5296_v43, %v73_v45  ;;  %v336_v48 = vpack.c.bf16 %v68_v44, %v5296_v43 }
 0x122   :  { %4397 = vmatmul.msk.bf16.vlgmr.msra.gmra.mxu1 %vm84_vm0, %v334_v23  ;;  %v283_v27 = vpack.c.bf16 %v263_v25, %v262_v24 }
 0x123   :  { %v285_v49 = vpack.c.bf16 %v267_v47, %v266_v46 }
 0x124   :  { %4386 = vmatmul.msk.bf16.vlgmr.msra.gmra.mxu0 %vm84_vm0, %v283_v27 }
 0x132   :  { %4398 = vmatmul.msk.bf16.gmra.mxu1 %vm84_vm0, %v335_v39 }
 0x134   :  { %4387 = vmatmul.msk.bf16.gmra.mxu0 %vm84_vm0, %v284_v41 }
 0x142   :  { %4399 = vmatmul.msk.bf16.gmra.mxu1 %vm84_vm0, %v336_v48 }
 0x144   :  { %4388 = vmatmul.msk.bf16.gmra.mxu0 %vm84_vm0, %v285_v49 }
 0x19f   :  { %v370_v50 = vpop.f32.mrf.mxu1 }
 0x1a0   :  { %v371_v53 = vadd.f32 %v4815_v51, %v370_v50 }
 0x1a1   :  { %v319_v52 = vpop.f32.mrf.mxu0 }
 0x1a2   :  { %v529_v56 = vpack.c.bf16 %v371_v53, %v371_v53  ;;  %v320_v3 = vadd.f32 %v4816_v61, %v319_v52 }
 0x1a4   :  { %v5314_v59 = vunpack.c.l.b16 %v529_v56  ;;  %v445_v10 = vpack.c.bf16 %v320_v3, %v320_v3 }
 0x1a6   :  { %v556_v17 = vunpack.c.l.b16 %v445_v10 }
 0x1a7   :  { %v372_v54 = vpop.f32.mrf.mxu1 }
 0x1a8   :  { %v373_v55 = vadd.f32 %v4815_v51, %v372_v54 }
 0x1a9   :  { %v321_v57 = vpop.f32.mrf.mxu0 }
 0x1aa   :  { %v530_v58 = vpack.c.bf16 %v373_v55, %v373_v55  ;;  %v322_v0 = vadd.f32 %v4816_v61, %v321_v57 }
 0x1ac   :  { %v5316_v60 = vunpack.c.l.b16 %v530_v58  ;;  %v446_v8 = vpack.c.bf16 %v322_v0, %v322_v0 }
 0x1ae   :  { %v1241_v62 = vpack.c.b16 %v5316_v60, %v5314_v59  ;;  %v557_v13 = vunpack.c.l.b16 %v446_v8 }
 0x1af   :  { %v375_v63 = vpop.f32.mrf.mxu1 }
 0x1b0   :  { %v5323_v1 = vadd.f32 %v4815_v51, %v375_v63  ;;  %v559_v18 = vpack.c.b16 %v557_v13, %v556_v17 }
 0x1b1   :  { %v324_v2 = vpop.f32.mrf.mxu0 }
 0x1b2   :  { %v325_v4 = vadd.f32 %v4816_v61, %v324_v2  ;;  %v5326_v5 = vpack.i.bf16 %v371_v53, %v5323_v1 }
 0x1b4   :  { %v4633_v6 = vpack.i.bf16 %v320_v3, %v325_v4  ;;  %v447_v7 = vpack.c.bf16 %v325_v4, %v325_v4 }
 0x1b6   :  { %4634 = vrot.lane.b32.xlu2 %v4633_v6, %s5092_s30  ;;  %v558_v9 = vunpack.c.l.b16 %v447_v7 }
 0x1b7   :  { %v377_v11 = vpop.f32.mrf.mxu1 }
 0x1b8   :  { %v5329_v12 = vpack.c.b16 %v558_v9, %v558_v9  ;;  %v5334_v22 = vadd.f32 %v4815_v51, %v377_v11 }
 0x1b9   :  { %v326_v15 = vpop.f32.mrf.mxu0 }
 0x1ba   :  { %563 = vrot.lane.b32.xlu1 %v5329_v12, %s5093_s21  ;;  %v327_v25 = vadd.f32 %v4816_v61, %v326_v15  ;;  %v532_v59 = vpack.c.bf16 %v5334_v22, %v5334_v22 }
 0x1bc   :  { %v448_v31 = vpack.c.bf16 %v327_v25, %v327_v25 }
 0x1be   :  { %561 = vrot.lane.b32.xlu2 %v559_v18, %s5093_s21  ;;  %v599_v37 = vunpack.c.l.b16 %v448_v31 }
 0x1bf   :  { %v380_v21 = vpop.f32.mrf.mxu1 }
 0x1c0   :  { %v5336_v23 = vadd.f32 %v4815_v51, %v380_v21 }
 0x1c1   :  { %v329_v24 = vpop.f32.mrf.mxu0 }
 0x1c2   :  { %v330_v26 = vadd.f32 %v4816_v61, %v329_v24  ;;  %v5340_v27 = vpack.i.bf16 %v5336_v23, %v5334_v22 }
 0x1c4   :  { %v449_v28 = vpack.c.bf16 %v330_v26, %v330_v26  ;;  %v5342_v30 = vpack.i.bf16 %v330_v26, %v327_v25 }
 0x1c6   :  { %4649 = vrot.lane.b32.xlu2 %v4633_v6, %s5094_s3  ;;  %v600_v19 = vunpack.c.l.b16 %v449_v28 }
 0x1c7   :  { %v382_v33 = vpop.f32.mrf.mxu1 }
 0x1c8   :  { %v5345_v34 = vadd.f32 %v4815_v51, %v382_v33  ;;  %v5350_v40 = vpack.c.b16 %v600_v19, %v599_v37 }
 0x1c9   :  { %v331_v35 = vpop.f32.mrf.mxu0 }
 0x1ca   :  { %v332_v36 = vadd.f32 %v4816_v61, %v331_v35  ;;  %v5348_v38 = vpack.i.bf16 %v5345_v34, %v373_v55 }
 0x1cc   :  { %v4638_v39 = vpack.i.bf16 %v332_v36, %v322_v0  ;;  %v450_v41 = vpack.c.bf16 %v332_v36, %v332_v36 }
 0x1ce   :  { %4639 = vrot.lane.b32.xlu0 %v4638_v39, %s5092_s30  ;;  %604 = vrot.lane.b32.xlu2 %v5350_v40, %s5093_s21  ;;  %v601_v42 = vunpack.c.l.b16 %v450_v41 }
 0x1d0   :  { %v5355_v44 = vpack.c.b16 %v601_v42, %v601_v42 }
 0x1d2   :  { %606 = vrot.lane.b32.xlu1 %v5355_v44, %s5093_s21 }
 0x1d6   :  { %4644 = vrot.lane.b32.xlu0 %v5342_v30, %s5092_s30 }
 0x1de   :  { %4654 = vrot.lane.b32.xlu0 %v4638_v39, %s5094_s3 }
 0x1e6   :  { %4659 = vrot.lane.b32.xlu0 %v4633_v6, %s5095_s22 }
 0x1ee   :  { %4669 = vrot.lane.b32.xlu0 %v5342_v30, %s5094_s3 }
 0x210   :  { %v4635_v45 = vpop.permute.xlu2 %4634 }
 0x211   :  { %v4636_v29 = vunpack.i.l.bf16 %v4635_v45  ;;  %v4637_v58 = vunpack.i.h.bf16 %v4635_v45 }
 0x213   :  { %v453_v46 = vpack.c.bf16 %v4636_v29, %v4636_v29  ;;  %v451_v63 = vpack.c.bf16 %v4637_v58, %v4637_v58 }
 0x215   :  { %v643_v47 = vunpack.c.l.b16 %v453_v46  ;;  %v641_v6 = vunpack.c.l.b16 %v451_v63 }
 0x217   :  { %v5365_v48 = vpack.c.b16 %v643_v47, %v643_v47 }
 0x218   :  { %v562_v49 = vpop.permute.xlu2 %561 }
 0x219   :  { %648 = vrot.lane.b32.xlu1 %v5365_v48, %s5093_s21  ;;  %v573_v57 = vsel %vm565_vm14, %v562_v49, 0 }
 0x220   :  { %v4650_v50 = vpop.permute.xlu2 %4649 }
 0x221   :  { %v4651_v51 = vunpack.i.l.bf16 %v4650_v50  ;;  %4664 = vrot.lane.b32.xlu1 %v4638_v39, %s5095_s22  ;;  %v4652_v25 = vunpack.i.h.bf16 %v4650_v50 }
 0x223   :  { %v459_v52 = vpack.c.bf16 %v4651_v51, %v4651_v51  ;;  %v457_v36 = vpack.c.bf16 %v4652_v25, %v4652_v25 }
 0x225   :  { %v727_v53 = vunpack.c.l.b16 %v459_v52  ;;  %v725_v42 = vunpack.c.l.b16 %v457_v36 }
 0x227   :  { %v5370_v54 = vpack.c.b16 %v727_v53, %v727_v53 }
 0x228   :  { %v605_v17 = vpop.permute.xlu2 %604 }
 0x229   :  { %732 = vrot.lane.b32.xlu0 %v5370_v54, %s5093_s21  ;;  %v615_v31 = vsel %vm565_vm14, %v605_v17, 0 }
 0x22c   :  { %v564_v55 = vpop.permute.xlu1 %563 }
 0x22d   :  { %v576_v56 = vsel %vm565_vm14, %v564_v55, 0 }
 0x22e   :  { %584 = vmatpush.bf16.xpose.msra.mxu2 %v576_v56 }
 0x236   :  { %585 = vmatpush.bf16.xpose.msra.mxu2 %v573_v57 }
 0x23d   :  { %4400 = vmatmul.msk.bf16.vlgmr.msra.gmra.mxu2 %vm565_vm14, %v559_v18 }
 0x240   :  { %v4640_v61 = vpop.permute.xlu0 %4639 }
 0x241   :  { %v4641_v0 = vunpack.i.l.bf16 %v4640_v61  ;;  %v4642_v2 = vunpack.i.h.bf16 %v4640_v61 }
 0x243   :  { %v452_v3 = vpack.c.bf16 %v4641_v0, %v4641_v0  ;;  %v456_v9 = vpack.c.bf16 %v4642_v2, %v4642_v2 }
 0x244   :  { %v607_v4 = vpop.permute.xlu1 %606 }
 0x245   :  { %v642_v7 = vunpack.c.l.b16 %v452_v3  ;;  %v618_v8 = vsel %vm565_vm14, %v607_v4, 0  ;;  %v685_v24 = vunpack.c.l.b16 %v456_v9 }
 0x246   :  { %626 = vmatpush.bf16.xpose.msra.mxu3 %v618_v8 }
 0x247   :  { %v5378_v10 = vpack.c.b16 %v642_v7, %v641_v6  ;;  %v5385_v33 = vpack.c.b16 %v685_v24, %v685_v24 }
 0x248   :  { %v4645_v11 = vpop.permute.xlu0 %4644 }
 0x249   :  { %v4647_v13 = vunpack.i.h.bf16 %v4645_v11  ;;  %v4646_v15 = vunpack.i.l.bf16 %v4645_v11  ;;  %646 = vrot.lane.b32.xlu2 %v5378_v10, %s5093_s21 }
 0x24b   :  { %v455_v18 = vpack.c.bf16 %v4647_v13, %v4647_v13  ;;  %v454_v21 = vpack.c.bf16 %v4646_v15, %v4646_v15 }
 0x24d   :  { %v684_v26 = vunpack.c.l.b16 %v455_v18  ;;  %v683_v28 = vunpack.c.l.b16 %v454_v21  ;;  %4401 = vmatmul.msk.bf16.gmra.mxu2 %vm565_vm14, %v5329_v12 }
 0x24e   :  { %627 = vmatpush.bf16.xpose.msra.mxu3 %v615_v31 }
 0x24f   :  { %v5387_v19 = vpack.c.b16 %v684_v26, %v683_v28 }
 0x250   :  { %v4655_v35 = vpop.permute.xlu0 %4654 }
 0x251   :  { %v4656_v37 = vunpack.i.l.bf16 %v4655_v35  ;;  %690 = vrot.lane.b32.xlu2 %v5385_v33, %s5093_s21  ;;  %688 = vrot.lane.b32.xlu1 %v5387_v19, %s5093_s21  ;;  %v4657_v39 = vunpack.i.h.bf16 %v4655_v35 }
 0x253   :  { %v458_v41 = vpack.c.bf16 %v4656_v37, %v4656_v37  ;;  %v462_v45 = vpack.c.bf16 %v4657_v39, %v4657_v39 }
 0x255   :  { %v726_v12 = vunpack.c.l.b16 %v458_v41  ;;  %4402 = vmatmul.msk.bf16.vlgmr.msra.gmra.mxu3 %vm565_vm14, %v5350_v40  ;;  %v769_v50 = vunpack.c.l.b16 %v462_v45 }
 0x257   :  { %v5395_v29 = vpack.c.b16 %v726_v12, %v725_v42  ;;  %v5403_v53 = vpack.c.b16 %v769_v50, %v769_v50  ;;  %v531_v50 = vpack.c.bf16 %v5323_v1, %v5323_v1 }
 0x258   :  { %v4660_v46 = vpop.permute.xlu0 %4659 }
 0x259   :  { %v4661_v47 = vunpack.i.l.bf16 %v4660_v46  ;;  %4674 = vrot.lane.b32.xlu2 %v5342_v30, %s5095_s22  ;;  %730 = vrot.lane.b32.xlu1 %v5395_v29, %s5093_s21  ;;  %v4662_v3 = vunpack.i.h.bf16 %v4660_v46 }
 0x25b   :  { %v465_v49 = vpack.c.bf16 %v4661_v47, %v4661_v47  ;;  %v463_v6 = vpack.c.bf16 %v4662_v3, %v4662_v3 }
 0x25d   :  { %v811_v51 = vunpack.c.l.b16 %v465_v49  ;;  %v248_v49 = vld [vmem:[%s7011_s2] sm:$0x3] }
 0x25e   :  { %vm252_vm15 = vcmp.gt.f32.partialorder %v248_v49, 0.5 }
 0x25f   :  { %v5401_v52 = vpack.c.b16 %v811_v51, %v811_v51 }
 0x260   :  { %v4670_v55 = vpop.permute.xlu0 %4669 }
 0x261   :  { %v4672_v40 = vunpack.i.h.bf16 %v4670_v55  ;;  %v4671_v56 = vunpack.i.l.bf16 %v4670_v55  ;;  %816 = vrot.lane.b32.xlu0 %v5401_v52, %s5093_s21  ;;  %774 = vrot.lane.b32.xlu2 %v5403_v53, %s5093_s21 }
 0x263   :  { %v461_v30 = vpack.c.bf16 %v4672_v40, %v4672_v40  ;;  %v460_v57 = vpack.c.bf16 %v4671_v56, %v4671_v56  ;;  %v5096_v40 = vmov 0.0  }
 0x264   :  { %v254_v56 = vsel %vm252_vm15, -1e+30, %v5096_v40 }
 0x265   :  { %v768_v58 = vunpack.c.l.b16 %v461_v30  ;;  %v767_v61 = vunpack.c.l.b16 %v460_v57  ;;  %4403 = vmatmul.msk.bf16.gmra.mxu3 %vm565_vm14, %v5355_v44  ;;  %v809_v44 = vunpack.c.l.b16 %v463_v6 }
 0x267   :  { %v5411_v63 = vpack.c.b16 %v768_v58, %v767_v61  ;;  %v5446_v58 = vperm.slane %v254_v56, 0 }
 0x269   :  { %772 = vrot.lane.b32.xlu0 %v5411_v63, %s5093_s21 }
 0x271   :  { %4679 = vrot.lane.b32.xlu0 %v5326_v5, %s5092_s30 }
 0x28b   :  { %v649_v0 = vpop.permute.xlu1 %648 }
 0x28c   :  { %v660_v2 = vsel %vm565_vm14, %v649_v0, 0 }
 0x28d   :  { %668 = vmatpush.bf16.xpose.msrb.mxu2 %v660_v2 }
 0x293   :  { %v4665_v4 = vpop.permute.xlu1 %4664 }
 0x294   :  { %v4667_v7 = vunpack.i.h.bf16 %v4665_v4  ;;  %v4666_v8 = vunpack.i.l.bf16 %v4665_v4 }
 0x296   :  { %v468_v9 = vpack.c.bf16 %v4667_v7, %v4667_v7  ;;  %v464_v11 = vpack.c.bf16 %v4666_v8, %v4666_v8  ;;  %v534_v7 = vpack.c.bf16 %v5345_v34, %v5345_v34  ;;  %v533_v34 = vpack.c.bf16 %v5336_v23, %v5336_v23 }
 0x298   :  { %v810_v13 = vunpack.c.l.b16 %v464_v11  ;;  %v853_v15 = vunpack.c.l.b16 %v468_v9  ;;  %v1285_v9 = vunpack.c.l.b16 %v534_v7  ;;  %v250_v11 = vrot.slane %v248_v49, 1 }
 0x29a   :  { %v5418_v17 = vpack.c.b16 %v853_v15, %v853_v15  ;;  %v5420_v18 = vpack.c.b16 %v810_v13, %v809_v44  ;;  %v1287_v15 = vpack.c.b16 %v1285_v9, %v1285_v9  ;;  %vm253_vm3 = vcmp.gt.f32.partialorder %v250_v11, 0.5 }
 0x29b   :  { %v733_v21 = vpop.permute.xlu0 %732  ;;  %v255_v23 = vsel %vm253_vm3, -1e+30, %v5096_v40 }
 0x29c   :  { %858 = vrot.lane.b32.xlu2 %v5418_v17, %s5093_s21  ;;  %814 = vrot.lane.b32.xlu1 %v5420_v18, %s5093_s21  ;;  %v744_v24 = vsel %vm565_vm14, %v733_v21, 0  ;;  %v1296_v21 = vsel %vm1250_vm1, %v1287_v15, 0  ;;  %v5475_v22 = vperm.slane %v255_v23, 0 }
 0x29d   :  { %752 = vmatpush.bf16.xpose.msrb.mxu0 %v744_v24 }
 0x2a3   :  { %v647_v25 = vpop.permute.xlu2 %646 }
 0x2a4   :  { %4694 = vrot.lane.b32.xlu2 %v5326_v5, %s5095_s22  ;;  %v657_v26 = vsel %vm565_vm14, %v647_v25, 0 }
 0x2a5   :  { %669 = vmatpush.bf16.xpose.msrb.mxu2 %v657_v26 }
 0x2ab   :  { %v691_v28 = vpop.permute.xlu2 %690 }
 0x2ac   :  { %4404 = vmatmul.msk.bf16.vlgmr.msrb.gmra.mxu2 %vm565_vm14, %v5378_v10  ;;  %v702_v31 = vsel %vm565_vm14, %v691_v28, 0 }
 0x2ad   :  { %4623 = vmatpush.bf16.xpose.msra.mxu2 %v744_v24  ;;  %710 = vmatpush.bf16.xpose.msrb.mxu3 %v702_v31  ;;  %v1283_v24 = vunpack.c.l.b16 %v532_v59 }
 0x2b3   :  { %v4675_v35 = vpop.permute.xlu2 %4674 }
 0x2b4   :  { %v4677_v36 = vunpack.i.h.bf16 %v4675_v35  ;;  %v4676_v37 = vunpack.i.l.bf16 %v4675_v35 }
 0x2b6   :  { %v467_v39 = vpack.c.bf16 %v4677_v36, %v4677_v36  ;;  %v466_v41 = vpack.c.bf16 %v4676_v37, %v4676_v37 }
 0x2b8   :  { %v852_v42 = vunpack.c.l.b16 %v467_v39  ;;  %v851_v12 = vunpack.c.l.b16 %v466_v41 }
 0x2ba   :  { %v5433_v45 = vpack.c.b16 %v852_v42, %v851_v12 }
 0x2bb   :  { %v775_v46 = vpop.permute.xlu2 %774 }
 0x2bc   :  { %4405 = vmatmul.msk.bf16.gmra.mxu2 %vm565_vm14, %v5365_v48  ;;  %856 = vrot.lane.b32.xlu1 %v5433_v45, %s5093_s21  ;;  %v786_v10 = vsel %vm565_vm14, %v775_v46, 0  ;;  %v1240_v48 = vunpack.c.l.b16 %v531_v50 }
 0x2bd   :  { %794 = vmatpush.bf16.xpose.msrb.mxu1 %v786_v10 }
 0x2be   :  { %v1242_v61 = vpack.c.b16 %v1240_v48, %v1240_v48 }
 0x2c0   :  { %v587_v47 = vpop.f32.mrf.mxu2  ;;  %v1252_v4 = vsel %vm1250_vm1, %v1242_v61, 0 }
 0x2c3   :  { %v689_v51 = vpop.permute.xlu1 %688 }
 0x2c4   :  { %v699_v55 = vsel %vm565_vm14, %v689_v51, 0 }
 0x2c5   :  { %711 = vmatpush.bf16.xpose.msrb.mxu3 %v699_v55 }
 0x2c8   :  { %v589_v30 = vpop.f32.mrf.mxu2 }
 0x2c9   :  { %v891_v57 = vmul.f32 2.828427, %v589_v30 }
 0x2cb   :  { %v731_v0 = vpop.permute.xlu1 %730  ;;  %v5449_v2 = vadd.f32 %v891_v57, %v5446_v58 }
 0x2cc   :  { %4406 = vmatmul.msk.bf16.vlgmr.msrb.gmra.mxu3 %vm565_vm14, %v5387_v19  ;;  %v741_v1 = vsel %vm565_vm14, %v731_v0, 0 }
 0x2cd   :  { %4625 = vmatpush.bf16.xpose.msra.mxu3 %v786_v10  ;;  %753 = vmatpush.bf16.xpose.msrb.mxu0 %v741_v1  ;;  %v942_v3 = vsel %vm938_vm2, %v5449_v2, -inf }
 0x2ce   :  { %4624 = vmatpush.bf16.xpose.msra.mxu2 %v741_v1  ;;  %943 = vmax.xlane.f32.xlu0 %v942_v3 }
 0x2d0   :  { %v592_v6 = vpop.f32.mrf.mxu2 }
 0x2d1   :  { %v892_v35 = vmul.f32 2.828427, %v592_v6 }
 0x2d3   :  { %v817_v19 = vpop.permute.xlu0 %816  ;;  %v5490_v42 = vadd.f32 %v892_v35, %v5446_v58 }
 0x2d4   :  { %v828_v8 = vsel %vm565_vm14, %v817_v19, 0  ;;  %4408 = vmatmul.msk.bf16.vlgmr.msrb.gmra.mxu0 %vm565_vm14, %v5395_v29  ;;  %v890_v29 = vmul.f32 2.828427, %v587_v47 }
 0x2d5   :  { %1260 = vmatpush.bf16.msra.mxu0 %v1252_v4  ;;  %4409 = vmatmul.msk.bf16.vlgmr.msra.gmra.mxu2 %vm565_vm14, %v5370_v54  ;;  %v1284_v54 = vunpack.c.l.b16 %v533_v34  ;;  %v945_v10 = vsel %vm938_vm2, %v5490_v42, -inf }
 0x2d6   :  { %836 = vmatpush.bf16.xpose.msrb.mxu2 %v828_v8  ;;  %v5478_v31 = vadd.f32 %v890_v29, %v5446_v58 }
 0x2d7   :  { %v1286_v26 = vpack.c.b16 %v1284_v54, %v1283_v24 }
 0x2d8   :  { %v594_v44 = vpop.f32.mrf.mxu2  ;;  %v629_v13 = vpop.f32.mrf.mxu3  ;;  %v939_v37 = vsel %vm938_vm2, %v5478_v31, -inf }
 0x2d9   :  { %1261 = vmatpush.bf16.msra.mxu0 %v1241_v62 }
 0x2db   :  { %v773_v60 = vpop.permute.xlu0 %772 }
 0x2dc   :  { %4407 = vmatmul.msk.bf16.gmra.mxu3 %vm565_vm14, %v5385_v33  ;;  %v783_v62 = vsel %vm565_vm14, %v773_v60, 0 }
 0x2dd   :  { %795 = vmatpush.bf16.xpose.msrb.mxu1 %v783_v62  ;;  %4626 = vmatpush.bf16.xpose.msra.mxu3 %v783_v62 }
 0x2e0   :  { %v631_v25 = vpop.f32.mrf.mxu3 }
 0x2e1   :  { %v894_v28 = vmul.f32 2.828427, %v631_v25 }
 0x2e3   :  { %v5481_v33 = vadd.f32 %v894_v28, %v5475_v22  ;;  %v5507_v55 = vpop.permute.xlu0 %4679 }
 0x2e4   :  { %4410 = vmatmul.msk.bf16.vlgmr.msrb.gmra.mxu1 %vm565_vm14, %v5411_v63  ;;  %v893_v63 = vmul.f32 2.828427, %v629_v13  ;;  %v4681_v48 = vunpack.i.l.bf16 %v5507_v55 }
 0x2e5   :  { %1304 = vmatpush.bf16.msra.mxu1 %v1296_v21  ;;  %v951_v36 = vsel %vm938_vm2, %v5481_v33, -inf }
 0x2e6   :  { %952 = vmax.xlane.f32.xlu0 %v951_v36  ;;  %940 = vmax.xlane.f32.xlu1 %v939_v37  ;;  %v5502_v49 = vadd.f32 %v893_v63, %v5475_v22  ;;  %v537_v40 = vpack.c.bf16 %v4681_v48, %v4681_v48 }
 0x2e8   :  { %v634_v39 = vpop.f32.mrf.mxu3  ;;  %v948_v50 = vsel %vm938_vm2, %v5502_v49, -inf  ;;  %v1329_v56 = vunpack.c.l.b16 %v537_v40 }
 0x2e9   :  { %1305 = vmatpush.bf16.msra.mxu1 %v1286_v26  ;;  %v895_v41 = vmul.f32 2.828427, %v634_v39 }
 0x2ea   :  { %v1331_v30 = vpack.c.b16 %v1329_v56, %v1329_v56 }
 0x2eb   :  { %v5493_v12 = vadd.f32 %v895_v41, %v5475_v22 }
 0x2ec   :  { %4411 = vmatmul.msk.bf16.vlgmr.msra.gmra.mxu3 %vm565_vm14, %v5403_v53  ;;  %v1340_v0 = vsel %vm1250_vm1, %v1331_v30, 0 }
 0x2ed   :  { %v954_v46 = vsel %vm938_vm2, %v5493_v12, -inf }
 0x2ee   :  { %955 = vmax.xlane.f32.xlu0 %v954_v46  ;;  %946 = vmax.xlane.f32.xlu1 %v945_v10 }
 0x2f0   :  { %v636_v47 = vpop.f32.mrf.mxu3 }
 0x2f6   :  { %v859_v51 = vpop.permute.xlu2 %858  ;;  %949 = vmax.xlane.f32.xlu1 %v948_v50 }
 0x2f7   :  { %v870_v53 = vsel %vm565_vm14, %v859_v51, 0 }
 0x2f8   :  { %878 = vmatpush.bf16.xpose.msrb.mxu3 %v870_v53 }
 0x30e   :  { %v815_v57 = vpop.permute.xlu1 %814 }
 0x30f   :  { %4689 = vrot.lane.b32.xlu1 %v5340_v27, %s5092_s30  ;;  %v825_v61 = vsel %vm565_vm14, %v815_v57, 0 }
 0x310   :  { %837 = vmatpush.bf16.xpose.msrb.mxu2 %v825_v61 }
 0x317   :  { %4699 = vrot.lane.b32.xlu1 %v5326_v5, %s5094_s3  ;;  %4412 = vmatmul.msk.bf16.vlgmr.msrb.gmra.mxu2 %vm565_vm14, %v5420_v18 }
 0x318   :  { %1348 = vmatpush.bf16.msra.mxu2 %v1340_v0 }
 0x327   :  { %4413 = vmatmul.msk.bf16.gmra.mxu2 %vm565_vm14, %v5401_v52 }
 0x32e   :  { %v857_v1 = vpop.permute.xlu1 %856 }
 0x32f   :  { %v671_v3 = vpop.f32.mrf.mxu2  ;;  %v867_v4 = vsel %vm565_vm14, %v857_v1, 0 }
 0x330   :  { %879 = vmatpush.bf16.xpose.msrb.mxu3 %v867_v4  ;;  %v896_v9 = vmul.f32 2.828427, %v671_v3 }
 0x332   :  { %v5533_v59 = vadd.f32 %v896_v9, %v5446_v58 }
 0x334   :  { %v957_v29 = vsel %vm938_vm2, %v5533_v59, -inf }
 0x337   :  { %v673_v6 = vpop.f32.mrf.mxu2  ;;  %4414 = vmatmul.msk.bf16.vlgmr.msrb.gmra.mxu3 %vm565_vm14, %v5433_v45 }
 0x338   :  { %v897_v54 = vmul.f32 2.828427, %v673_v6 }
 0x33a   :  { %v5544_v26 = vadd.f32 %v897_v54, %v5446_v58 }
 0x33c   :  { %v960_v39 = vsel %vm938_vm2, %v5544_v26, -inf }
 0x33f   :  { %v676_v7 = vpop.f32.mrf.mxu2 }
 0x340   :  { %v898_v36 = vmul.f32 2.828427, %v676_v7 }
 0x341   :  { %v944_v63 = vpop.xlane.xlu0 %943 }
 0x342   :  { %v5554_v10 = vadd.f32 %v898_v36, %v5446_v58  ;;  %v1012_v47 = vsub.f32 %v5449_v2, %v944_v63 }
 0x344   :  { %v963_v56 = vsel %vm938_vm2, %v5554_v10, -inf  ;;  %v1037_v57 = vmul.f32 1.442695, %v1012_v47 }
 0x347   :  { %v678_v19 = vpop.f32.mrf.mxu2  ;;  %4415 = vmatmul.msk.bf16.gmra.mxu3 %vm565_vm14, %v5418_v17 }
 0x34f   :  { %v5525_v5 = vpop.f32.mrf.mxu3 }
 0x351   :  { %v755_v18 = vpop.f32.mrf.mxu0 }
 0x352   :  { %v902_v8 = vmul.f32 2.828427, %v755_v18 }
 0x354   :  { %v5528_v52 = vadd.f32 %v902_v8, %v5446_v58 }
 0x356   :  { %v975_v11 = vsel %vm938_vm2, %v5528_v52, -inf }
 0x357   :  { %v715_v44 = vpop.f32.mrf.mxu3  ;;  %976 = vmax.xlane.f32.xlu0 %v975_v11 }
 0x358   :  { %v760_v13 = vpop.f32.mrf.mxu2  ;;  %v900_v18 = vmul.f32 2.828427, %v715_v44 }
 0x359   :  { %v757_v45 = vpop.f32.mrf.mxu0  ;;  %v941_v15 = vpop.xlane.xlu1 %940  ;;  %v904_v53 = vmul.f32 2.828427, %v760_v13 }
 0x35a   :  { %v903_v34 = vmul.f32 2.828427, %v757_v45  ;;  %v1011_v17 = vsub.f32 %v5478_v31, %v941_v15  ;;  %v953_v6 = vpop.xlane.xlu0 %952  ;;  %v5591_v15 = vadd.f32 %v900_v18, %v5475_v22 }
 0x35b   :  { %v5565_v0 = vadd.f32 %v904_v53, %v5446_v58  ;;  %v1015_v19 = vsub.f32 %v5481_v33, %v953_v6 }
 0x35c   :  { %v5537_v60 = vadd.f32 %v903_v34, %v5446_v58  ;;  %v1035_v62 = vmul.f32 1.442695, %v1011_v17  ;;  %v969_v44 = vsel %vm938_vm2, %v5591_v15, -inf }
 0x35d   :  { %v1043_v13 = vmul.f32 1.442695, %v1015_v19 }
 0x35e   :  { %v978_v21 = vsel %vm938_vm2, %v5537_v60, -inf  ;;  %4843 = vpow2.f32 %v1035_v62 }
 0x35f   :  { %v718_v24 = vpop.f32.mrf.mxu3  ;;  %958 = vmax.xlane.f32.xlu0 %v957_v29  ;;  %979 = vmax.xlane.f32.xlu2 %v978_v21 }
 0x360   :  { %v762_v23 = vpop.f32.mrf.mxu2  ;;  %v901_v8 = vmul.f32 2.828427, %v718_v24 }
 0x361   :  { %v947_v25 = vpop.xlane.xlu1 %946 }
 0x362   :  { %v1013_v28 = vsub.f32 %v5490_v42, %v947_v25  ;;  %v797_v42 = vpop.f32.mrf.mxu1  ;;  %v5588_v34 = vadd.f32 %v901_v8, %v5475_v22 }
 0x363   :  { %v905_v48 = vmul.f32 2.828427, %v797_v42 }
 0x364   :  { %v5547_v31 = vpop.eup %4843  ;;  %v1039_v35 = vmul.f32 1.442695, %v1013_v28  ;;  %v972_v33 = vsel %vm938_vm2, %v5588_v34, -inf  ;;  %v899_v28 = vmul.f32 2.828427, %v5525_v5 }
 0x365   :  { %v1083_v37 = vsel %vm938_vm2, %v5547_v31, 0.0  ;;  %v5568_v2 = vadd.f32 %v905_v48, %v5475_v22 }
 0x366   :  { %4845 = vpow2.f32 %v1039_v35  ;;  %1084 = vadd.xlane.f32.xlu1 %v1083_v37  ;;  %v5607_v35 = vadd.f32 %v899_v28, %v5475_v22 }
 0x367   :  { %v720_v41 = vpop.f32.mrf.mxu3  ;;  %961 = vmax.xlane.f32.xlu2 %v960_v39  ;;  %4847 = vpow2.f32 %v1037_v57  ;;  %v984_v1 = vsel %vm938_vm2, %v5568_v2, -inf }
 0x368   :  { %v966_v63 = vsel %vm938_vm2, %v5607_v35, -inf }
 0x369   :  { %v950_v46 = vpop.xlane.xlu1 %949 }
 0x36a   :  { %v1014_v51 = vsub.f32 %v5502_v49, %v950_v46  ;;  %v981_v49 = vsel %vm938_vm2, %v5565_v0, -inf  ;;  %v799_v36 = vpop.f32.mrf.mxu1 }
 0x36b   :  { %v906_v41 = vmul.f32 2.828427, %v799_v36 }
 0x36c   :  { %v5557_v50 = vpop.eup %4845  ;;  %v1041_v61 = vmul.f32 1.442695, %v1014_v51 }
 0x36d   :  { %v1089_v40 = vsel %vm938_vm2, %v5557_v50, 0.0  ;;  %v5576_v4 = vpop.eup %4847  ;;  %v5617_v5 = vadd.f32 %v906_v41, %v5475_v22 }
 0x36e   :  { %1090 = vadd.xlane.f32.xlu1 %v1089_v40  ;;  %4849 = vpow2.f32 %v1041_v61  ;;  %v1086_v11 = vsel %vm938_vm2, %v5576_v4, 0.0 }
 0x36f   :  { %v802_v30 = vpop.f32.mrf.mxu3  ;;  %964 = vmax.xlane.f32.xlu2 %v963_v56  ;;  %4851 = vpow2.f32 %v1043_v13  ;;  %v987_v40 = vsel %vm938_vm2, %v5617_v5, -inf }
 0x370   :  { %v907_v42 = vmul.f32 2.828427, %v802_v30 }
 0x372   :  { %v5620_v48 = vadd.f32 %v907_v42, %v5475_v22 }
 0x373   :  { %4684 = vrot.lane.b32.xlu0 %v5348_v38, %s5092_s30 }
 0x374   :  { %v5578_v7 = vpop.eup %4849  ;;  %v990_v30 = vsel %vm938_vm2, %v5620_v48, -inf }
 0x375   :  { %v1092_v9 = vsel %vm938_vm2, %v5578_v7, 0.0  ;;  %v5600_v54 = vpop.eup %4851 }
 0x376   :  { %982 = vmax.xlane.f32.xlu1 %v981_v49  ;;  %v1095_v24 = vsel %vm938_vm2, %v5600_v54, 0.0 }
 0x377   :  { %v804_v3 = vpop.f32.mrf.mxu3  ;;  %985 = vmax.xlane.f32.xlu2 %v984_v1 }
 0x37e   :  { %1093 = vadd.xlane.f32.xlu1 %v1092_v9 }
 0x37f   :  { %1087 = vadd.xlane.f32.xlu2 %v1086_v11  ;;  %v5641_v11 = vpop.xlane.xlu0 %955 }
 0x381   :  { %v5585_v45 = vpop.permute.xlu1 %4689 }
 0x386   :  { %973 = vmax.xlane.f32.xlu1 %v972_v33 }
 0x387   :  { %970 = vmax.xlane.f32.xlu2 %v969_v44 }
 0x389   :  { %v5597_v17 = vpop.permute.xlu1 %4699 }
 0x38a   :  { %v4701_v62 = vunpack.i.l.bf16 %v5597_v17 }
 0x38c   :  { %v543_v29 = vpack.c.bf16 %v4701_v62, %v4701_v62 }
 0x38e   :  { %v1417_v21 = vunpack.c.l.b16 %v543_v29  ;;  %v5648_v29 = vpop.permute.xlu2 %4694 }
 0x38f   :  { %1096 = vadd.xlane.f32.xlu2 %v1095_v24 }
 0x390   :  { %v1419_v23 = vpack.c.b16 %v1417_v21, %v1417_v21 }
 0x392   :  { %v1428_v25 = vsel %vm1250_vm1, %v1419_v23, 0 }
 0x393   :  { %1436 = vmatpush.bf16.msrb.mxu0 %v1428_v25 }
 0x39a   :  { %v839_v37 = vpop.f32.mrf.mxu2 }
 0x39b   :  { %v908_v39 = vmul.f32 2.828427, %v839_v37 }
 0x39d   :  { %967 = vmax.xlane.f32.xlu0 %v966_v63  ;;  %v5612_v46 = vadd.f32 %v908_v39, %v5446_v58 }
 0x39f   :  { %v993_v47 = vsel %vm938_vm2, %v5612_v46, -inf }
 0x3a0   :  { %994 = vmax.xlane.f32.xlu2 %v993_v47 }
 0x3a2   :  { %v841_v51 = vpop.f32.mrf.mxu2 }
 0x3a3   :  { %v909_v53 = vmul.f32 2.828427, %v841_v51 }
 0x3a5   :  { %988 = vmax.xlane.f32.xlu0 %v987_v40  ;;  %v5625_v56 = vadd.f32 %v909_v53, %v5446_v58 }
 0x3a7   :  { %v996_v57 = vsel %vm938_vm2, %v5625_v56, -inf }
 0x3a8   :  { %991 = vmax.xlane.f32.xlu2 %v990_v30  ;;  %997 = vmax.xlane.f32.xlu1 %v996_v57 }
 0x3aa   :  { %v844_v61 = vpop.f32.mrf.mxu2 }
 0x3ab   :  { %v910_v49 = vmul.f32 2.828427, %v844_v61 }
 0x3ad   :  { %v5632_v1 = vadd.f32 %v910_v49, %v5446_v58 }
 0x3af   :  { %v999_v3 = vsel %vm938_vm2, %v5632_v1, -inf }
 0x3b0   :  { %1000 = vmax.xlane.f32.xlu2 %v999_v3 }
 0x3b2   :  { %v846_v6 = vpop.f32.mrf.mxu2 }
 0x3ba   :  { %v881_v19 = vpop.f32.mrf.mxu3 }
 0x3bb   :  { %v911_v18 = vmul.f32 2.828427, %v881_v19 }
 0x3bd   :  { %v5637_v8 = vadd.f32 %v911_v18, %v5475_v22  ;;  %v4682_v18 = vunpack.i.h.bf16 %v5507_v55 }
 0x3bf   :  { %v1002_v9 = vsel %vm938_vm2, %v5637_v8, -inf }
 0x3c0   :  { %1003 = vmax.xlane.f32.xlu1 %v1002_v9 }
 0x3c2   :  { %v883_v13 = vpop.f32.mrf.mxu3 }
 0x3c3   :  { %v912_v33 = vmul.f32 2.828427, %v883_v13 }
 0x3c5   :  { %v5644_v44 = vadd.f32 %v912_v33, %v5475_v22 }
 0x3c7   :  { %v1005_v62 = vsel %vm938_vm2, %v5644_v44, -inf }
 0x3c8   :  { %1006 = vmax.xlane.f32.xlu2 %v1005_v62  ;;  %v535_v62 = vpack.c.bf16 %v4682_v18, %v4682_v18 }
 0x3ca   :  { %v977_v21 = vpop.xlane.xlu0 %976  ;;  %v886_v24 = vpop.f32.mrf.mxu3 }
 0x3cb   :  { %v1023_v23 = vsub.f32 %v5528_v52, %v977_v21  ;;  %v913_v25 = vmul.f32 2.828427, %v886_v24  ;;  %v4692_v21 = vunpack.i.h.bf16 %v5585_v45  ;;  %v4691_v24 = vunpack.i.l.bf16 %v5585_v45 }
 0x3cd   :  { %v1059_v28 = vmul.f32 1.442695, %v1023_v23  ;;  %v5652_v36 = vadd.f32 %v913_v25, %v5475_v22 }
 0x3cf   :  { %4853 = vpow2.f32 %v1059_v28  ;;  %v1008_v37 = vsel %vm938_vm2, %v5652_v36, -inf }
 0x3d0   :  { %1009 = vmax.xlane.f32.xlu2 %v1008_v37 }
 0x3d2   :  { %v959_v39 = vpop.xlane.xlu0 %958  ;;  %v980_v41 = vpop.xlane.xlu2 %979 }
 0x3d3   :  { %v1017_v63 = vsub.f32 %v5533_v59, %v959_v39  ;;  %v1024_v42 = vsub.f32 %v5537_v60, %v980_v41  ;;  %v888_v47 = vpop.f32.mrf.mxu3  ;;  %v4696_v60 = vunpack.i.l.bf16 %v5648_v29 }
 0x3d4   :  { %v538_v47 = vpack.c.bf16 %v4691_v24, %v4691_v24 }
 0x3d5   :  { %v5658_v51 = vpop.eup %4853  ;;  %v1047_v52 = vmul.f32 1.442695, %v1017_v63  ;;  %v1061_v53 = vmul.f32 1.442695, %v1024_v42  ;;  %v539_v42 = vpack.c.bf16 %v4692_v21, %v4692_v21 }
 0x3d6   :  { %v1119_v40 = vsel %vm938_vm2, %v5658_v51, 0.0 }
 0x3d7   :  { %4855 = vpow2.f32 %v1047_v52  ;;  %1120 = vadd.xlane.f32.xlu0 %v1119_v40  ;;  %v1327_v52 = vunpack.c.l.b16 %v535_v62 }
 0x3d8   :  { %4857 = vpow2.f32 %v1061_v53 }
 0x3d9   :  { %v1085_v61 = vpop.xlane.xlu1 %1084 }
 0x3da   :  { %v962_v30 = vpop.xlane.xlu2 %961 }
 0x3db   :  { %v1018_v57 = vsub.f32 %v5544_v26, %v962_v30  ;;  %v549_v26 = vpack.c.bf16 %v4696_v60, %v4696_v60 }
 0x3dd   :  { %v5663_v49 = vpop.eup %4855  ;;  %v1049_v59 = vmul.f32 1.442695, %v1018_v57  ;;  %v1505_v28 = vunpack.c.l.b16 %v549_v26 }
 0x3de   :  { %v5665_v3 = vpop.eup %4857  ;;  %v1101_v6 = vsel %vm938_vm2, %v5663_v49, 0.0 }
 0x3df   :  { %4859 = vpow2.f32 %v1049_v59  ;;  %v1122_v19 = vsel %vm938_vm2, %v5665_v3, 0.0  ;;  %1102 = vadd.xlane.f32.xlu2 %v1101_v6  ;;  %v1507_v53 = vpack.c.b16 %v1505_v28, %v1505_v28  ;;  %v1372_v6 = vunpack.c.l.b16 %v539_v42 }
 0x3e0   :  { %1123 = vadd.xlane.f32.xlu0 %v1122_v19  ;;  %v1371_v19 = vunpack.c.l.b16 %v538_v47 }
 0x3e1   :  { %v1091_v37 = vpop.xlane.xlu1 %1090  ;;  %v1516_v26 = vsel %vm1250_vm1, %v1507_v53, 0 }
 0x3e2   :  { %v965_v9 = vpop.xlane.xlu2 %964  ;;  %v1374_v62 = vpack.c.b16 %v1372_v6, %v1371_v19 }
 0x3e3   :  { %v1019_v13 = vsub.f32 %v5554_v10, %v965_v9 }
 0x3e5   :  { %v5674_v33 = vpop.eup %4859  ;;  %v1051_v23 = vmul.f32 1.442695, %v1019_v13  ;;  %v4685_v25 = vpop.permute.xlu0 %4684 }
 0x3e6   :  { %v4687_v39 = vunpack.i.h.bf16 %v4685_v25  ;;  %v4686_v41 = vunpack.i.l.bf16 %v4685_v25  ;;  %v1104_v55 = vsel %vm938_vm2, %v5674_v33, 0.0 }
 0x3e7   :  { %4861 = vpow2.f32 %v1051_v23  ;;  %1105 = vadd.xlane.f32.xlu1 %v1104_v55 }
 0x3e8   :  { %v540_v63 = vpack.c.bf16 %v4687_v39, %v4687_v39  ;;  %v536_v10 = vpack.c.bf16 %v4686_v41, %v4686_v41  ;;  %4863 = vrcp.f32 %v1085_v61 }
 0x3e9   :  { %v5688_v13 = vpop.xlane.xlu1 %982 }
 0x3ea   :  { %v1373_v40 = vunpack.c.l.b16 %v540_v63  ;;  %v1328_v30 = vunpack.c.l.b16 %v536_v10  ;;  %v5680_v45 = vpop.xlane.xlu2 %985 }
 0x3ec   :  { %v1375_v57 = vpack.c.b16 %v1373_v40, %v1373_v40  ;;  %v1330_v59 = vpack.c.b16 %v1328_v30, %v1327_v52 }
 0x3ed   :  { %v5682_v60 = vpop.eup %4861 }
 0x3ee   :  { %1349 = vmatpush.bf16.msra.mxu2 %v1330_v59  ;;  %v1384_v18 = vsel %vm1250_vm1, %v1375_v57, 0  ;;  %v1107_v9 = vsel %vm938_vm2, %v5682_v60, 0.0  ;;  %v4864_v24 = vpop.eup %4863 }
 0x3ef   :  { %1392 = vmatpush.bf16.msra.mxu3 %v1384_v18  ;;  %1108 = vadd.xlane.f32.xlu1 %v1107_v9  ;;  %v1179_v61 = vmul.f32 %v4864_v24, %v5547_v31 }
 0x3f1   :  { %v1094_v25 = vpop.xlane.xlu1 %1093  ;;  %v1203_v39 = vpack.c.bf16 %v1179_v61, %v1179_v61 }
 0x3f2   :  { %1524 = vmatpush.bf16.msrb.mxu2 %v1516_v26  ;;  %v1088_v21 = vpop.xlane.xlu2 %1087 }
 0x3f3   :  { %1393 = vmatpush.bf16.msra.mxu3 %v1374_v62  ;;  %4865 = vrcp.f32 %v1088_v21  ;;  %v1230_v42 = vunpack.c.l.b16 %v1203_v39 }
 0x3f4   :  { %4867 = vrcp.f32 %v1091_v37 }
 0x3f5   :  { %4869 = vrcp.f32 %v1094_v25 }
 0x3f9   :  { %v4866_v23 = vpop.eup %4865  ;;  %v974_v21 = vpop.xlane.xlu1 %973 }
 0x3fa   :  { %v971_v28 = vpop.xlane.xlu2 %970  ;;  %v1180_v41 = vmul.f32 %v4866_v23, %v5576_v4  ;;  %v4868_v53 = vpop.eup %4867 }
 0x3fb   :  { %v1021_v55 = vsub.f32 %v5591_v15, %v971_v28  ;;  %v4870_v30 = vpop.eup %4869  ;;  %v1181_v31 = vmul.f32 %v4868_v53, %v5557_v50 }
 0x3fc   :  { %v1204_v63 = vpack.c.bf16 %v1180_v41, %v1180_v41  ;;  %v1182_v4 = vmul.f32 %v4870_v30, %v5578_v7  ;;  %v1022_v7 = vsub.f32 %v5588_v34, %v974_v21 }
 0x3fd   :  { %v1055_v10 = vmul.f32 1.442695, %v1021_v55  ;;  %v1205_v59 = vpack.c.bf16 %v1181_v31, %v1181_v31 }
 0x3fe   :  { %v1231_v47 = vunpack.c.l.b16 %v1204_v63  ;;  %v1206_v6 = vpack.c.bf16 %v1182_v4, %v1182_v4  ;;  %v1057_v41 = vmul.f32 1.442695, %v1022_v7 }
 0x3ff   :  { %4871 = vpow2.f32 %v1055_v10  ;;  %v1232_v26 = vunpack.c.l.b16 %v1205_v59 }
 0x400   :  { %v1233_v52 = vpack.c.b16 %v1231_v47, %v1230_v42  ;;  %v1275_v9 = vunpack.c.l.b16 %v1206_v6 }
 0x401   :  { %v1234_v23 = vpack.c.b16 %v1232_v26, %v1232_v26 }
 0x402   :  { %v1097_v40 = vpop.xlane.xlu2 %1096  ;;  %4416 = vmatmul.msk.bf16.vlgmr.msra.gmra.mxu0 %vm938_vm2, %v1233_v52 }
 0x403   :  { %4873 = vrcp.f32 %v1097_v40 }
 0x405   :  { %v5695_v57 = vpop.eup %4871 }
 0x406   :  { %v1113_v15 = vsel %vm938_vm2, %v5695_v57, 0.0 }
 0x407   :  { %1114 = vadd.xlane.f32.xlu2 %v1113_v15 }
 0x409   :  { %v4874_v37 = vpop.eup %4873 }
 0x40a   :  { %v1183_v19 = vmul.f32 %v4874_v37, %v5600_v54 }
 0x40c   :  { %v1207_v18 = vpack.c.bf16 %v1183_v19, %v1183_v19 }
 0x40e   :  { %v1276_v62 = vunpack.c.l.b16 %v1207_v18 }
 0x410   :  { %v1278_v24 = vpack.c.b16 %v1276_v62, %v1275_v9  ;;  %v968_v50 = vpop.xlane.xlu0 %967 }
 0x411   :  { %v1020_v61 = vsub.f32 %v5607_v35, %v968_v50  ;;  %v1026_v35 = vsub.f32 %v5568_v2, %v5680_v45 }
 0x412   :  { %4418 = vmatmul.msk.bf16.vlgmr.msra.gmra.mxu1 %vm938_vm2, %v1278_v24  ;;  %4417 = vmatmul.msk.bf16.gmra.mxu0 %vm938_vm2, %v1234_v23 }
 0x413   :  { %v1053_v25 = vmul.f32 1.442695, %v1020_v61  ;;  %v995_v28 = vpop.xlane.xlu2 %994  ;;  %v1065_v47 = vmul.f32 1.442695, %v1026_v35  ;;  %v1025_v61 = vsub.f32 %v5565_v0, %v5688_v13 }
 0x414   :  { %v1029_v54 = vsub.f32 %v5612_v46, %v995_v28 }
 0x415   :  { %4875 = vpow2.f32 %v1053_v25 }
 0x416   :  { %v1071_v39 = vmul.f32 1.442695, %v1029_v54  ;;  %v1063_v54 = vmul.f32 1.442695, %v1025_v61 }
 0x418   :  { %4877 = vpow2.f32 %v1071_v39  ;;  %v989_v7 = vpop.xlane.xlu0 %988 }
 0x419   :  { %4879 = vpow2.f32 %v1057_v41  ;;  %v1027_v41 = vsub.f32 %v5617_v5, %v989_v7 }
 0x41b   :  { %v5706_v55 = vpop.eup %4875  ;;  %v998_v63 = vpop.xlane.xlu1 %997  ;;  %v1067_v35 = vmul.f32 1.442695, %v1027_v41 }
 0x41c   :  { %v1030_v10 = vsub.f32 %v5625_v56, %v998_v63  ;;  %v1110_v34 = vsel %vm938_vm2, %v5706_v55, 0.0  ;;  %v5727_v30 = vpop.xlane.xlu2 %991 }
 0x41d   :  { %1111 = vadd.xlane.f32.xlu1 %v1110_v34 }
 0x41e   :  { %v5713_v42 = vpop.eup %4877  ;;  %v1073_v46 = vmul.f32 1.442695, %v1030_v10 }
 0x41f   :  { %v1137_v52 = vsel %vm938_vm2, %v5713_v42, 0.0  ;;  %v5717_v53 = vpop.eup %4879 }
 0x420   :  { %1138 = vadd.xlane.f32.xlu2 %v1137_v52  ;;  %4881 = vpow2.f32 %v1073_v46  ;;  %v1116_v2 = vsel %vm938_vm2, %v5717_v53, 0.0 }
 0x421   :  { %4883 = vpow2.f32 %v1065_v47 }
 0x424   :  { %v1001_v4 = vpop.xlane.xlu2 %1000 }
 0x425   :  { %1117 = vadd.xlane.f32.xlu1 %v1116_v2  ;;  %v1031_v50 = vsub.f32 %v5632_v1, %v1001_v4 }
 0x426   :  { %v5721_v56 = vpop.eup %4881 }
 0x427   :  { %v1140_v45 = vsel %vm938_vm2, %v5721_v56, 0.0  ;;  %v5725_v40 = vpop.eup %4883  ;;  %v1075_v23 = vmul.f32 1.442695, %v1031_v50 }
 0x428   :  { %1141 = vadd.xlane.f32.xlu0 %v1140_v45  ;;  %v1128_v31 = vsel %vm938_vm2, %v5725_v40, 0.0 }
 0x42d   :  { %1129 = vadd.xlane.f32.xlu1 %v1128_v31 }
 0x433   :  { %v1004_v15 = vpop.xlane.xlu1 %1003 }
 0x434   :  { %v1032_v37 = vsub.f32 %v5637_v8, %v1004_v15 }
 0x436   :  { %v1077_v59 = vmul.f32 1.442695, %v1032_v37 }
 0x438   :  { %4885 = vpow2.f32 %v1077_v59  ;;  %4709 = vrot.lane.b32.xlu2 %v5348_v38, %s5094_s3 }
 0x43b   :  { %v1007_v6 = vpop.xlane.xlu2 %1006 }
 0x43c   :  { %v1033_v19 = vsub.f32 %v5644_v44, %v1007_v6  ;;  %4704 = vrot.lane.b32.xlu0 %v5348_v38, %s5095_s22  ;;  %v1016_v44 = vsub.f32 %v5493_v12, %v5641_v11 }
 0x43e   :  { %v5737_v18 = vpop.eup %4885  ;;  %v1079_v26 = vmul.f32 1.442695, %v1033_v19  ;;  %v1045_v38 = vmul.f32 1.442695, %v1016_v44 }
 0x43f   :  { %v1146_v9 = vsel %vm938_vm2, %v5737_v18, 0.0 }
 0x440   :  { %4887 = vpow2.f32 %v1079_v26  ;;  %1147 = vadd.xlane.f32.xlu1 %v1146_v9 }
 0x443   :  { %v1010_v21 = vpop.xlane.xlu2 %1009 }
 0x446   :  { %v5741_v8 = vpop.eup %4887 }
 0x447   :  { %v1149_v62 = vsel %vm938_vm2, %v5741_v8, 0.0 }
 0x448   :  { %1150 = vadd.xlane.f32.xlu1 %v1149_v62 }
 0x452   :  { %v1103_v24 = vpop.xlane.xlu2 %1102 }
 0x453   :  { %4889 = vrcp.f32 %v1103_v24 }
 0x454   :  { %4891 = vpow2.f32 %v1045_v38 }
 0x459   :  { %v4890_v28 = vpop.eup %4889 }
 0x45a   :  { %v1106_v25 = vpop.xlane.xlu1 %1105  ;;  %v5750_v39 = vpop.eup %4891  ;;  %v1185_v12 = vmul.f32 %v4890_v28, %v5663_v49  ;;  %v1034_v49 = vsub.f32 %v5652_v36, %v1010_v21  ;;  %v1028_v36 = vsub.f32 %v5620_v48, %v5727_v30 }
 0x45b   :  { %4893 = vrcp.f32 %v1106_v25  ;;  %v1098_v1 = vsel %vm938_vm2, %v5750_v39, 0.0  ;;  %v1121_v21 = vpop.xlane.xlu0 %1120 }
 0x45c   :  { %4895 = vpow2.f32 %v1075_v23  ;;  %v1209_v0 = vpack.c.bf16 %v1185_v12, %v1185_v12  ;;  %v1081_v45 = vmul.f32 1.442695, %v1034_v49  ;;  %v1069_v6 = vmul.f32 1.442695, %v1028_v36 }
 0x45d   :  { %4897 = vpow2.f32 %v1063_v54 }
 0x45e   :  { %v1319_v46 = vunpack.c.l.b16 %v1209_v0 }
 0x461   :  { %v4894_v11 = vpop.eup %4893  ;;  %1099 = vadd.xlane.f32.xlu2 %v1098_v1  ;;  %4719 = vrot.lane.b32.xlu1 %v5340_v27, %s5094_s3 }
 0x462   :  { %v1186_v13 = vmul.f32 %v4894_v11, %v5674_v33  ;;  %v5759_v63 = vpop.eup %4895  ;;  %v1109_v10 = vpop.xlane.xlu1 %1108 }
 0x463   :  { %4899 = vrcp.f32 %v1109_v10  ;;  %v5761_v34 = vpop.eup %4897  ;;  %v1143_v52 = vsel %vm938_vm2, %v5759_v63, 0.0  ;;  %v1124_v38 = vpop.xlane.xlu0 %1123 }
 0x464   :  { %v1210_v5 = vpack.c.bf16 %v1186_v13, %v1186_v13  ;;  %4901 = vpow2.f32 %v1067_v35  ;;  %v1125_v33 = vsel %vm938_vm2, %v5761_v34, 0.0 }
 0x465   :  { %4903 = vpow2.f32 %v1081_v45 }
 0x466   :  { %v1320_v47 = vunpack.c.l.b16 %v1210_v5  ;;  %1144 = vadd.xlane.f32.xlu0 %v1143_v52  ;;  %4905 = vpow2.f32 %v1069_v6 }
 0x468   :  { %v1322_v2 = vpack.c.b16 %v1320_v47, %v1319_v46 }
 0x469   :  { %1126 = vadd.xlane.f32.xlu2 %v1125_v33  ;;  %v4900_v31 = vpop.eup %4899 }
 0x46a   :  { %4420 = vmatmul.msk.bf16.vlgmr.msra.gmra.mxu2 %vm938_vm2, %v1322_v2  ;;  %v5769_v4 = vpop.eup %4901  ;;  %v1187_v15 = vmul.f32 %v4900_v31, %v5682_v60 }
 0x46b   :  { %v1131_v37 = vsel %vm938_vm2, %v5769_v4, 0.0  ;;  %v5776_v19 = vpop.eup %4903 }
 0x46c   :  { %v1211_v59 = vpack.c.bf16 %v1187_v15, %v1187_v15  ;;  %v1152_v9 = vsel %vm938_vm2, %v5776_v19, 0.0  ;;  %v5781_v60 = vpop.eup %4905 }
 0x46d   :  { %v1134_v48 = vsel %vm938_vm2, %v5781_v60, 0.0 }
 0x46e   :  { %1132 = vadd.xlane.f32.xlu0 %v1131_v37  ;;  %v1321_v26 = vunpack.c.l.b16 %v1211_v59 }
 0x470   :  { %v1323_v62 = vpack.c.b16 %v1321_v26, %v1321_v26 }
 0x476   :  { %1153 = vadd.xlane.f32.xlu0 %v1152_v9 }
 0x47a   :  { %4421 = vmatmul.msk.bf16.gmra.mxu2 %vm938_vm2, %v1323_v62  ;;  %v1115_v44 = vpop.xlane.xlu2 %1114 }
 0x47b   :  { %4907 = vrcp.f32 %v1115_v44 }
 0x47c   :  { %4909 = vrcp.f32 %v1124_v38 }
 0x47e   :  { %1135 = vadd.xlane.f32.xlu0 %v1134_v48 }
 0x47f   :  { %v5785_v30 = vpop.f32.mrf.mxu0 }
 0x481   :  { %4714 = vrot.lane.b32.xlu2 %v5340_v27, %s5095_s22  ;;  %v4908_v23 = vpop.eup %4907  ;;  %v4702_v27 = vunpack.i.h.bf16 %v5597_v17 }
 0x482   :  { %v1189_v25 = vmul.f32 %v4908_v23, %v5695_v57  ;;  %v4910_v28 = vpop.eup %4909  ;;  %v4697_v23 = vunpack.i.h.bf16 %v5648_v29 }
 0x483   :  { %v1192_v0 = vmul.f32 %v4910_v28, %v5665_v3  ;;  %v541_v10 = vpack.c.bf16 %v4702_v27, %v4702_v27 }
 0x484   :  { %v1213_v12 = vpack.c.bf16 %v1189_v25, %v1189_v25  ;;  %v547_v27 = vpack.c.bf16 %v4697_v23, %v4697_v23 }
 0x485   :  { %v1216_v2 = vpack.c.bf16 %v1192_v0, %v1192_v0  ;;  %v1415_v15 = vunpack.c.l.b16 %v541_v10 }
 0x486   :  { %v1364_v46 = vunpack.c.l.b16 %v1213_v12  ;;  %v1503_v0 = vunpack.c.l.b16 %v547_v27 }
 0x487   :  { %v5789_v24 = vpop.f32.mrf.mxu0  ;;  %v1408_v3 = vunpack.c.l.b16 %v1216_v2 }
 0x48f   :  { %v5791_v50 = vpop.f32.mrf.mxu0 }
 0x490   :  { %v1112_v61 = vpop.xlane.xlu1 %1111 }
 0x491   :  { %4911 = vrcp.f32 %v1112_v61 }
 0x492   :  { %4913 = vrcp.f32 %v1121_v21 }
 0x493   :  { %v1139_v7 = vpop.xlane.xlu2 %1138 }
 0x497   :  { %v4912_v54 = vpop.eup %4911  ;;  %v1270_v11 = vpop.f32.mrf.mxu0 }
 0x498   :  { %v4914_v41 = vpop.eup %4913  ;;  %v1188_v1 = vmul.f32 %v4912_v54, %v5706_v55  ;;  %v1118_v35 = vpop.xlane.xlu1 %1117 }
 0x499   :  { %4915 = vrcp.f32 %v1118_v35  ;;  %v1191_v5 = vmul.f32 %v4914_v41, %v5658_v51 }
 0x49a   :  { %v1212_v13 = vpack.c.bf16 %v1188_v1, %v1188_v1 }
 0x49b   :  { %v4710_v49 = vpop.permute.xlu2 %4709  ;;  %v1215_v55 = vpack.c.bf16 %v1191_v5, %v1191_v5  ;;  %v1142_v59 = vpop.xlane.xlu0 %1141 }
 0x49c   :  { %v1363_v57 = vunpack.c.l.b16 %v1212_v13  ;;  %v4712_v47 = vunpack.i.h.bf16 %v4710_v49  ;;  %v4711_v52 = vunpack.i.l.bf16 %v4710_v49  ;;  %4917 = vrcp.f32 %v1142_v59 }
 0x49d   :  { %v1407_v9 = vunpack.c.l.b16 %v1215_v55  ;;  %4919 = vrcp.f32 %v1139_v7 }
 0x49e   :  { %v1366_v17 = vpack.c.b16 %v1364_v46, %v1363_v57  ;;  %v546_v33 = vpack.c.bf16 %v4712_v47, %v4712_v47  ;;  %v542_v45 = vpack.c.bf16 %v4711_v52, %v4711_v52 }
 0x49f   :  { %v4916_v31 = vpop.eup %4915  ;;  %v1410_v48 = vpack.c.b16 %v1408_v3, %v1407_v9 }
 0x4a0   :  { %v1461_v36 = vunpack.c.l.b16 %v546_v33  ;;  %v1416_v37 = vunpack.c.l.b16 %v542_v45  ;;  %4422 = vmatmul.msk.bf16.vlgmr.msra.gmra.mxu3 %vm938_vm2, %v1366_v17  ;;  %v1190_v26 = vmul.f32 %v4916_v31, %v5717_v53  ;;  %v1130_v57 = vpop.xlane.xlu1 %1129 }
 0x4a2   :  { %v1463_v6 = vpack.c.b16 %v1461_v36, %v1461_v36  ;;  %v1418_v51 = vpack.c.b16 %v1416_v37, %v1415_v15  ;;  %v1214_v21 = vpack.c.bf16 %v1190_v26, %v1190_v26  ;;  %v4918_v44 = vpop.eup %4917  ;;  %v278_v37 = vld [vmem:[%s7012_s9] sm:$0xf] }
 0x4a3   :  { %v4920_v61 = vpop.eup %4919  ;;  %v1198_v25 = vmul.f32 %v4918_v44, %v5721_v56  ;;  %v1629_v3 = vsel %vm1250_vm1, %v278_v37, 0 }
 0x4a4   :  { %1437 = vmatpush.bf16.msrb.mxu0 %v1418_v51  ;;  %v1472_v62 = vsel %vm1250_vm1, %v1463_v6, 0  ;;  %v1365_v38 = vunpack.c.l.b16 %v1214_v21  ;;  %v1197_v53 = vmul.f32 %v4920_v61, %v5713_v42 }
 0x4a5   :  { %1480 = vmatpush.bf16.msrb.mxu1 %v1472_v62  ;;  %v1222_v7 = vpack.c.bf16 %v1198_v25, %v1198_v25 }
 0x4a6   :  { %v1367_v28 = vpack.c.b16 %v1365_v38, %v1365_v38  ;;  %v1221_v35 = vpack.c.bf16 %v1197_v53, %v1197_v53 }
 0x4a7   :  { %4424 = vmatmul.msk.bf16.vlgmr.msrb.gmra.mxu0 %vm938_vm2, %v1410_v48  ;;  %v1496_v5 = vunpack.c.l.b16 %v1222_v7 }
 0x4a8   :  { %v1495_v56 = vunpack.c.l.b16 %v1221_v35  ;;  %1638 = vmatpush.bf16.msra.mxu0 %v1629_v3 }
 0x4aa   :  { %v1498_v46 = vpack.c.b16 %v1496_v5, %v1495_v56 }
 0x4ae   :  { %v4705_v54 = vpop.permute.xlu0 %4704 }
 0x4af   :  { %v4707_v41 = vunpack.i.h.bf16 %v4705_v54  ;;  %v4706_v12 = vunpack.i.l.bf16 %v4705_v54 }
 0x4b0   :  { %4423 = vmatmul.msk.bf16.gmra.mxu3 %vm938_vm2, %v1367_v28 }
 0x4b1   :  { %v552_v1 = vpack.c.bf16 %v4707_v41, %v4707_v41  ;;  %v548_v11 = vpack.c.bf16 %v4706_v12, %v4706_v12 }
 0x4b3   :  { %v1549_v13 = vunpack.c.l.b16 %v552_v1  ;;  %v1504_v10 = vunpack.c.l.b16 %v548_v11  ;;  %v1148_v47 = vpop.xlane.xlu1 %1147 }
 0x4b5   :  { %v1551_v29 = vpack.c.b16 %v1549_v13, %v1549_v13  ;;  %v1506_v49 = vpack.c.b16 %v1504_v10, %v1503_v0 }
 0x4b7   :  { %1525 = vmatpush.bf16.msrb.mxu2 %v1506_v49  ;;  %v1560_v42 = vsel %vm1250_vm1, %v1551_v29, 0 }
 0x4b8   :  { %1568 = vmatpush.bf16.msrb.mxu3 %v1560_v42 }
 0x4ba   :  { %4428 = vmatmul.msk.bf16.vlgmr.msrb.gmra.mxu2 %vm938_vm2, %v1498_v46 }
 0x4bb   :  { %v1151_v52 = vpop.xlane.xlu1 %1150 }
 0x4d3   :  { %v4720_v2 = vpop.permute.xlu1 %4719 }
 0x4d4   :  { %v4722_v17 = vunpack.i.h.bf16 %v4720_v2  ;;  %v4721_v33 = vunpack.i.l.bf16 %v4720_v2  ;;  %v1100_v45 = vpop.xlane.xlu2 %1099 }
 0x4d5   :  { %4921 = vrcp.f32 %v1100_v45 }
 0x4d6   :  { %v545_v31 = vpack.c.bf16 %v4722_v17, %v4722_v17  ;;  %v544_v55 = vpack.c.bf16 %v4721_v33, %v4721_v33  ;;  %4923 = vrcp.f32 %v1151_v52 }
 0x4d7   :  { %4925 = vrcp.f32 %v1148_v47 }
 0x4d8   :  { %v1460_v15 = vunpack.c.l.b16 %v545_v31  ;;  %v1459_v36 = vunpack.c.l.b16 %v544_v55 }
 0x4d9   :  { %v1145_v59 = vpop.xlane.xlu0 %1144 }
 0x4da   :  { %v1462_v6 = vpack.c.b16 %v1460_v15, %v1459_v36  ;;  %4927 = vrcp.f32 %v1145_v59  ;;  %v1581_v36 = vpack.c.bf16 %v5789_v24, %v5789_v24 }
 0x4db   :  { %v4922_v51 = vpop.eup %4921 }
 0x4dc   :  { %v1127_v26 = vpop.xlane.xlu2 %1126  ;;  %1481 = vmatpush.bf16.msrb.mxu1 %v1462_v6  ;;  %v1184_v9 = vmul.f32 %v4922_v51, %v5750_v39  ;;  %v4924_v48 = vpop.eup %4923  ;;  %v1580_v6 = vpack.c.bf16 %v5785_v30, %v5785_v30  ;;  %v1582_v30 = vpack.c.bf16 %v5791_v50, %v5791_v50 }
 0x4dd   :  { %4929 = vrcp.f32 %v1127_v26  ;;  %v4926_v21 = vpop.eup %4925  ;;  %v1201_v61 = vmul.f32 %v4924_v48, %v5741_v8  ;;  %v1611_v26 = vunpack.c.l.b16 %v1581_v36 }
 0x4de   :  { %v1208_v62 = vpack.c.bf16 %v1184_v9, %v1184_v9  ;;  %4931 = vrcp.f32 %v1130_v57  ;;  %v1200_v54 = vmul.f32 %v4926_v21, %v5737_v18 }
 0x4df   :  { %v1225_v11 = vpack.c.bf16 %v1201_v61, %v1201_v61 }
 0x4e0   :  { %v1277_v44 = vunpack.c.l.b16 %v1208_v62  ;;  %v4928_v38 = vpop.eup %4927  ;;  %v1224_v10 = vpack.c.bf16 %v1200_v54, %v1200_v54  ;;  %v1610_v62 = vunpack.c.l.b16 %v1580_v6 }
 0x4e1   :  { %v1133_v23 = vpop.xlane.xlu0 %1132  ;;  %v1199_v28 = vmul.f32 %v4928_v38, %v5759_v63  ;;  %v1540_v42 = vunpack.c.l.b16 %v1225_v11 }
 0x4e2   :  { %v1279_v25 = vpack.c.b16 %v1277_v44, %v1277_v44  ;;  %4933 = vrcp.f32 %v1133_v23  ;;  %v1539_v2 = vunpack.c.l.b16 %v1224_v10  ;;  %v1616_v21 = vpack.c.b16 %v1611_v26, %v1610_v62 }
 0x4e3   :  { %v4930_v53 = vpop.eup %4929  ;;  %v1223_v39 = vpack.c.bf16 %v1199_v28, %v1199_v28 }
 0x4e4   :  { %v4715_v27 = vpop.permute.xlu2 %4714  ;;  %4419 = vmatmul.msk.bf16.gmra.mxu1 %vm938_vm2, %v1279_v25  ;;  %v1193_v41 = vmul.f32 %v4930_v53, %v5761_v34  ;;  %v4932_v12 = vpop.eup %4931 }
 0x4e5   :  { %v4717_v7 = vunpack.i.h.bf16 %v4715_v27  ;;  %v4716_v1 = vunpack.i.l.bf16 %v4715_v27  ;;  %v1497_v35 = vunpack.c.l.b16 %v1223_v39  ;;  %v1194_v63 = vmul.f32 %v4932_v12, %v5725_v40  ;;  %v279_v40 = vld [vmem:[%s7012_s9 + $0x4] sm:$0xf]  ;;  %v1307_v25 = vpop.f32.mrf.mxu1 }
 0x4e6   :  { %v1217_v8 = vpack.c.bf16 %v1193_v41, %v1193_v41  ;;  %v1680_v45 = vsel %vm1250_vm1, %v279_v40, 0  ;;  %v1583_v28 = vpack.c.bf16 %v1307_v25, %v1307_v25  ;;  %v1612_v27 = vunpack.c.l.b16 %v1582_v30 }
 0x4e7   :  { %v551_v0 = vpack.c.bf16 %v4717_v7, %v4717_v7  ;;  %v550_v13 = vpack.c.bf16 %v4716_v1, %v4716_v1  ;;  %v1499_v5 = vpack.c.b16 %v1497_v35, %v1497_v35  ;;  %v1218_v52 = vpack.c.bf16 %v1194_v63, %v1194_v63  ;;  %1689 = vmatpush.bf16.msra.mxu1 %v1680_v45  ;;  %v280_v1 = vld [vmem:[%s7012_s9 + $0x8] sm:$0xf] }
 0x4e8   :  { %v1409_v29 = vunpack.c.l.b16 %v1217_v8  ;;  %v4934_v18 = vpop.eup %4933  ;;  %v1613_v39 = vunpack.c.l.b16 %v1583_v28  ;;  %v1731_v50 = vsel %vm1250_vm1, %v280_v1, 0 }
 0x4e9   :  { %v1548_v49 = vunpack.c.l.b16 %v551_v0  ;;  %v1547_v56 = vunpack.c.l.b16 %v550_v13  ;;  %v1195_v46 = vmul.f32 %v4934_v18, %v5769_v4  ;;  %v1154_v34 = vpop.xlane.xlu0 %1153  ;;  %4429 = vmatmul.msk.bf16.gmra.mxu2 %vm938_vm2, %v1499_v5  ;;  %v1542_v4 = vpack.c.b16 %v1540_v42, %v1539_v2  ;;  %v281_v18 = vld [vmem:[%s7012_s9 + $0xc] sm:$0xf] }
 0x4ea   :  { %v1411_v57 = vpack.c.b16 %v1409_v29, %v1409_v29  ;;  %4935 = vrcp.f32 %v1154_v34  ;;  %v1451_v55 = vunpack.c.l.b16 %v1218_v52  ;;  %1740 = vmatpush.bf16.msra.mxu2 %v1731_v50 }
 0x4eb   :  { %v1550_v47 = vpack.c.b16 %v1548_v49, %v1547_v56  ;;  %v1219_v17 = vpack.c.bf16 %v1195_v46, %v1195_v46  ;;  %v1782_v49 = vsel %vm1250_vm1, %v281_v18, 0 }
 0x4ec   :  { %4425 = vmatmul.msk.bf16.gmra.mxu0 %vm938_vm2, %v1411_v57 }
 0x4ed   :  { %v1351_v33 = vpop.f32.mrf.mxu2  ;;  %1569 = vmatpush.bf16.msrb.mxu3 %v1550_v47  ;;  %v1452_v31 = vunpack.c.l.b16 %v1219_v17 }
 0x4ee   :  { %v1586_v12 = vpack.c.bf16 %v1351_v33, %v1351_v33 }
 0x4ef   :  { %v1454_v37 = vpack.c.b16 %v1452_v31, %v1451_v55 }
 0x4f0   :  { %4430 = vmatmul.msk.bf16.vlgmr.msrb.gmra.mxu3 %vm938_vm2, %v1542_v4  ;;  %v4936_v15 = vpop.eup %4935  ;;  %v1661_v11 = vunpack.c.l.b16 %v1586_v12 }
 0x4f1   :  { %v1136_v3 = vpop.xlane.xlu0 %1135  ;;  %v1202_v59 = vmul.f32 %v4936_v15, %v5776_v19  ;;  %1791 = vmatpush.bf16.msra.mxu3 %v1782_v49 }
 0x4f2   :  { %4937 = vrcp.f32 %v1136_v3 }
 0x4f3   :  { %v1226_v9 = vpack.c.bf16 %v1202_v59, %v1202_v59 }
 0x4f4   :  { %4426 = vmatmul.msk.bf16.vlgmr.msrb.gmra.mxu1 %vm938_vm2, %v1454_v37 }
 0x4f5   :  { %v1353_v51 = vpop.f32.mrf.mxu2  ;;  %v1541_v44 = vunpack.c.l.b16 %v1226_v9 }
 0x4f6   :  { %v1587_v41 = vpack.c.bf16 %v1353_v51, %v1353_v51  ;;  %v1309_v51 = vpop.f32.mrf.mxu1 }
 0x4f7   :  { %v1543_v19 = vpack.c.b16 %v1541_v44, %v1541_v44  ;;  %v1584_v26 = vpack.c.bf16 %v1309_v51, %v1309_v51 }
 0x4f8   :  { %v4938_v48 = vpop.eup %4937  ;;  %v1662_v7 = vunpack.c.l.b16 %v1587_v41 }
 0x4f9   :  { %v1196_v38 = vmul.f32 %v4938_v48, %v5781_v60  ;;  %v1617_v60 = vpack.c.b16 %v1613_v39, %v1612_v27  ;;  %v1614_v48 = vunpack.c.l.b16 %v1584_v26 }
 0x4fa   :  { %v1667_v35 = vpack.c.b16 %v1662_v7, %v1661_v11 }
 0x4fb   :  { %v1220_v24 = vpack.c.bf16 %v1196_v38, %v1196_v38 }
 0x4fc   :  { %4432 = vmatmul.msk.bf16.vlgmr.msra.gmra.mxu0 %vm565_vm14, %v1616_v21 }
 0x4fd   :  { %v1356_v61 = vpop.f32.mrf.mxu2  ;;  %v1453_v23 = vunpack.c.l.b16 %v1220_v24 }
 0x4fe   :  { %v1588_v8 = vpack.c.bf16 %v1356_v61, %v1356_v61 }
 0x4ff   :  { %v1455_v53 = vpack.c.b16 %v1453_v23, %v1453_v23 }
 0x500   :  { %4431 = vmatmul.msk.bf16.gmra.mxu3 %vm938_vm2, %v1543_v19  ;;  %v1663_v10 = vunpack.c.l.b16 %v1588_v8 }
 0x504   :  { %4427 = vmatmul.msk.bf16.gmra.mxu1 %vm938_vm2, %v1455_v53 }
 0x505   :  { %v1358_v54 = vpop.f32.mrf.mxu2 }
 0x50c   :  { %4433 = vmatmul.msk.bf16.gmra.mxu0 %vm565_vm14, %v1617_v60 }
 0x514   :  { %4435 = vmatmul.msk.bf16.vlgmr.msra.gmra.mxu1 %vm565_vm14, %v1667_v35 }
 0x523   :  { %v1395_v0 = vpop.f32.mrf.mxu3 }
 0x524   :  { %v1589_v13 = vpack.c.bf16 %v1395_v0, %v1395_v0  ;;  %v1439_v63 = vpop.f32.mrf.mxu0 }
 0x525   :  { %v1592_v56 = vpack.c.bf16 %v1439_v63, %v1439_v63 }
 0x526   :  { %v1664_v5 = vunpack.c.l.b16 %v1589_v13 }
 0x527   :  { %v1712_v57 = vunpack.c.l.b16 %v1592_v56 }
 0x528   :  { %v1668_v29 = vpack.c.b16 %v1664_v5, %v1663_v10 }
 0x52a   :  { %4436 = vmatmul.msk.bf16.gmra.mxu1 %vm565_vm14, %v1668_v29 }
 0x52b   :  { %v1397_v42 = vpop.f32.mrf.mxu3 }
 0x52c   :  { %v1441_v46 = vpop.f32.mrf.mxu0  ;;  %v1590_v2 = vpack.c.bf16 %v1397_v42, %v1397_v42 }
 0x52d   :  { %v1593_v34 = vpack.c.bf16 %v1441_v46, %v1441_v46 }
 0x52e   :  { %v1665_v33 = vunpack.c.l.b16 %v1590_v2 }
 0x52f   :  { %v1713_v47 = vunpack.c.l.b16 %v1593_v34 }
 0x531   :  { %v1718_v52 = vpack.c.b16 %v1713_v47, %v1712_v57 }
 0x533   :  { %v1400_v17 = vpop.f32.mrf.mxu3  ;;  %4438 = vmatmul.msk.bf16.vlgmr.msra.gmra.mxu2 %vm565_vm14, %v1718_v52 }
 0x534   :  { %v1591_v40 = vpack.c.bf16 %v1400_v17, %v1400_v17 }
 0x536   :  { %v1666_v45 = vunpack.c.l.b16 %v1591_v40 }
 0x538   :  { %v1669_v4 = vpack.c.b16 %v1666_v45, %v1665_v33 }
 0x53a   :  { %4437 = vmatmul.msk.bf16.gmra.mxu1 %vm565_vm14, %v1669_v4 }
 0x53b   :  { %v1402_v31 = vpop.f32.mrf.mxu3 }
 0x53d   :  { %v1527_v55 = vpop.f32.mrf.mxu2 }
 0x53e   :  { %v1598_v15 = vpack.c.bf16 %v1527_v55, %v1527_v55  ;;  %v5864_v55 = vld [vmem:[%s7013_s10] ss:$0 sm:$0xff] }
 0x540   :  { %v1763_v3 = vunpack.c.l.b16 %v1598_v15 }
 0x545   :  { %v1529_v36 = vpop.f32.mrf.mxu2 }
 0x546   :  { %v1599_v37 = vpack.c.bf16 %v1529_v36, %v1529_v36 }
 0x548   :  { %v1764_v59 = vunpack.c.l.b16 %v1599_v37 }
 0x54a   :  { %v1769_v6 = vpack.c.b16 %v1764_v59, %v1763_v3 }
 0x54c   :  { %4441 = vmatmul.msk.bf16.vlgmr.msra.gmra.mxu3 %vm565_vm14, %v1769_v6 }
 0x561   :  { %v1312_v9 = vpop.f32.mrf.mxu1 }
 0x562   :  { %v1585_v62 = vpack.c.bf16 %v1312_v9, %v1312_v9 }
 0x564   :  { %v1615_v21 = vunpack.c.l.b16 %v1585_v62 }
 0x566   :  { %v1618_v44 = vpack.c.b16 %v1615_v21, %v1614_v48 }
 0x568   :  { %4434 = vmatmul.msk.bf16.gmra.mxu0 %vm565_vm14, %v1618_v44 }
 0x569   :  { %v1314_v38 = vpop.f32.mrf.mxu1  ;;  %v1444_v24 = vpop.f32.mrf.mxu0 }
 0x56a   :  { %v1594_v19 = vpack.c.bf16 %v1444_v24, %v1444_v24 }
 0x56c   :  { %v1532_v61 = vpop.f32.mrf.mxu2  ;;  %v1714_v54 = vunpack.c.l.b16 %v1594_v19 }
 0x56d   :  { %v1600_v30 = vpack.c.bf16 %v1532_v61, %v1532_v61 }
 0x56f   :  { %v1765_v41 = vunpack.c.l.b16 %v1600_v30 }
 0x571   :  { %v1446_v23 = vpop.f32.mrf.mxu0  ;;  %v1483_v25 = vpop.f32.mrf.mxu1 }
 0x572   :  { %v1595_v28 = vpack.c.bf16 %v1483_v25, %v1483_v25 }
 0x573   :  { %v1571_v53 = vpop.f32.mrf.mxu3 }
 0x574   :  { %v1715_v27 = vunpack.c.l.b16 %v1595_v28  ;;  %v1601_v39 = vpack.c.bf16 %v1571_v53, %v1571_v53  ;;  %v1534_v60 = vpop.f32.mrf.mxu2 }
 0x576   :  { %v1719_v12 = vpack.c.b16 %v1715_v27, %v1714_v54  ;;  %v1766_v7 = vunpack.c.l.b16 %v1601_v39 }
 0x578   :  { %v1770_v1 = vpack.c.b16 %v1766_v7, %v1765_v41  ;;  %4439 = vmatmul.msk.bf16.gmra.mxu2 %vm565_vm14, %v1719_v12 }
 0x579   :  { %v1485_v11 = vpop.f32.mrf.mxu1  ;;  %v1640_v47 = vpop.f32.mrf.mxu0 }
 0x57a   :  { %4442 = vmatmul.msk.bf16.gmra.mxu3 %vm565_vm14, %v1770_v1  ;;  %v1596_v35 = vpack.c.bf16 %v1485_v11, %v1485_v11  ;;  %v1808_v17 = vsel %vm84_vm0, %v1640_v47, 0.0 }
 0x57b   :  { %v1573_v50 = vpop.f32.mrf.mxu3 }
 0x57c   :  { %v1602_v0 = vpack.c.bf16 %v1573_v50, %v1573_v50  ;;  %v1716_v10 = vunpack.c.l.b16 %v1596_v35 }
 0x57e   :  { %v1767_v18 = vunpack.c.l.b16 %v1602_v0 }
 0x581   :  { %v1488_v8 = vpop.f32.mrf.mxu1  ;;  %v1642_v36 = vpop.f32.mrf.mxu0 }
 0x582   :  { %v1597_v13 = vpack.c.bf16 %v1488_v8, %v1488_v8  ;;  %v1815_v51 = vsel %vm84_vm0, %v1642_v36, 0.0 }
 0x583   :  { %v1576_v63 = vpop.f32.mrf.mxu3 }
 0x584   :  { %v1717_v5 = vunpack.c.l.b16 %v1597_v13  ;;  %v1603_v29 = vpack.c.bf16 %v1576_v63, %v1576_v63  ;;  %v5083_v13 = vld [vmem:[%s7029_s20 + $0x10] sm:$0xff] }
 0x586   :  { %v1720_v49 = vpack.c.b16 %v1717_v5, %v1716_v10  ;;  %v1768_v56 = vunpack.c.l.b16 %v1603_v29 }
 0x588   :  { %v1771_v42 = vpack.c.b16 %v1768_v56, %v1767_v18  ;;  %4440 = vmatmul.msk.bf16.gmra.mxu2 %vm565_vm14, %v1720_v49 }
 0x589   :  { %v1490_v46 = vpop.f32.mrf.mxu1 }
 0x58a   :  { %4443 = vmatmul.msk.bf16.gmra.mxu3 %vm565_vm14, %v1771_v42 }
 0x58b   :  { %v1578_v34 = vpop.f32.mrf.mxu3 }
 0x591   :  { %v1691_v57 = vpop.f32.mrf.mxu1 }
 0x592   :  { %v1809_v2 = vsel %vm84_vm0, %v1691_v57, 0.0 }
 0x593   :  { %v1810_v33 = vadd.f32 %v1809_v2, %v1808_v17 }
 0x599   :  { %v1693_v45 = vpop.f32.mrf.mxu1 }
 0x59a   :  { %v1816_v59 = vsel %vm84_vm0, %v1693_v45, 0.0 }
 0x59b   :  { %v1817_v9 = vadd.f32 %v1816_v59, %v1815_v51 }
 0x5a7   :  { %v1696_v25 = vpop.f32.mrf.mxu1 }
 0x5a8   :  { %v1823_v30 = vsel %vm84_vm0, %v1696_v25, 0.0 }
 0x5af   :  { %v1698_v27 = vpop.f32.mrf.mxu1 }
 0x5b0   :  { %v1830_v1 = vsel %vm84_vm0, %v1698_v27, 0.0 }
 0x5b6   :  { %v1742_v52 = vpop.f32.mrf.mxu2 }
 0x5b7   :  { %v1811_v40 = vsel %vm84_vm0, %v1742_v52, 0.0  ;;  %v1701_v5 = vpop.f32.mrf.mxu1 }
 0x5b8   :  { %v1812_v4 = vadd.f32 %v1811_v40, %v1810_v33  ;;  %v1837_v57 = vsel %vm84_vm0, %v1701_v5, 0.0 }
 0x5be   :  { %v1744_v37 = vpop.f32.mrf.mxu2 }
 0x5bf   :  { %v1818_v26 = vsel %vm84_vm0, %v1744_v37, 0.0 }
 0x5c0   :  { %v1819_v48 = vadd.f32 %v1818_v26, %v1817_v9 }
 0x5cf   :  { %v1793_v31 = vpop.f32.mrf.mxu3 }
 0x5d0   :  { %v1813_v15 = vsel %vm84_vm0, %v1793_v31, 0.0 }
 0x5d1   :  { %v1814_v3 = vadd.f32 %v1813_v15, %v1812_v4  ;;  %v1703_v15 = vpop.f32.mrf.mxu1 }
 0x5d2   :  { %v1844_v59 = vsel %vm84_vm0, %v1703_v15, 0.0 }
 0x5d3   :  { %v1853_v6 = vadd.f32 %v5864_v55, %v1814_v3 }
 0x5d5   :  { %v5872_v62 = vadd.f32 %v1853_v6, %v5263_v16  ;;  %v1645_v16 = vpop.f32.mrf.mxu0 }
 0x5d6   :  { %v1822_v28 = vsel %vm84_vm0, %v1645_v16, 0.0 }
 0x5d7   :  { %v1795_v21 = vpop.f32.mrf.mxu3  ;;  %v1867_v44 = vsel %vm84_vm0, %v5872_v62, 0.0  ;;  %v1824_v54 = vadd.f32 %v1823_v30, %v1822_v28 }
 0x5d8   :  { %v1820_v38 = vsel %vm84_vm0, %v1795_v21, 0.0  ;;  %1868 = vadd.xlane.f32.xlu0 %v1867_v44 }
 0x5d9   :  { %v1821_v24 = vadd.f32 %v1820_v38, %v1819_v48 }
 0x5db   :  { %v1854_v61 = vadd.f32 %v5864_v55, %v1821_v24 }
 0x5dd   :  { %v5879_v19 = vadd.f32 %v1854_v61, %v5271_v20  ;;  %v1647_v53 = vpop.f32.mrf.mxu0  ;;  %v5084_v61 = vld [vmem:[%s7029_s20 + $0x28] sm:$0xff] }
 0x5de   :  { %v1829_v50 = vsel %vm84_vm0, %v1647_v53, 0.0 }
 0x5df   :  { %v1870_v23 = vsel %vm84_vm0, %v5879_v19, 0.0  ;;  %v1831_v35 = vadd.f32 %v1830_v1, %v1829_v50 }
 0x5e0   :  { %1871 = vadd.xlane.f32.xlu2 %v1870_v23 }
 0x5e5   :  { %v1650_v8 = vpop.f32.mrf.mxu0 }
 0x5e6   :  { %v1836_v46 = vsel %vm84_vm0, %v1650_v8, 0.0 }
 0x5e7   :  { %v1838_v47 = vadd.f32 %v1837_v57, %v1836_v46  ;;  %v4607_v57 = vld [vmem:[%s7017_s11] sm:$0xff] }
 0x5ed   :  { %v1652_v40 = vpop.f32.mrf.mxu0 }
 0x5ee   :  { %v1843_v37 = vsel %vm84_vm0, %v1652_v40, 0.0 }
 0x5ef   :  { %v1845_v6 = vadd.f32 %v1844_v59, %v1843_v37 }
 0x5fb   :  { %v1747_v39 = vpop.f32.mrf.mxu2 }
 0x5fc   :  { %v1825_v60 = vsel %vm84_vm0, %v1747_v39, 0.0 }
 0x5fd   :  { %v1826_v41 = vadd.f32 %v1825_v60, %v1824_v54  ;;  %v1798_v12 = vpop.f32.mrf.mxu3 }
 0x5fe   :  { %v1827_v20 = vsel %vm84_vm0, %v1798_v12, 0.0 }
 0x5ff   :  { %v1828_v7 = vadd.f32 %v1827_v20, %v1826_v41 }
 0x601   :  { %v1855_v11 = vadd.f32 %v5864_v55, %v1828_v7 }
 0x603   :  { %v1749_v0 = vpop.f32.mrf.mxu2  ;;  %v1861_v63 = vadd.f32 %v5083_v13, %v1855_v11 }
 0x604   :  { %v1832_v10 = vsel %vm84_vm0, %v1749_v0, 0.0 }
 0x605   :  { %v1833_v29 = vadd.f32 %v1832_v10, %v1831_v35  ;;  %v1800_v18 = vpop.f32.mrf.mxu3  ;;  %v1873_v49 = vsel %vm84_vm0, %v1861_v63, 0.0 }
 0x606   :  { %v1834_v56 = vsel %vm84_vm0, %v1800_v18, 0.0  ;;  %1874 = vadd.xlane.f32.xlu1 %v1873_v49 }
 0x607   :  { %v1835_v42 = vadd.f32 %v1834_v56, %v1833_v29 }
 0x609   :  { %v1856_v34 = vadd.f32 %v5864_v55, %v1835_v42  ;;  %v4608_v42 = vld [vmem:[%s7017_s11 + $0x8] sm:$0xff] }
 0x60a   :  { %2064 = vmatpush.bf16.msrb.mxu0 %v4608_v42 }
 0x60b   :  { %v1752_v52 = vpop.f32.mrf.mxu2  ;;  %v1862_v2 = vadd.f32 %v1856_v34, %v5280_v32 }
 0x60c   :  { %v1839_v17 = vsel %vm84_vm0, %v1752_v52, 0.0 }
 0x60d   :  { %v1840_v33 = vadd.f32 %v1839_v17, %v1838_v47  ;;  %v1803_v45 = vpop.f32.mrf.mxu3  ;;  %v1876_v4 = vsel %vm84_vm0, %v1862_v2, 0.0 }
 0x60e   :  { %v1841_v31 = vsel %vm84_vm0, %v1803_v45, 0.0  ;;  %1877 = vadd.xlane.f32.xlu0 %v1876_v4  ;;  %2065 = vmatpush.bf16.msrb.mxu0 %v4607_v57 }
 0x60f   :  { %v1842_v36 = vadd.f32 %v1841_v31, %v1840_v33 }
 0x611   :  { %v1857_v3 = vadd.f32 %v5864_v55, %v1842_v36 }
 0x613   :  { %v1754_v32 = vpop.f32.mrf.mxu2  ;;  %v1863_v51 = vadd.f32 %v1857_v3, %v5296_v43 }
 0x614   :  { %v1846_v26 = vsel %vm84_vm0, %v1754_v32, 0.0 }
 0x615   :  { %v1847_v9 = vadd.f32 %v1846_v26, %v1845_v6  ;;  %v1805_v48 = vpop.f32.mrf.mxu3  ;;  %v1879_v21 = vsel %vm84_vm0, %v1863_v51, 0.0 }
 0x616   :  { %v1848_v44 = vsel %vm84_vm0, %v1805_v48, 0.0  ;;  %1880 = vadd.xlane.f32.xlu0 %v1879_v21  ;;  %v5970_v21 = vld [vmem:[%s7015_s16] ss:$0 sm:$0xff] }
 0x617   :  { %v1849_v38 = vadd.f32 %v1848_v44, %v1847_v9 }
 0x619   :  { %v1858_v24 = vadd.f32 %v5864_v55, %v1849_v38 }
 0x61b   :  { %v1864_v23 = vadd.f32 %v5084_v61, %v1858_v24 }
 0x61d   :  { %v1882_v16 = vsel %vm84_vm0, %v1864_v23, 0.0 }
 0x61e   :  { %1883 = vadd.xlane.f32.xlu0 %v1882_v16 }
 0x64b   :  { %v1869_v43 = vpop.xlane.xlu0 %1868 }
 0x64c   :  { %v1885_v25 = vmul.f32 %v1869_v43, %v5213_v14 }
 0x64e   :  { %v5917_v30 = vsub.f32 %v5872_v62, %v1885_v25 }
 0x650   :  { %v1897_v28 = vmul.f32 %v5917_v30, %v5917_v30 }
 0x652   :  { %v1903_v53 = vsel %vm84_vm0, %v1897_v28, 0.0 }
 0x653   :  { %v1872_v55 = vpop.xlane.xlu2 %1871  ;;  %1904 = vadd.xlane.f32.xlu0 %v1903_v53 }
 0x654   :  { %v1886_v54 = vmul.f32 %v1872_v55, %v5213_v14 }
 0x656   :  { %v5924_v27 = vsub.f32 %v5879_v19, %v1886_v54 }
 0x658   :  { %v1898_v39 = vmul.f32 %v5924_v27, %v5924_v27 }
 0x65a   :  { %v1906_v60 = vsel %vm84_vm0, %v1898_v39, 0.0 }
 0x65b   :  { %1907 = vadd.xlane.f32.xlu0 %v1906_v60 }
 0x679   :  { %v1875_v62 = vpop.xlane.xlu1 %1874 }
 0x67a   :  { %v1887_v41 = vmul.f32 %v1875_v62, %v5213_v14 }
 0x67c   :  { %v5930_v12 = vsub.f32 %v1861_v63, %v1887_v41 }
 0x67e   :  { %v1899_v20 = vmul.f32 %v5930_v12, %v5930_v12 }
 0x680   :  { %v1909_v7 = vsel %vm84_vm0, %v1899_v20, 0.0 }
 0x681   :  { %1910 = vadd.xlane.f32.xlu2 %v1909_v7  ;;  %v1878_v1 = vpop.xlane.xlu0 %1877 }
 0x682   :  { %v1888_v19 = vmul.f32 %v1878_v1, %v5213_v14 }
 0x684   :  { %v5936_v11 = vsub.f32 %v1862_v2, %v1888_v19 }
 0x686   :  { %v1900_v50 = vmul.f32 %v5936_v11, %v5936_v11 }
 0x688   :  { %v1912_v35 = vsel %vm84_vm0, %v1900_v50, 0.0 }
 0x689   :  { %1913 = vadd.xlane.f32.xlu1 %v1912_v35  ;;  %v1881_v8 = vpop.xlane.xlu0 %1880 }
 0x68a   :  { %v1889_v0 = vmul.f32 %v1881_v8, %v5213_v14 }
 0x68c   :  { %v5942_v13 = vsub.f32 %v1863_v51, %v1889_v0  ;;  %v5964_v51 = vld [vmem:[%s7014_s15] ss:$0 sm:$0xff] }
 0x68e   :  { %v1901_v63 = vmul.f32 %v5942_v13, %v5942_v13 }
 0x690   :  { %v1915_v10 = vsel %vm84_vm0, %v1901_v63, 0.0 }
 0x691   :  { %1916 = vadd.xlane.f32.xlu0 %v1915_v10  ;;  %v1884_v5 = vpop.xlane.xlu0 %1883 }
 0x692   :  { %v1890_v29 = vmul.f32 %v1884_v5, %v5213_v14 }
 0x694   :  { %v5948_v18 = vsub.f32 %v1864_v23, %v1890_v29 }
 0x696   :  { %v1902_v49 = vmul.f32 %v5948_v18, %v5948_v18 }
 0x698   :  { %v1918_v56 = vsel %vm84_vm0, %v1902_v49, 0.0 }
 0x699   :  { %1919 = vadd.xlane.f32.xlu2 %v1918_v56 }
 0x6c6   :  { %v1905_v46 = vpop.xlane.xlu0 %1904 }
 0x6c7   :  { %v1921_v34 = vmul.f32 %v1905_v46, %v5213_v14 }
 0x6c9   :  { %v1927_v47 = vadd.f32 1e-05, %v1921_v34 }
 0x6cb   :  { %4939 = vrsqrt.f32 %v1927_v47  ;;  %vm1939_vm5 = vweird.f32 %v1927_v47 }
 0x6ce   :  { %v1908_v52 = vpop.xlane.xlu0 %1907 }
 0x6cf   :  { %v1922_v2 = vmul.f32 %v1908_v52, %v5213_v14 }
 0x6d1   :  { %v4940_v17 = vpop.eup %4939  ;;  %v1928_v40 = vadd.f32 1e-05, %v1922_v2 }
 0x6d2   :  { %v1934_v33 = vmul.f32 %v4940_v17, %v1927_v47  ;;  %vm1940_vm4 = vweird.f32 %v4940_v17 }
 0x6d3   :  { %4941 = vrsqrt.f32 %v1928_v40  ;;  %vm1941_vm6 = vmor %vm1939_vm5, %vm1940_vm4  ;;  %vm1949_vm8 = vweird.f32 %v1928_v40 }
 0x6d4   :  { %v1935_v45 = vmul.f32 %v4940_v17, %v1934_v33 }
 0x6d6   :  { %v1936_v4 = vmul.f32 0.5, %v1935_v45 }
 0x6d8   :  { %v1937_v31 = vsub.f32 1.5, %v1936_v4 }
 0x6d9   :  { %v4942_v15 = vpop.eup %4941 }
 0x6da   :  { %v1938_v36 = vmul.f32 %v4940_v17, %v1937_v31  ;;  %v1944_v37 = vmul.f32 %v4942_v15, %v1928_v40  ;;  %vm1950_vm7 = vweird.f32 %v4942_v15 }
 0x6db   :  { %vm1951_vm9 = vmor %vm1949_vm8, %vm1950_vm7 }
 0x6dc   :  { %v1945_v3 = vmul.f32 %v4942_v15, %v1944_v37  ;;  %v1942_v59 = vsel %vm1941_vm6, %v4940_v17, %v1938_v36 }
 0x6dd   :  { %v1993_v26 = vmul.f32 %v1942_v59, %v5917_v30 }
 0x6de   :  { %v1946_v6 = vmul.f32 0.5, %v1945_v3 }
 0x6df   :  { %v2002_v44 = vmul.f32 %v5964_v51, %v1993_v26 }
 0x6e0   :  { %v1947_v32 = vsub.f32 1.5, %v1946_v6 }
 0x6e1   :  { %v5976_v61 = vadd.f32 %v5970_v21, %v2002_v44 }
 0x6e2   :  { %v1948_v9 = vmul.f32 %v4942_v15, %v1947_v32 }
 0x6e4   :  { %v1952_v48 = vsel %vm1951_vm9, %v4942_v15, %v1948_v9 }
 0x6e5   :  { %v1994_v38 = vmul.f32 %v1952_v48, %v5924_v27 }
 0x6e7   :  { %v2003_v24 = vmul.f32 %v5964_v51, %v1994_v38 }
 0x6e9   :  { %v5979_v23 = vadd.f32 %v5970_v21, %v2003_v24 }
 0x6eb   :  { %v2031_v16 = vpack.c.bf16 %v5979_v23, %v5976_v61 }
 0x6ed   :  { %4452 = vmatmul.msk.bf16.vlgmr.msrb.gmra.mxu0 %vm84_vm0, %v2031_v16 }
 0x6f4   :  { %v1911_v43 = vpop.xlane.xlu2 %1910 }
 0x6f5   :  { %v1923_v25 = vmul.f32 %v1911_v43, %v5213_v14  ;;  %v4820_v43 = vld [vmem:[%s7016_s12] ss:$0 sm:$0xff] }
 0x6f7   :  { %v1929_v30 = vadd.f32 1e-05, %v1923_v25 }
 0x6f9   :  { %4943 = vrsqrt.f32 %v1929_v30  ;;  %vm1959_vm11 = vweird.f32 %v1929_v30 }
 0x6fc   :  { %v1914_v28 = vpop.xlane.xlu1 %1913 }
 0x6fd   :  { %v1924_v53 = vmul.f32 %v1914_v28, %v5213_v14 }
 0x6ff   :  { %v4944_v55 = vpop.eup %4943  ;;  %v1930_v54 = vadd.f32 1e-05, %v1924_v53 }
 0x700   :  { %v1954_v27 = vmul.f32 %v4944_v55, %v1929_v30  ;;  %vm1960_vm10 = vweird.f32 %v4944_v55 }
 0x701   :  { %4945 = vrsqrt.f32 %v1930_v54  ;;  %vm1961_vm12 = vmor %vm1959_vm11, %vm1960_vm10  ;;  %vm1969_vm15 = vweird.f32 %v1930_v54  ;;  %vm2118_vm10 = vcmask 523264  }
 0x702   :  { %v1955_v39 = vmul.f32 %v4944_v55, %v1954_v27 }
 0x704   :  { %v1956_v60 = vmul.f32 0.5, %v1955_v39  ;;  %v1917_v62 = vpop.xlane.xlu0 %1916 }
 0x705   :  { %v1925_v41 = vmul.f32 %v1917_v62, %v5213_v14 }
 0x706   :  { %v1957_v20 = vsub.f32 1.5, %v1956_v60 }
 0x707   :  { %v4946_v7 = vpop.eup %4945  ;;  %v1931_v1 = vadd.f32 1e-05, %v1925_v41 }
 0x708   :  { %v1958_v19 = vmul.f32 %v4944_v55, %v1957_v20  ;;  %v1964_v50 = vmul.f32 %v4946_v7, %v1930_v54  ;;  %vm1970_vm13 = vweird.f32 %v4946_v7 }
 0x709   :  { %4947 = vrsqrt.f32 %v1931_v1  ;;  %vm1971_vm3 = vmor %vm1969_vm15, %vm1970_vm13  ;;  %vm1979_vm5 = vweird.f32 %v1931_v1 }
 0x70a   :  { %v1965_v35 = vmul.f32 %v4946_v7, %v1964_v50  ;;  %v1962_v8 = vsel %vm1961_vm12, %v4944_v55, %v1958_v19 }
 0x70b   :  { %v1995_v49 = vmul.f32 %v1962_v8, %v5930_v12 }
 0x70c   :  { %v1966_v0 = vmul.f32 0.5, %v1965_v35  ;;  %v1920_v63 = vpop.xlane.xlu2 %1919 }
 0x70d   :  { %v1926_v10 = vmul.f32 %v1920_v63, %v5213_v14  ;;  %v2004_v52 = vmul.f32 %v5964_v51, %v1995_v49 }
 0x70e   :  { %v1967_v5 = vsub.f32 1.5, %v1966_v0 }
 0x70f   :  { %v4948_v29 = vpop.eup %4947  ;;  %v1932_v56 = vadd.f32 1e-05, %v1926_v10  ;;  %v5993_v45 = vadd.f32 %v5970_v21, %v2004_v52  ;;  %v4821_v10 = vld [vmem:[%s7018_s14] ss:$0 sm:$0xff] }
 0x710   :  { %v1968_v42 = vmul.f32 %v4946_v7, %v1967_v5  ;;  %v1974_v46 = vmul.f32 %v4948_v29, %v1931_v1  ;;  %vm1980_vm4 = vweird.f32 %v4948_v29 }
 0x711   :  { %4949 = vrsqrt.f32 %v1932_v56  ;;  %vm1981_vm6 = vmor %vm1979_vm5, %vm1980_vm4  ;;  %vm1989_vm8 = vweird.f32 %v1932_v56 }
 0x712   :  { %v1972_v34 = vsel %vm1971_vm3, %v4946_v7, %v1968_v42  ;;  %v1975_v57 = vmul.f32 %v4948_v29, %v1974_v46 }
 0x713   :  { %v1996_v47 = vmul.f32 %v1972_v34, %v5936_v11 }
 0x714   :  { %v1976_v2 = vmul.f32 0.5, %v1975_v57 }
 0x715   :  { %v2005_v17 = vmul.f32 %v5964_v51, %v1996_v47 }
 0x716   :  { %v1977_v40 = vsub.f32 1.5, %v1976_v2 }
 0x717   :  { %v4950_v33 = vpop.eup %4949  ;;  %v5996_v12 = vadd.f32 %v5970_v21, %v2005_v17 }
 0x718   :  { %v1978_v4 = vmul.f32 %v4948_v29, %v1977_v40  ;;  %v1984_v31 = vmul.f32 %v4950_v33, %v1932_v56  ;;  %vm1990_vm7 = vweird.f32 %v4950_v33 }
 0x719   :  { %v2032_v15 = vpack.c.bf16 %v5996_v12, %v5993_v45  ;;  %vm1991_vm9 = vmor %vm1989_vm8, %vm1990_vm7 }
 0x71a   :  { %v1985_v11 = vmul.f32 %v4950_v33, %v1984_v31  ;;  %v1982_v36 = vsel %vm1981_vm6, %v4948_v29, %v1978_v4 }
 0x71b   :  { %4453 = vmatmul.msk.bf16.gmra.mxu0 %vm84_vm0, %v2032_v15  ;;  %v1997_v59 = vmul.f32 %v1982_v36, %v5942_v13  ;;  %v4612_v13 = vld [vmem:[%s7019_s13 + $0x18] sm:$0xff] }
 0x71c   :  { %v1986_v37 = vmul.f32 0.5, %v1985_v11  ;;  %2132 = vmatpush.bf16.msrb.mxu1 %v4612_v13 }
 0x71d   :  { %v2006_v9 = vmul.f32 %v5964_v51, %v1997_v59 }
 0x71e   :  { %v1987_v3 = vsub.f32 1.5, %v1986_v37 }
 0x71f   :  { %v6006_v44 = vadd.f32 %v5970_v21, %v2006_v9 }
 0x720   :  { %v1988_v6 = vmul.f32 %v4950_v33, %v1987_v3 }
 0x722   :  { %v1992_v32 = vsel %vm1991_vm9, %v4950_v33, %v1988_v6 }
 0x723   :  { %v1998_v26 = vmul.f32 %v1992_v32, %v5948_v18  ;;  %v4611_v18 = vld [vmem:[%s7019_s13 + $0x10] sm:$0xff] }
 0x724   :  { %2133 = vmatpush.bf16.msrb.mxu1 %v4611_v18 }
 0x725   :  { %v2007_v48 = vmul.f32 %v5964_v51, %v1998_v26  ;;  %v4610_v51 = vld [vmem:[%s7019_s13 + $0x8] sm:$0xff] }
 0x727   :  { %v6009_v38 = vadd.f32 %v5970_v21, %v2007_v48  ;;  %v4609_v21 = vld [vmem:[%s7019_s13] sm:$0xff] }
 0x728   :  { %2134 = vmatpush.bf16.msrb.mxu1 %v4610_v51 }
 0x729   :  { %v2033_v24 = vpack.c.bf16 %v6009_v38, %v6006_v44 }
 0x72b   :  { %4454 = vmatmul.msk.bf16.gmra.mxu0 %vm84_vm0, %v2033_v24 }
 0x72c   :  { %2135 = vmatpush.bf16.msrb.mxu1 %v4609_v21 }
 0x76a   :  { %v2067_v16 = vpop.f32.mrf.mxu0 }
 0x76b   :  { %v2068_v25 = vadd.f32 %v4820_v43, %v2067_v16 }
 0x76d   :  { %v2082_v53 = vmax.f32 %v2068_v25, 0.0 }
 0x772   :  { %v2069_v30 = vpop.f32.mrf.mxu0 }
 0x773   :  { %v2070_v28 = vadd.f32 %v4820_v43, %v2069_v30 }
 0x775   :  { %v2083_v55 = vmax.f32 %v2070_v28, 0.0 }
 0x777   :  { %v2088_v54 = vpack.c.bf16 %v2083_v55, %v2082_v53 }
 0x779   :  { %4471 = vmatmul.msk.bf16.vlgmr.msrb.gmra.mxu1 %vm2118_vm10, %v2088_v54 }
 0x798   :  { %v2072_v27 = vpop.f32.mrf.mxu0 }
 0x799   :  { %v2073_v39 = vadd.f32 %v4820_v43, %v2072_v27 }
 0x79b   :  { %v2084_v41 = vmax.f32 %v2073_v39, 0.0 }
 0x7a0   :  { %v2074_v60 = vpop.f32.mrf.mxu0 }
 0x7a1   :  { %v2075_v62 = vadd.f32 %v4820_v43, %v2074_v60 }
 0x7a3   :  { %v2085_v20 = vmax.f32 %v2075_v62, 0.0 }
 0x7a5   :  { %v2089_v7 = vpack.c.bf16 %v2085_v20, %v2084_v41 }
 0x7a7   :  { %4472 = vmatmul.msk.bf16.gmra.mxu1 %vm2118_vm10, %v2089_v7 }
 0x7a8   :  { %v2077_v1 = vpop.f32.mrf.mxu0 }
 0x7a9   :  { %v2078_v19 = vadd.f32 %v4820_v43, %v2077_v1 }
 0x7ab   :  { %v2086_v8 = vmax.f32 %v2078_v19, 0.0  ;;  %v4616_v19 = vld [vmem:[%s7007_s7 + $0x18] sm:$0xff] }
 0x7ac   :  { %2421 = vmatpush.bf16.msrb.mxu3 %v4616_v19 }
 0x7b0   :  { %v2079_v50 = vpop.f32.mrf.mxu0 }
 0x7b1   :  { %v2080_v35 = vadd.f32 %v4820_v43, %v2079_v50 }
 0x7b3   :  { %v2087_v0 = vmax.f32 %v2080_v35, 0.0  ;;  %v4614_v35 = vld [vmem:[%s7008_s5 + $0x18] sm:$0xff] }
 0x7b4   :  { %2370 = vmatpush.bf16.msrb.mxu2 %v4614_v35 }
 0x7b5   :  { %v2090_v63 = vpack.c.bf16 %v2087_v0, %v2086_v8  ;;  %v4615_v0 = vld [vmem:[%s7007_s7 + $0x10] sm:$0xff] }
 0x7b6   :  { %2422 = vmatpush.bf16.msrb.mxu3 %v4615_v0 }
 0x7b7   :  { %4473 = vmatmul.msk.bf16.gmra.mxu1 %vm2118_vm10, %v2090_v63 }
 0x7f6   :  { %v2137_v5 = vpop.f32.mrf.mxu1 }
 0x7f7   :  { %v2138_v29 = vadd.f32 %v4821_v10, %v2137_v5 }
 0x7f9   :  { %v2152_v49 = vadd.f32 %v2138_v29, %v5976_v61 }
 0x7fb   :  { %v2160_v56 = vsel %vm84_vm0, %v2152_v49, 0.0 }
 0x7fc   :  { %2161 = vadd.xlane.f32.xlu1 %v2160_v56 }
 0x7fe   :  { %v2139_v42 = vpop.f32.mrf.mxu1 }
 0x7ff   :  { %v2140_v46 = vadd.f32 %v4821_v10, %v2139_v42 }
 0x801   :  { %v2153_v34 = vadd.f32 %v2140_v46, %v5979_v23 }
 0x803   :  { %v2163_v57 = vsel %vm84_vm0, %v2153_v34, 0.0 }
 0x804   :  { %2164 = vadd.xlane.f32.xlu0 %v2163_v57 }
 0x824   :  { %v2142_v47 = vpop.f32.mrf.mxu1 }
 0x825   :  { %v2143_v52 = vadd.f32 %v4821_v10, %v2142_v47 }
 0x827   :  { %v2154_v2 = vadd.f32 %v2143_v52, %v5993_v45 }
 0x829   :  { %v2166_v17 = vsel %vm84_vm0, %v2154_v2, 0.0 }
 0x82a   :  { %2167 = vadd.xlane.f32.xlu2 %v2166_v17 }
 0x82c   :  { %v2144_v40 = vpop.f32.mrf.mxu1 }
 0x82d   :  { %v2145_v33 = vadd.f32 %v4821_v10, %v2144_v40 }
 0x82f   :  { %v2155_v61 = vadd.f32 %v2145_v33, %v5996_v12 }
 0x831   :  { %v2169_v4 = vsel %vm84_vm0, %v2155_v61, 0.0 }
 0x832   :  { %2170 = vadd.xlane.f32.xlu1 %v2169_v4 }
 0x834   :  { %v2147_v31 = vpop.f32.mrf.mxu1 }
 0x835   :  { %v2148_v15 = vadd.f32 %v4821_v10, %v2147_v31 }
 0x837   :  { %v2156_v23 = vadd.f32 %v2148_v15, %v6006_v44 }
 0x839   :  { %v2172_v11 = vsel %vm84_vm0, %v2156_v23, 0.0 }
 0x83a   :  { %2173 = vadd.xlane.f32.xlu0 %v2172_v11 }
 0x83c   :  { %v2149_v36 = vpop.f32.mrf.mxu1 }
 0x83d   :  { %v2150_v37 = vadd.f32 %v4821_v10, %v2149_v36  ;;  %v4613_v10 = vld [vmem:[%s7008_s5 + $0x10] sm:$0xff] }
 0x83e   :  { %2371 = vmatpush.bf16.msrb.mxu2 %v4613_v10 }
 0x83f   :  { %v2157_v45 = vadd.f32 %v2150_v37, %v6009_v38 }
 0x841   :  { %v2175_v3 = vsel %vm84_vm0, %v2157_v45, 0.0 }
 0x842   :  { %2176 = vadd.xlane.f32.xlu2 %v2175_v3 }
 0x86f   :  { %v2162_v59 = vpop.xlane.xlu1 %2161 }
 0x870   :  { %v2178_v12 = vmul.f32 %v2162_v59, %v5213_v14 }
 0x872   :  { %v6048_v6 = vsub.f32 %v2152_v49, %v2178_v12  ;;  %v5085_v12 = vld [vmem:[%s7009_s1] sm:$0xff] }
 0x874   :  { %v2190_v32 = vmul.f32 %v6048_v6, %v6048_v6 }
 0x876   :  { %v2196_v26 = vsel %vm84_vm0, %v2190_v32, 0.0  ;;  %v5086_v32 = vld [vmem:[%s7009_s1 + $0x8] sm:$0xff] }
 0x877   :  { %2197 = vadd.xlane.f32.xlu1 %v2196_v26  ;;  %v2165_v9 = vpop.xlane.xlu0 %2164 }
 0x878   :  { %v2179_v48 = vmul.f32 %v2165_v9, %v5213_v14 }
 0x87a   :  { %v6054_v44 = vsub.f32 %v2153_v34, %v2179_v48 }
 0x87c   :  { %v2191_v38 = vmul.f32 %v6054_v44, %v6054_v44 }
 0x87e   :  { %v2199_v24 = vsel %vm84_vm0, %v2191_v38, 0.0 }
 0x87f   :  { %2200 = vadd.xlane.f32.xlu0 %v2199_v24 }
 0x89d   :  { %v2168_v13 = vpop.xlane.xlu2 %2167 }
 0x89e   :  { %v2180_v18 = vmul.f32 %v2168_v13, %v5213_v14 }
 0x8a0   :  { %v6060_v51 = vsub.f32 %v2154_v2, %v2180_v18 }
 0x8a2   :  { %v2192_v21 = vmul.f32 %v6060_v51, %v6060_v51 }
 0x8a4   :  { %v2202_v16 = vsel %vm84_vm0, %v2192_v21, 0.0 }
 0x8a5   :  { %v2171_v43 = vpop.xlane.xlu1 %2170  ;;  %2203 = vadd.xlane.f32.xlu2 %v2202_v16 }
 0x8a6   :  { %v2181_v25 = vmul.f32 %v2171_v43, %v5213_v14 }
 0x8a8   :  { %v6066_v30 = vsub.f32 %v2155_v61, %v2181_v25  ;;  %v6100_v61 = vld [vmem:[%s7020_s17] ss:$0 sm:$0xff] }
 0x8aa   :  { %v2193_v28 = vmul.f32 %v6066_v30, %v6066_v30 }
 0x8ac   :  { %v2205_v53 = vsel %vm84_vm0, %v2193_v28, 0.0 }
 0x8ad   :  { %2206 = vadd.xlane.f32.xlu1 %v2205_v53  ;;  %v2174_v55 = vpop.xlane.xlu0 %2173 }
 0x8ae   :  { %v2182_v54 = vmul.f32 %v2174_v55, %v5213_v14 }
 0x8b0   :  { %v6072_v27 = vsub.f32 %v2156_v23, %v2182_v54  ;;  %v6106_v23 = vld [vmem:[%s7021_s18] ss:$0 sm:$0xff] }
 0x8b2   :  { %v2194_v39 = vmul.f32 %v6072_v27, %v6072_v27 }
 0x8b4   :  { %v2208_v60 = vsel %vm84_vm0, %v2194_v39, 0.0 }
 0x8b5   :  { %v2177_v62 = vpop.xlane.xlu2 %2176  ;;  %2209 = vadd.xlane.f32.xlu0 %v2208_v60 }
 0x8b6   :  { %v2183_v41 = vmul.f32 %v2177_v62, %v5213_v14 }
 0x8b8   :  { %v6078_v20 = vsub.f32 %v2157_v45, %v2183_v41 }
 0x8ba   :  { %v2195_v7 = vmul.f32 %v6078_v20, %v6078_v20 }
 0x8bc   :  { %v2211_v1 = vsel %vm84_vm0, %v2195_v7, 0.0 }
 0x8bd   :  { %2212 = vadd.xlane.f32.xlu2 %v2211_v1 }
 0x8ea   :  { %v2198_v50 = vpop.xlane.xlu1 %2197 }
 0x8eb   :  { %v2214_v8 = vmul.f32 %v2198_v50, %v5213_v14 }
 0x8ed   :  { %v2220_v63 = vadd.f32 1e-05, %v2214_v8 }
 0x8ef   :  { %4951 = vrsqrt.f32 %v2220_v63  ;;  %vm2232_vm12 = vweird.f32 %v2220_v63 }
 0x8f2   :  { %v2201_v5 = vpop.xlane.xlu0 %2200 }
 0x8f3   :  { %v2215_v29 = vmul.f32 %v2201_v5, %v5213_v14 }
 0x8f5   :  { %v4952_v49 = vpop.eup %4951  ;;  %v2221_v56 = vadd.f32 1e-05, %v2215_v29 }
 0x8f6   :  { %v2227_v42 = vmul.f32 %v4952_v49, %v2220_v63  ;;  %vm2233_vm11 = vweird.f32 %v4952_v49 }
 0x8f7   :  { %4953 = vrsqrt.f32 %v2221_v56  ;;  %vm2234_vm13 = vmor %vm2232_vm12, %vm2233_vm11  ;;  %vm2242_vm3 = vweird.f32 %v2221_v56 }
 0x8f8   :  { %v2228_v46 = vmul.f32 %v4952_v49, %v2227_v42 }
 0x8fa   :  { %v2229_v34 = vmul.f32 0.5, %v2228_v46 }
 0x8fc   :  { %v2230_v57 = vsub.f32 1.5, %v2229_v34 }
 0x8fd   :  { %v4954_v47 = vpop.eup %4953 }
 0x8fe   :  { %v2231_v52 = vmul.f32 %v4952_v49, %v2230_v57  ;;  %v2237_v2 = vmul.f32 %v4954_v47, %v2221_v56  ;;  %vm2243_vm15 = vweird.f32 %v4954_v47 }
 0x8ff   :  { %vm2244_vm4 = vmor %vm2242_vm3, %vm2243_vm15 }
 0x900   :  { %v2235_v17 = vsel %vm2234_vm13, %v4952_v49, %v2231_v52  ;;  %v2238_v40 = vmul.f32 %v4954_v47, %v2237_v2 }
 0x901   :  { %v2286_v4 = vmul.f32 %v2235_v17, %v6048_v6 }
 0x902   :  { %v2239_v33 = vmul.f32 0.5, %v2238_v40 }
 0x903   :  { %v2295_v11 = vmul.f32 %v6100_v61, %v2286_v4 }
 0x904   :  { %v2240_v31 = vsub.f32 1.5, %v2239_v33 }
 0x905   :  { %v6111_v45 = vadd.f32 %v6106_v23, %v2295_v11 }
 0x906   :  { %v2241_v15 = vmul.f32 %v4954_v47, %v2240_v31  ;;  %v5088_v31 = vld [vmem:[%s7009_s1 + $0x18] sm:$0xff] }
 0x907   :  { %v2310_v6 = vadd.f32 %v5085_v12, %v6111_v45 }
 0x908   :  { %v2245_v36 = vsel %vm2244_vm4, %v4954_v47, %v2241_v15 }
 0x909   :  { %v2287_v37 = vmul.f32 %v2245_v36, %v6054_v44 }
 0x90b   :  { %v2296_v3 = vmul.f32 %v6100_v61, %v2287_v37 }
 0x90d   :  { %v6115_v59 = vadd.f32 %v6106_v23, %v2296_v3 }
 0x90f   :  { %v2311_v26 = vadd.f32 %v5086_v32, %v6115_v59  ;;  %v2388_v9 = vpack.c.bf16 %v6115_v59, %v6111_v45 }
 0x911   :  { %4508 = vmatmul.msk.bf16.vlgmr.msrb.gmra.mxu3 %vm84_vm0, %v2388_v9  ;;  %v2337_v48 = vpack.c.bf16 %v2311_v26, %v2310_v6 }
 0x913   :  { %4497 = vmatmul.msk.bf16.vlgmr.msrb.gmra.mxu2 %vm84_vm0, %v2337_v48 }
 0x918   :  { %v2204_v44 = vpop.xlane.xlu2 %2203 }
 0x919   :  { %v2216_v38 = vmul.f32 %v2204_v44, %v5213_v14 }
 0x91b   :  { %v2222_v24 = vadd.f32 1e-05, %v2216_v38 }
 0x91d   :  { %4955 = vrsqrt.f32 %v2222_v24  ;;  %vm2252_vm6 = vweird.f32 %v2222_v24 }
 0x920   :  { %v2207_v13 = vpop.xlane.xlu1 %2206 }
 0x921   :  { %v2217_v18 = vmul.f32 %v2207_v13, %v5213_v14  ;;  %v5089_v13 = vld [vmem:[%s7009_s1 + $0x20] sm:$0xff] }
 0x923   :  { %v4956_v21 = vpop.eup %4955  ;;  %v2223_v16 = vadd.f32 1e-05, %v2217_v18 }
 0x924   :  { %v2247_v43 = vmul.f32 %v4956_v21, %v2222_v24  ;;  %vm2253_vm5 = vweird.f32 %v4956_v21 }
 0x925   :  { %4957 = vrsqrt.f32 %v2223_v16  ;;  %vm2254_vm7 = vmor %vm2252_vm6, %vm2253_vm5  ;;  %vm2262_vm9 = vweird.f32 %v2223_v16 }
 0x926   :  { %v2248_v25 = vmul.f32 %v4956_v21, %v2247_v43 }
 0x928   :  { %v2249_v28 = vmul.f32 0.5, %v2248_v25  ;;  %v2210_v53 = vpop.xlane.xlu0 %2209 }
 0x929   :  { %v2218_v55 = vmul.f32 %v2210_v53, %v5213_v14 }
 0x92a   :  { %v2250_v54 = vsub.f32 1.5, %v2249_v28 }
 0x92b   :  { %v4958_v39 = vpop.eup %4957  ;;  %v2224_v60 = vadd.f32 1e-05, %v2218_v55 }
 0x92c   :  { %v2251_v62 = vmul.f32 %v4956_v21, %v2250_v54  ;;  %v2257_v41 = vmul.f32 %v4958_v39, %v2223_v16  ;;  %vm2263_vm8 = vweird.f32 %v4958_v39  ;;  %v4824_v16 = vld [vmem:[%s7032_s28 + $0x1] ss:$0 sm:$0xff] }
 0x92d   :  { %4959 = vrsqrt.f32 %v2224_v60  ;;  %vm2264_vm11 = vmor %vm2262_vm9, %vm2263_vm8  ;;  %vm2272_vm13 = vweird.f32 %v2224_v60 }
 0x92e   :  { %v2255_v7 = vsel %vm2254_vm7, %v4956_v21, %v2251_v62  ;;  %v2258_v1 = vmul.f32 %v4958_v39, %v2257_v41 }
 0x92f   :  { %v2288_v35 = vmul.f32 %v2255_v7, %v6060_v51  ;;  %v4825_v7 = vld [vmem:[%s7010_s6 + $0x1] ss:$0 sm:$0xff] }
 0x930   :  { %v2259_v19 = vmul.f32 0.5, %v2258_v1  ;;  %v2213_v50 = vpop.xlane.xlu2 %2212 }
 0x931   :  { %v2219_v8 = vmul.f32 %v2213_v50, %v5213_v14  ;;  %v2297_v49 = vmul.f32 %v6100_v61, %v2288_v35 }
 0x932   :  { %v2260_v0 = vsub.f32 1.5, %v2259_v19 }
 0x933   :  { %v4960_v63 = vpop.eup %4959  ;;  %v2225_v10 = vadd.f32 1e-05, %v2219_v8  ;;  %v6138_v57 = vadd.f32 %v6106_v23, %v2297_v49 }
 0x934   :  { %v2261_v5 = vmul.f32 %v4958_v39, %v2260_v0  ;;  %v2267_v29 = vmul.f32 %v4960_v63, %v2224_v60  ;;  %vm2273_vm12 = vweird.f32 %v4960_v63 }
 0x935   :  { %4961 = vrsqrt.f32 %v2225_v10  ;;  %vm2274_vm15 = vmor %vm2272_vm13, %vm2273_vm12  ;;  %vm2282_vm4 = vweird.f32 %v2225_v10 }
 0x936   :  { %v2265_v56 = vsel %vm2264_vm11, %v4958_v39, %v2261_v5  ;;  %v2268_v42 = vmul.f32 %v4960_v63, %v2267_v29 }
 0x937   :  { %v2289_v46 = vmul.f32 %v2265_v56, %v6066_v30  ;;  %v5087_v30 = vld [vmem:[%s7009_s1 + $0x10] sm:$0xff] }
 0x938   :  { %v2269_v34 = vmul.f32 0.5, %v2268_v42  ;;  %v2312_v4 = vadd.f32 %v5087_v30, %v6138_v57 }
 0x939   :  { %v2298_v51 = vmul.f32 %v6100_v61, %v2289_v46 }
 0x93a   :  { %v2270_v47 = vsub.f32 1.5, %v2269_v34 }
 0x93b   :  { %v4962_v52 = vpop.eup %4961  ;;  %v6141_v2 = vadd.f32 %v6106_v23, %v2298_v51 }
 0x93c   :  { %v2271_v17 = vmul.f32 %v4960_v63, %v2270_v47  ;;  %v2277_v40 = vmul.f32 %v4962_v52, %v2225_v10  ;;  %vm2283_vm3 = vweird.f32 %v4962_v52 }
 0x93d   :  { %v2389_v33 = vpack.c.bf16 %v6141_v2, %v6138_v57  ;;  %v2313_v15 = vadd.f32 %v5088_v31, %v6141_v2  ;;  %vm2284_vm5 = vmor %vm2282_vm4, %vm2283_vm3 }
 0x93e   :  { %v2275_v11 = vsel %vm2274_vm15, %v4960_v63, %v2271_v17  ;;  %v2278_v36 = vmul.f32 %v4962_v52, %v2277_v40 }
 0x93f   :  { %4509 = vmatmul.msk.bf16.gmra.mxu3 %vm84_vm0, %v2389_v33  ;;  %v2338_v37 = vpack.c.bf16 %v2313_v15, %v2312_v4  ;;  %v2290_v12 = vmul.f32 %v2275_v11, %v6072_v27 }
 0x940   :  { %v2279_v3 = vmul.f32 0.5, %v2278_v36 }
 0x941   :  { %4498 = vmatmul.msk.bf16.gmra.mxu2 %vm84_vm0, %v2338_v37  ;;  %v2299_v26 = vmul.f32 %v6100_v61, %v2290_v12 }
 0x942   :  { %v2280_v6 = vsub.f32 1.5, %v2279_v3 }
 0x943   :  { %v6160_v38 = vadd.f32 %v6106_v23, %v2299_v26 }
 0x944   :  { %v2281_v32 = vmul.f32 %v4962_v52, %v2280_v6 }
 0x945   :  { %v2314_v18 = vadd.f32 %v5089_v13, %v6160_v38 }
 0x946   :  { %v2285_v9 = vsel %vm2284_vm5, %v4962_v52, %v2281_v32 }
 0x947   :  { %v2291_v48 = vmul.f32 %v2285_v9, %v6078_v20  ;;  %v5090_v20 = vld [vmem:[%s7009_s1 + $0x28] sm:$0xff] }
 0x949   :  { %v2300_v44 = vmul.f32 %v6100_v61, %v2291_v48 }
 0x94b   :  { %v6163_v24 = vadd.f32 %v6106_v23, %v2300_v44 }
 0x94d   :  { %v2390_v27 = vpack.c.bf16 %v6163_v24, %v6160_v38  ;;  %v2315_v61 = vadd.f32 %v5090_v20, %v6163_v24 }
 0x94f   :  { %4510 = vmatmul.msk.bf16.gmra.mxu3 %vm84_vm0, %v2390_v27  ;;  %v2339_v21 = vpack.c.bf16 %v2315_v61, %v2314_v18 }
 0x951   :  { %4499 = vmatmul.msk.bf16.gmra.mxu2 %vm84_vm0, %v2339_v21 }
 0x994   :  { %v2424_v23 = vpop.f32.mrf.mxu3 }
 0x995   :  { %v2425_v43 = vadd.f32 %v4824_v16, %v2424_v23 }
 0x996   :  { %v2373_v62 = vpop.f32.mrf.mxu2 }
 0x997   :  { %v2583_v53 = vpack.c.bf16 %v2425_v43, %v2425_v43  ;;  %v2374_v35 = vadd.f32 %v4825_v7, %v2373_v62 }
 0x999   :  { %v6180_v54 = vunpack.c.l.b16 %v2583_v53  ;;  %v2499_v44 = vpack.c.bf16 %v2374_v35, %v2374_v35 }
 0x99b   :  { %v2610_v13 = vunpack.c.l.b16 %v2499_v44 }
 0x99c   :  { %v2426_v25 = vpop.f32.mrf.mxu3 }
 0x99d   :  { %v2427_v28 = vadd.f32 %v4824_v16, %v2426_v25 }
 0x99e   :  { %v2375_v41 = vpop.f32.mrf.mxu2 }
 0x99f   :  { %v2584_v55 = vpack.c.bf16 %v2427_v28, %v2427_v28  ;;  %v2376_v6 = vadd.f32 %v4825_v7, %v2375_v41 }
 0x9a1   :  { %v6182_v39 = vunpack.c.l.b16 %v2584_v55  ;;  %v2500_v48 = vpack.c.bf16 %v2376_v6, %v2376_v6 }
 0x9a3   :  { %v3293_v60 = vpack.c.b16 %v6182_v39, %v6180_v54  ;;  %v2611_v27 = vunpack.c.l.b16 %v2500_v48 }
 0x9a5   :  { %v6219_v18 = vpack.c.b16 %v2611_v27, %v2610_v13 }
 0x9c2   :  { %v2429_v1 = vpop.f32.mrf.mxu3 }
 0x9c3   :  { %v6189_v19 = vadd.f32 %v4824_v16, %v2429_v1 }
 0x9c4   :  { %v2378_v50 = vpop.f32.mrf.mxu2 }
 0x9c5   :  { %v2379_v8 = vadd.f32 %v4825_v7, %v2378_v50  ;;  %v6192_v0 = vpack.i.bf16 %v2425_v43, %v6189_v19 }
 0x9c7   :  { %v4723_v63 = vpack.i.bf16 %v2374_v35, %v2379_v8  ;;  %v2501_v1 = vpack.c.bf16 %v2379_v8, %v2379_v8 }
 0x9c9   :  { %4724 = vrot.lane.b32.xlu1 %v4723_v63, %s5092_s30  ;;  %v2612_v35 = vunpack.c.l.b16 %v2501_v1 }
 0x9ca   :  { %v2431_v10 = vpop.f32.mrf.mxu3 }
 0x9cb   :  { %v2432_v29 = vadd.f32 %v4824_v16, %v2431_v10 }
 0x9cc   :  { %v2380_v5 = vpop.f32.mrf.mxu2 }
 0x9cd   :  { %v2381_v49 = vadd.f32 %v4825_v7, %v2380_v5  ;;  %v2586_v34 = vpack.c.bf16 %v2432_v29, %v2432_v29 }
 0x9cf   :  { %v2502_v47 = vpack.c.bf16 %v2381_v49, %v2381_v49  ;;  %v6199_v30 = vunpack.c.l.b16 %v2586_v34 }
 0x9d1   :  { %v2652_v31 = vunpack.c.l.b16 %v2502_v47 }
 0x9d2   :  { %v2434_v56 = vpop.f32.mrf.mxu3 }
 0x9d3   :  { %v2435_v42 = vadd.f32 %v4824_v16, %v2434_v56 }
 0x9d4   :  { %v2383_v46 = vpop.f32.mrf.mxu2 }
 0x9d5   :  { %v2384_v51 = vadd.f32 %v4825_v7, %v2383_v46  ;;  %v2587_v52 = vpack.c.bf16 %v2435_v42, %v2435_v42  ;;  %v6195_v17 = vpack.i.bf16 %v2435_v42, %v2432_v29 }
 0x9d7   :  { %v6197_v40 = vpack.i.bf16 %v2384_v51, %v2381_v49  ;;  %v2503_v33 = vpack.c.bf16 %v2384_v51, %v2384_v51  ;;  %v6201_v4 = vunpack.c.l.b16 %v2587_v52 }
 0x9d9   :  { %4734 = vrot.lane.b32.xlu2 %v6197_v40, %s5092_s30  ;;  %v2653_v15 = vunpack.c.l.b16 %v2503_v33  ;;  %v3337_v36 = vpack.c.b16 %v6201_v4, %v6199_v30 }
 0x9da   :  { %v2436_v11 = vpop.f32.mrf.mxu3 }
 0x9db   :  { %v6207_v37 = vadd.f32 %v4824_v16, %v2436_v11  ;;  %v6209_v3 = vpack.c.b16 %v2653_v15, %v2652_v31 }
 0x9dc   :  { %v2385_v12 = vpop.f32.mrf.mxu2 }
 0x9dd   :  { %v2386_v32 = vadd.f32 %v4825_v7, %v2385_v12  ;;  %v6212_v26 = vpack.i.bf16 %v6207_v37, %v2427_v28  ;;  %v2588_v54 = vpack.c.bf16 %v6207_v37, %v6207_v37 }
 0x9df   :  { %v4743_v9 = vpack.i.bf16 %v2386_v32, %v2376_v6  ;;  %v2504_v20 = vpack.c.bf16 %v2386_v32, %v2386_v32 }
 0x9e1   :  { %4744 = vrot.lane.b32.xlu1 %v4743_v9, %s5095_s22  ;;  %4729 = vrot.lane.b32.xlu0 %v4743_v9, %s5092_s30  ;;  %v2654_v61 = vunpack.c.l.b16 %v2504_v20 }
 0x9e2   :  { %4749 = vrot.lane.b32.xlu2 %v4723_v63, %s5094_s3 }
 0x9e3   :  { %v6225_v21 = vpack.c.b16 %v2654_v61, %v2654_v61 }
 0x9e9   :  { %4754 = vrot.lane.b32.xlu1 %v4743_v9, %s5094_s3  ;;  %4739 = vrot.lane.b32.xlu0 %v4723_v63, %s5095_s22  ;;  %v6240_v63 = vpack.c.b16 %v2612_v35, %v2612_v35 }
 0x9f1   :  { %2615 = vrot.lane.b32.xlu1 %v6219_v18, %s5093_s21 }
 0x9f9   :  { %4764 = vrot.lane.b32.xlu1 %v6197_v40, %s5094_s3 }
 0xa01   :  { %2659 = vrot.lane.b32.xlu1 %v6225_v21, %s5093_s21 }
 0xa33   :  { %v4735_v23 = vpop.permute.xlu2 %4734 }
 0xa34   :  { %v4737_v12 = vunpack.i.h.bf16 %v4735_v23  ;;  %v4736_v6 = vunpack.i.l.bf16 %v4735_v23 }
 0xa36   :  { %v2509_v48 = vpack.c.bf16 %v4737_v12, %v4737_v12  ;;  %v2508_v44 = vpack.c.bf16 %v4736_v6, %v4736_v6 }
 0xa38   :  { %v2737_v61 = vunpack.c.l.b16 %v2509_v48 }
 0xa3b   :  { %v4725_v16 = vpop.permute.xlu1 %4724 }
 0xa3c   :  { %v4726_v43 = vunpack.i.l.bf16 %v4725_v16  ;;  %v6229_v25 = vpop.permute.xlu2 %4749  ;;  %v4727_v10 = vunpack.i.h.bf16 %v4725_v16  ;;  %v2736_v16 = vunpack.c.l.b16 %v2508_v44 }
 0xa3d   :  { %v4751_v28 = vunpack.i.l.bf16 %v6229_v25 }
 0xa3e   :  { %v2507_v53 = vpack.c.bf16 %v4726_v43, %v4726_v43  ;;  %v2505_v49 = vpack.c.bf16 %v4727_v10, %v4727_v10 }
 0xa3f   :  { %v2513_v55 = vpack.c.bf16 %v4751_v28, %v4751_v28 }
 0xa40   :  { %v2696_v62 = vunpack.c.l.b16 %v2507_v53  ;;  %v2694_v34 = vunpack.c.l.b16 %v2505_v49  ;;  %v4752_v49 = vunpack.i.h.bf16 %v6229_v25 }
 0xa41   :  { %v2780_v41 = vunpack.c.l.b16 %v2513_v55  ;;  %v6260_v55 = vpack.c.b16 %v2737_v61, %v2736_v16 }
 0xa42   :  { %v6232_v7 = vpack.c.b16 %v2696_v62, %v2696_v62 }
 0xa43   :  { %v6234_v50 = vpack.c.b16 %v2780_v41, %v2780_v41 }
 0xa44   :  { %2701 = vrot.lane.b32.xlu0 %v6232_v7, %s5093_s21 }
 0xa45   :  { %2785 = vrot.lane.b32.xlu1 %v6234_v50, %s5093_s21 }
 0xa4c   :  { %2617 = vrot.lane.b32.xlu0 %v6240_v63, %s5093_s21 }
 0xa53   :  { %v4745_v5 = vpop.permute.xlu1 %4744  ;;  %v4730_v29 = vpop.permute.xlu0 %4729 }
 0xa54   :  { %v4732_v56 = vunpack.i.h.bf16 %v4730_v29  ;;  %v4731_v8 = vunpack.i.l.bf16 %v4730_v29  ;;  %v4747_v20 = vunpack.i.h.bf16 %v4745_v5  ;;  %v4746_v28 = vunpack.i.l.bf16 %v4745_v5 }
 0xa56   :  { %v2510_v42 = vpack.c.bf16 %v4732_v56, %v4732_v56  ;;  %v2506_v46 = vpack.c.bf16 %v4731_v8, %v4731_v8  ;;  %v2522_v23 = vpack.c.bf16 %v4747_v20, %v4747_v20  ;;  %v2518_v41 = vpack.c.bf16 %v4746_v28, %v4746_v28 }
 0xa58   :  { %v2738_v51 = vunpack.c.l.b16 %v2510_v42  ;;  %v2695_v47 = vunpack.c.l.b16 %v2506_v46  ;;  %v2906_v1 = vunpack.c.l.b16 %v2522_v23  ;;  %v2863_v5 = vunpack.c.l.b16 %v2518_v41 }
 0xa5a   :  { %v6244_v52 = vpack.c.b16 %v2738_v51, %v2738_v51  ;;  %v6246_v33 = vpack.c.b16 %v2695_v47, %v2694_v34  ;;  %v6267_v56 = vpack.c.b16 %v2906_v1, %v2906_v1  ;;  %v2511_v47 = vpack.c.bf16 %v4752_v49, %v4752_v49 }
 0xa5b   :  { %v4755_v31 = vpop.permute.xlu1 %4754  ;;  %v4740_v15 = vpop.permute.xlu0 %4739 }
 0xa5c   :  { %v4741_v11 = vunpack.i.l.bf16 %v4740_v15  ;;  %2743 = vrot.lane.b32.xlu0 %v6244_v52, %s5093_s21  ;;  %2699 = vrot.lane.b32.xlu2 %v6246_v33, %s5093_s21  ;;  %v4742_v43 = vunpack.i.h.bf16 %v4740_v15  ;;  %v4756_v35 = vunpack.i.l.bf16 %v4755_v31  ;;  %v4757_v25 = vunpack.i.h.bf16 %v4755_v31 }
 0xa5e   :  { %v2519_v32 = vpack.c.bf16 %v4741_v11, %v4741_v11  ;;  %v2517_v53 = vpack.c.bf16 %v4742_v43, %v4742_v43  ;;  %v2512_v8 = vpack.c.bf16 %v4756_v35, %v4756_v35 }
 0xa60   :  { %v2864_v9 = vunpack.c.l.b16 %v2519_v32  ;;  %v2779_v11 = vunpack.c.l.b16 %v2512_v8  ;;  %v2778_v32 = vunpack.c.l.b16 %v2511_v47 }
 0xa62   :  { %v6252_v27 = vpack.c.b16 %v2864_v9, %v2864_v9  ;;  %v2516_v9 = vpack.c.bf16 %v4757_v25, %v4757_v25  ;;  %v6276_v48 = vpack.c.b16 %v2779_v11, %v2778_v32 }
 0xa63   :  { %v6254_v13 = vpop.permute.xlu1 %2615 }
 0xa64   :  { %2869 = vrot.lane.b32.xlu0 %v6252_v27, %s5093_s21  ;;  %4759 = vrot.lane.b32.xlu2 %v6197_v40, %s5095_s22  ;;  %v2862_v40 = vunpack.c.l.b16 %v2517_v53  ;;  %v2822_v20 = vunpack.c.l.b16 %v2516_v9 }
 0xa66   :  { %v6269_v34 = vpack.c.b16 %v2863_v5, %v2862_v40  ;;  %v6284_v61 = vpack.c.b16 %v2822_v20, %v2822_v20 }
 0xa6b   :  { %v4765_v62 = vpop.permute.xlu1 %4764 }
 0xa6c   :  { %2741 = vrot.lane.b32.xlu2 %v6260_v55, %s5093_s21  ;;  %2657 = vrot.lane.b32.xlu0 %v6209_v3, %s5093_s21  ;;  %v4767_v10 = vunpack.i.h.bf16 %v4765_v62  ;;  %v4766_v29 = vunpack.i.l.bf16 %v4765_v62 }
 0xa6e   :  { %v2515_v42 = vpack.c.bf16 %v4767_v10, %v4767_v10  ;;  %v2514_v46 = vpack.c.bf16 %v4766_v29, %v4766_v29 }
 0xa70   :  { %v2821_v12 = vunpack.c.l.b16 %v2515_v42  ;;  %v2820_v6 = vunpack.c.l.b16 %v2514_v46  ;;  %v2626_v42 = vsel %vm565_vm14, %v6254_v13, 0 }
 0xa72   :  { %v6278_v44 = vpack.c.b16 %v2821_v12, %v2820_v6 }
 0xa73   :  { %v2660_v51 = vpop.permute.xlu1 %2659 }
 0xa74   :  { %v2671_v15 = vsel %vm565_vm14, %v2660_v51, 0  ;;  %2867 = vrot.lane.b32.xlu2 %v6269_v34, %s5093_s21  ;;  %2911 = vrot.lane.b32.xlu0 %v6267_v56, %s5093_s21  ;;  %v2585_v51 = vpack.c.bf16 %v6189_v19, %v6189_v19 }
 0xa75   :  { %2679 = vmatpush.bf16.xpose.msra.mxu1 %v2671_v15 }
 0xa7c   :  { %2783 = vrot.lane.b32.xlu2 %v6276_v48, %s5093_s21  ;;  %2825 = vrot.lane.b32.xlu0 %v6278_v44, %s5093_s21 }
 0xa84   :  { %2827 = vrot.lane.b32.xlu2 %v6284_v61, %s5093_s21  ;;  %4774 = vrot.lane.b32.xlu0 %v6212_v26, %s5092_s30 }
 0xa8c   :  { %4779 = vrot.lane.b32.xlu2 %v6195_v17, %s5092_s30  ;;  %4784 = vrot.lane.b32.xlu0 %v6192_v0, %s5095_s22 }
 0xa94   :  { %4789 = vrot.lane.b32.xlu2 %v6192_v0, %s5094_s3 }
 0xab6   :  { %v2702_v31 = vpop.permute.xlu0 %2701  ;;  %v2700_v16 = vpop.permute.xlu2 %2699 }
 0xab7   :  { %v2713_v43 = vsel %vm565_vm14, %v2702_v31, 0  ;;  %v2710_v53 = vsel %vm565_vm14, %v2700_v16, 0  ;;  %v2786_v49 = vpop.permute.xlu1 %2785 }
 0xab8   :  { %2721 = vmatpush.bf16.xpose.msra.mxu2 %v2713_v43  ;;  %v2797_v46 = vsel %vm565_vm14, %v2786_v49, 0 }
 0xabe   :  { %v2618_v28 = vpop.permute.xlu0 %2617  ;;  %v4760_v23 = vpop.permute.xlu2 %4759 }
 0xabf   :  { %v2629_v62 = vsel %vm565_vm14, %v2618_v28, 0  ;;  %v4762_v41 = vunpack.i.h.bf16 %v4760_v23  ;;  %v4761_v1 = vunpack.i.l.bf16 %v4760_v23 }
 0xac0   :  { %2637 = vmatpush.bf16.xpose.msra.mxu0 %v2629_v62  ;;  %2722 = vmatpush.bf16.xpose.msra.mxu2 %v2710_v53 }
 0xac1   :  { %v2521_v35 = vpack.c.bf16 %v4762_v41, %v4762_v41  ;;  %v2520_v40 = vpack.c.bf16 %v4761_v1, %v4761_v1 }
 0xac3   :  { %v2905_v10 = vunpack.c.l.b16 %v2521_v35  ;;  %v2904_v29 = vunpack.c.l.b16 %v2520_v40 }
 0xac5   :  { %v6299_v5 = vpack.c.b16 %v2905_v10, %v2904_v29 }
 0xac6   :  { %v2742_v8 = vpop.permute.xlu2 %2741 }
 0xac7   :  { %4515 = vmatmul.msk.bf16.vlgmr.msra.gmra.mxu2 %vm565_vm14, %v6246_v33  ;;  %2909 = vrot.lane.b32.xlu1 %v6299_v5, %s5093_s21  ;;  %v3292_v33 = vunpack.c.l.b16 %v2585_v51  ;;  %v2752_v6 = vsel %vm565_vm14, %v2742_v8, 0 }
 0xac8   :  { %2638 = vmatpush.bf16.xpose.msra.mxu0 %v2626_v42 }
 0xac9   :  { %v3294_v13 = vpack.c.b16 %v3292_v33, %v3292_v33 }
 0xace   :  { %v2744_v47 = vpop.permute.xlu0 %2743  ;;  %v2868_v15 = vpop.permute.xlu2 %2867 }
 0xacf   :  { %v2755_v25 = vsel %vm565_vm14, %v2744_v47, 0  ;;  %4511 = vmatmul.msk.bf16.vlgmr.msra.gmra.mxu0 %vm565_vm14, %v6219_v18  ;;  %4769 = vrot.lane.b32.xlu1 %v6192_v0, %s5092_s30  ;;  %v3303_v18 = vsel %vm1250_vm1, %v3294_v13, 0 }
 0xad0   :  { %2805 = vmatpush.bf16.xpose.msrb.mxu0 %v2797_v46  ;;  %2763 = vmatpush.bf16.xpose.msra.mxu3 %v2755_v25 }
 0xad6   :  { %v2870_v11 = vpop.permute.xlu0 %2869  ;;  %v2784_v12 = vpop.permute.xlu2 %2783 }
 0xad7   :  { %v2881_v32 = vsel %vm565_vm14, %v2870_v11, 0  ;;  %v2794_v19 = vsel %vm565_vm14, %v2784_v12, 0  ;;  %4516 = vmatmul.msk.bf16.gmra.mxu2 %vm565_vm14, %v6232_v7  ;;  %v2878_v7 = vsel %vm565_vm14, %v2868_v15, 0 }
 0xad8   :  { %2764 = vmatpush.bf16.xpose.msra.mxu3 %v2752_v6  ;;  %2806 = vmatpush.bf16.xpose.msrb.mxu0 %v2794_v19 }
 0xad9   :  { %2889 = vmatpush.bf16.xpose.msrb.mxu2 %v2881_v32 }
 0xade   :  { %v2828_v0 = vpop.permute.xlu2 %2827  ;;  %v2658_v9 = vpop.permute.xlu0 %2657 }
 0xadf   :  { %v2839_v20 = vsel %vm565_vm14, %v2828_v0, 0  ;;  %v2668_v31 = vsel %vm565_vm14, %v2658_v9, 0  ;;  %4512 = vmatmul.msk.bf16.gmra.mxu0 %vm565_vm14, %v6240_v63  ;;  %4517 = vmatmul.msk.bf16.vlgmr.msra.gmra.mxu3 %vm565_vm14, %v6260_v55  ;;  %v3336_v63 = vunpack.c.l.b16 %v2588_v54 }
 0xae0   :  { %3311 = vmatpush.bf16.msra.mxu0 %v3303_v18  ;;  %2680 = vmatpush.bf16.xpose.msra.mxu1 %v2668_v31 }
 0xae1   :  { %2890 = vmatpush.bf16.xpose.msrb.mxu2 %v2878_v7  ;;  %v3338_v55 = vpack.c.b16 %v3336_v63, %v3336_v63 }
 0xae4   :  { %3312 = vmatpush.bf16.msra.mxu0 %v3293_v60 }
 0xae6   :  { %v4780_v39 = vpop.permute.xlu2 %4779  ;;  %v2912_v60 = vpop.permute.xlu0 %2911 }
 0xae7   :  { %v2923_v16 = vsel %vm565_vm14, %v2912_v60, 0  ;;  %4513 = vmatmul.msk.bf16.vlgmr.msra.gmra.mxu1 %vm565_vm14, %v6209_v3  ;;  %v3347_v3 = vsel %vm1250_vm1, %v3338_v55, 0 }
 0xae8   :  { %2847 = vmatpush.bf16.xpose.msrb.mxu1 %v2839_v20  ;;  %4523 = vmatmul.msk.bf16.vlgmr.msrb.gmra.mxu2 %vm565_vm14, %v6269_v34 }
 0xae9   :  { %2931 = vmatpush.bf16.xpose.msrb.mxu3 %v2923_v16 }
 0xaee   :  { %v6338_v43 = vpop.permute.xlu2 %4789  ;;  %v2826_v28 = vpop.permute.xlu0 %2825 }
 0xaef   :  { %v4791_v23 = vunpack.i.l.bf16 %v6338_v43  ;;  %v2836_v37 = vsel %vm565_vm14, %v2826_v28, 0  ;;  %4518 = vmatmul.msk.bf16.gmra.mxu3 %vm565_vm14, %v6244_v52  ;;  %4519 = vmatmul.msk.bf16.vlgmr.msrb.gmra.mxu0 %vm565_vm14, %v6276_v48  ;;  %v4782_v52 = vunpack.i.h.bf16 %v4780_v39 }
 0xaf0   :  { %2848 = vmatpush.bf16.xpose.msrb.mxu1 %v2836_v37 }
 0xaf1   :  { %v2597_v34 = vpack.c.bf16 %v4791_v23, %v4791_v23  ;;  %v2593_v1 = vpack.c.bf16 %v4782_v52, %v4782_v52 }
 0xaf3   :  { %v3468_v53 = vunpack.c.l.b16 %v2597_v34  ;;  %v3423_v10 = vunpack.c.l.b16 %v2593_v1 }
 0xaf5   :  { %v3470_v62 = vpack.c.b16 %v3468_v53, %v3468_v53 }
 0xaf6   :  { %v4775_v30 = vpop.permute.xlu0 %4774 }
 0xaf7   :  { %4514 = vmatmul.msk.bf16.gmra.mxu1 %vm565_vm14, %v6225_v21  ;;  %v3479_v41 = vsel %vm1250_vm1, %v3470_v62, 0  ;;  %v4777_v4 = vunpack.i.h.bf16 %v4775_v30  ;;  %v4781_v21 = vunpack.i.l.bf16 %v4780_v39  ;;  %v4776_v47 = vunpack.i.l.bf16 %v4775_v30 }
 0xaf8   :  { %3355 = vmatpush.bf16.msra.mxu1 %v3347_v3  ;;  %4524 = vmatmul.msk.bf16.gmra.mxu2 %vm565_vm14, %v6252_v27 }
 0xaf9   :  { %3487 = vmatpush.bf16.msrb.mxu0 %v3479_v41  ;;  %v2592_v35 = vpack.c.bf16 %v4781_v21, %v4781_v21  ;;  %v2590_v11 = vpack.c.bf16 %v4776_v47, %v4776_v47 }
 0xafb   :  { %v3422_v29 = vunpack.c.l.b16 %v2592_v35  ;;  %v3379_v0 = vunpack.c.l.b16 %v2590_v11 }
 0xafc   :  { %3356 = vmatpush.bf16.msra.mxu1 %v3337_v36  ;;  %v2594_v36 = vpack.c.bf16 %v4777_v4, %v4777_v4 }
 0xafe   :  { %v3424_v48 = vunpack.c.l.b16 %v2594_v36  ;;  %v6363_v49 = vpop.permute.xlu0 %4784 }
 0xaff   :  { %4520 = vmatmul.msk.bf16.gmra.mxu0 %vm565_vm14, %v6234_v50  ;;  %v4786_v8 = vunpack.i.l.bf16 %v6363_v49 }
 0xb00   :  { %v3426_v40 = vpack.c.b16 %v3424_v48, %v3424_v48 }
 0xb01   :  { %v2603_v15 = vpack.c.bf16 %v4786_v8, %v4786_v8 }
 0xb03   :  { %v3556_v12 = vunpack.c.l.b16 %v2603_v15 }
 0xb05   :  { %v3558_v9 = vpack.c.b16 %v3556_v12, %v3556_v12 }
 0xb07   :  { %4521 = vmatmul.msk.bf16.vlgmr.msrb.gmra.mxu1 %vm565_vm14, %v6278_v44  ;;  %v3435_v44 = vsel %vm1250_vm1, %v3426_v40, 0  ;;  %v3567_v54 = vsel %vm1250_vm1, %v3558_v9, 0 }
 0xb17   :  { %4522 = vmatmul.msk.bf16.gmra.mxu1 %vm565_vm14, %v6284_v61  ;;  %v3425_v61 = vpack.c.b16 %v3423_v10, %v3422_v29 }
 0xb39   :  { %v2910_v27 = vpop.permute.xlu1 %2909 }
 0xb3a   :  { %v2920_v50 = vsel %vm565_vm14, %v2910_v27, 0 }
 0xb3b   :  { %2932 = vmatpush.bf16.xpose.msrb.mxu3 %v2920_v50 }
 0xb41   :  { %v4770_v42 = vpop.permute.xlu1 %4769 }
 0xb42   :  { %v4772_v46 = vunpack.i.h.bf16 %v4770_v42  ;;  %v4771_v51 = vunpack.i.l.bf16 %v4770_v42  ;;  %4525 = vmatmul.msk.bf16.vlgmr.msrb.gmra.mxu3 %vm565_vm14, %v6299_v5 }
 0xb43   :  { %3443 = vmatpush.bf16.msra.mxu3 %v3435_v44 }
 0xb44   :  { %v2591_v25 = vpack.c.bf16 %v4771_v51, %v4771_v51  ;;  %v2589_v33 = vpack.c.bf16 %v4772_v46, %v4772_v46 }
 0xb46   :  { %v3380_v13 = vunpack.c.l.b16 %v2591_v25  ;;  %v3378_v32 = vunpack.c.l.b16 %v2589_v33 }
 0xb47   :  { %3444 = vmatpush.bf16.msra.mxu3 %v3425_v61 }
 0xb48   :  { %v3382_v6 = vpack.c.b16 %v3380_v13, %v3380_v13  ;;  %v3381_v7 = vpack.c.b16 %v3379_v0, %v3378_v32 }
 0xb4a   :  { %v6368_v19 = vpop.f32.mrf.mxu2  ;;  %v3391_v18 = vsel %vm1250_vm1, %v3382_v6, 0 }
 0xb4b   :  { %3399 = vmatpush.bf16.msra.mxu2 %v3391_v18  ;;  %v2949_v0 = vmul.f32 2.828427, %v6368_v19 }
 0xb4c   :  { %v2640_v20 = vpop.f32.mrf.mxu0 }
 0xb4d   :  { %v2943_v31 = vmul.f32 2.828427, %v2640_v20 }
 0xb4f   :  { %v6372_v5 = vadd.f32 %v2943_v31, %v5446_v58  ;;  %3400 = vmatpush.bf16.msra.mxu2 %v3381_v7 }
 0xb51   :  { %v2991_v39 = vsel %vm938_vm2, %v6372_v5, -inf }
 0xb52   :  { %v2726_v60 = vpop.f32.mrf.mxu2  ;;  %2992 = vmax.xlane.f32.xlu0 %v2991_v39  ;;  %4526 = vmatmul.msk.bf16.gmra.mxu3 %vm565_vm14, %v6267_v56 }
 0xb53   :  { %3575 = vmatpush.bf16.msrb.mxu2 %v3567_v54  ;;  %v2950_v47 = vmul.f32 2.828427, %v2726_v60  ;;  %v6431_v60 = vadd.f32 %v2949_v0, %v5446_v58 }
 0xb54   :  { %v2642_v16 = vpop.f32.mrf.mxu0 }
 0xb55   :  { %v2944_v63 = vmul.f32 2.828427, %v2642_v16  ;;  %v6420_v32 = vadd.f32 %v2950_v47, %v5446_v58 }
 0xb57   :  { %v6380_v55 = vadd.f32 %v2944_v63, %v5446_v58  ;;  %v3012_v20 = vsel %vm938_vm2, %v6420_v32, -inf }
 0xb59   :  { %v2994_v28 = vsel %vm938_vm2, %v6380_v55, -inf }
 0xb5a   :  { %v6384_v23 = vpop.f32.mrf.mxu2  ;;  %2995 = vmax.xlane.f32.xlu1 %v2994_v28  ;;  %v3009_v28 = vsel %vm938_vm2, %v6431_v60, -inf }
 0xb5c   :  { %v2645_v37 = vpop.f32.mrf.mxu0 }
 0xb5d   :  { %v2945_v3 = vmul.f32 2.828427, %v2645_v37 }
 0xb5f   :  { %v6387_v34 = vadd.f32 %v2945_v3, %v5446_v58 }
 0xb61   :  { %v2997_v53 = vsel %vm938_vm2, %v6387_v34, -inf }
 0xb62   :  { %v2731_v56 = vpop.f32.mrf.mxu2  ;;  %v2766_v62 = vpop.f32.mrf.mxu3  ;;  %2998 = vmax.xlane.f32.xlu0 %v2997_v53 }
 0xb63   :  { %v2952_v53 = vmul.f32 2.828427, %v2766_v62 }
 0xb64   :  { %v2647_v41 = vpop.f32.mrf.mxu0  ;;  %v2682_v30 = vpop.f32.mrf.mxu1 }
 0xb65   :  { %v2946_v4 = vmul.f32 2.828427, %v2682_v30  ;;  %v6448_v30 = vadd.f32 %v2952_v53, %v5475_v22 }
 0xb67   :  { %v6392_v36 = vadd.f32 %v2946_v4, %v5475_v22  ;;  %v3018_v4 = vsel %vm938_vm2, %v6448_v30, -inf }
 0xb69   :  { %v3000_v52 = vsel %vm938_vm2, %v6392_v36, -inf }
 0xb6a   :  { %v6396_v21 = vpop.f32.mrf.mxu3  ;;  %3001 = vmax.xlane.f32.xlu0 %v3000_v52 }
 0xb6b   :  { %v6398_v48 = vpop.f32.mrf.mxu2 }
 0xb6c   :  { %v2684_v1 = vpop.f32.mrf.mxu1  ;;  %v2808_v35 = vpop.f32.mrf.mxu0 }
 0xb6d   :  { %v2947_v40 = vmul.f32 2.828427, %v2684_v1  ;;  %v2955_v15 = vmul.f32 2.828427, %v2808_v35 }
 0xb6f   :  { %v6401_v27 = vadd.f32 %v2947_v40, %v5475_v22  ;;  %v6423_v18 = vadd.f32 %v2955_v15, %v5446_v58 }
 0xb71   :  { %v3003_v10 = vsel %vm938_vm2, %v6401_v27, -inf  ;;  %v3027_v31 = vsel %vm938_vm2, %v6423_v18, -inf }
 0xb72   :  { %v6405_v29 = vpop.f32.mrf.mxu3  ;;  %3004 = vmax.xlane.f32.xlu1 %v3003_v10 }
 0xb73   :  { %v2894_v50 = vpop.f32.mrf.mxu2 }
 0xb74   :  { %v2687_v44 = vpop.f32.mrf.mxu1  ;;  %v2810_v61 = vpop.f32.mrf.mxu0  ;;  %v2962_v47 = vmul.f32 2.828427, %v2894_v50 }
 0xb75   :  { %v2948_v8 = vmul.f32 2.828427, %v2687_v44  ;;  %v2956_v42 = vmul.f32 2.828427, %v2810_v61 }
 0xb77   :  { %v6408_v46 = vadd.f32 %v2956_v42, %v5446_v58  ;;  %v6411_v51 = vadd.f32 %v2948_v8, %v5475_v22 }
 0xb79   :  { %v3030_v25 = vsel %vm938_vm2, %v6408_v46, -inf  ;;  %v3006_v33 = vsel %vm938_vm2, %v6411_v51, -inf }
 0xb7a   :  { %v2773_v13 = vpop.f32.mrf.mxu3  ;;  %3031 = vmax.xlane.f32.xlu2 %v3030_v25  ;;  %3007 = vmax.xlane.f32.xlu1 %v3006_v33  ;;  %v6463_v25 = vadd.f32 %v2962_v47, %v5446_v58 }
 0xb7b   :  { %v6417_v11 = vpop.f32.mrf.mxu2 }
 0xb7c   :  { %v2689_v12 = vpop.f32.mrf.mxu1  ;;  %v2813_v6 = vpop.f32.mrf.mxu0  ;;  %v3048_v0 = vsel %vm938_vm2, %v6463_v25, -inf }
 0xb7d   :  { %v2957_v9 = vmul.f32 2.828427, %v2813_v6  ;;  %v2954_v6 = vmul.f32 2.828427, %v6405_v29 }
 0xb7f   :  { %v6434_v16 = vadd.f32 %v2957_v9, %v5446_v58 }
 0xb81   :  { %v3033_v19 = vsel %vm938_vm2, %v6434_v16, -inf }
 0xb82   :  { %3013 = vmax.xlane.f32.xlu2 %v3012_v20  ;;  %3028 = vmax.xlane.f32.xlu1 %v3027_v31  ;;  %v6480_v31 = vadd.f32 %v2954_v6, %v5475_v22  ;;  %v2953_v6 = vmul.f32 2.828427, %v6396_v21 }
 0xb83   :  { %v2899_v7 = vpop.f32.mrf.mxu2 }
 0xb84   :  { %v2815_v54 = vpop.f32.mrf.mxu0  ;;  %v2850_v39 = vpop.f32.mrf.mxu1  ;;  %v3024_v7 = vsel %vm938_vm2, %v6480_v31, -inf }
 0xb85   :  { %v2958_v63 = vmul.f32 2.828427, %v2850_v39 }
 0xb87   :  { %v6441_v3 = vadd.f32 %v2958_v63, %v5475_v22 }
 0xb89   :  { %v3036_v56 = vsel %vm938_vm2, %v6441_v3, -inf }
 0xb8a   :  { %3034 = vmax.xlane.f32.xlu2 %v3033_v19  ;;  %3010 = vmax.xlane.f32.xlu1 %v3009_v28 }
 0xb8c   :  { %v2852_v37 = vpop.f32.mrf.mxu1 }
 0xb92   :  { %3037 = vmax.xlane.f32.xlu1 %v3036_v56 }
 0xb94   :  { %v6445_v41 = vpop.f32.mrf.mxu1 }
 0xb9a   :  { %3019 = vmax.xlane.f32.xlu1 %v3018_v4  ;;  %v2959_v4 = vmul.f32 2.828427, %v2852_v37 }
 0xb9c   :  { %v2857_v52 = vpop.f32.mrf.mxu1 }
 0xbb3   :  { %4794 = vrot.lane.b32.xlu1 %v6212_v26, %s5095_s22 }
 0xbc5   :  { %v2934_v1 = vpop.f32.mrf.mxu3  ;;  %v2993_v35 = vpop.xlane.xlu0 %2992 }
 0xbc6   :  { %v3063_v62 = vsub.f32 %v6372_v5, %v2993_v35 }
 0xbc8   :  { %v3087_v40 = vmul.f32 1.442695, %v3063_v62  ;;  %v6498_v62 = vadd.f32 %v2959_v4, %v5475_v22  ;;  %v2963_v4 = vmul.f32 2.828427, %v6417_v11 }
 0xbca   :  { %4963 = vpow2.f32 %v3087_v40  ;;  %v3039_v37 = vsel %vm938_vm2, %v6498_v62, -inf }
 0xbcd   :  { %v2996_v10 = vpop.xlane.xlu1 %2995  ;;  %v6455_v44 = vpop.f32.mrf.mxu3 }
 0xbce   :  { %v3064_v61 = vsub.f32 %v6380_v55, %v2996_v10  ;;  %v2951_v55 = vmul.f32 2.828427, %v6384_v23  ;;  %v2964_v23 = vmul.f32 2.828427, %v2934_v1 }
 0xbd0   :  { %v6458_v8 = vpop.eup %4963  ;;  %v3089_v42 = vmul.f32 1.442695, %v3064_v61  ;;  %v6477_v20 = vadd.f32 %v2951_v55, %v5446_v58  ;;  %v6487_v54 = vadd.f32 %v2964_v23, %v5475_v22 }
 0xbd1   :  { %v3135_v15 = vsel %vm938_vm2, %v6458_v8, 0.0 }
 0xbd2   :  { %4965 = vpow2.f32 %v3089_v42  ;;  %3136 = vadd.xlane.f32.xlu0 %v3135_v15  ;;  %v3015_v29 = vsel %vm938_vm2, %v6477_v20, -inf  ;;  %v3054_v52 = vsel %vm938_vm2, %v6487_v54, -inf }
 0xbd5   :  { %v6465_v5 = vpop.f32.mrf.mxu3  ;;  %v2999_v33 = vpop.xlane.xlu0 %2998 }
 0xbd6   :  { %v3065_v12 = vsub.f32 %v6387_v34, %v2999_v33 }
 0xbd8   :  { %v6467_v13 = vpop.eup %4965  ;;  %v3091_v9 = vmul.f32 1.442695, %v3065_v12 }
 0xbd9   :  { %v3138_v50 = vsel %vm938_vm2, %v6467_v13, 0.0 }
 0xbda   :  { %3139 = vadd.xlane.f32.xlu2 %v3138_v50  ;;  %3049 = vmax.xlane.f32.xlu0 %v3048_v0  ;;  %4967 = vpow2.f32 %v3091_v9  ;;  %v6517_v9 = vadd.f32 %v2953_v6, %v5475_v22 }
 0xbdd   :  { %v2941_v34 = vpop.f32.mrf.mxu3  ;;  %v3002_v39 = vpop.xlane.xlu0 %3001 }
 0xbde   :  { %v3066_v53 = vsub.f32 %v6392_v36, %v3002_v39 }
 0xbe0   :  { %v6489_v19 = vpop.eup %4967  ;;  %v3093_v35 = vmul.f32 1.442695, %v3066_v53 }
 0xbe1   :  { %v3141_v1 = vsel %vm938_vm2, %v6489_v19, 0.0 }
 0xbe2   :  { %3016 = vmax.xlane.f32.xlu2 %v3015_v29  ;;  %3025 = vmax.xlane.f32.xlu0 %v3024_v7 }
 0xbe5   :  { %v3005_v63 = vpop.xlane.xlu1 %3004 }
 0xbe6   :  { %v3067_v28 = vsub.f32 %v6401_v27, %v3005_v63 }
 0xbe8   :  { %v3095_v56 = vmul.f32 1.442695, %v3067_v28 }
 0xbea   :  { %4969 = vpow2.f32 %v3095_v56  ;;  %3055 = vmax.xlane.f32.xlu0 %v3054_v52  ;;  %3142 = vadd.xlane.f32.xlu2 %v3141_v1 }
 0xbeb   :  { %4971 = vpow2.f32 %v3093_v35  ;;  %v2965_v35 = vmul.f32 2.828427, %v6455_v44 }
 0xbed   :  { %v3032_v40 = vpop.xlane.xlu2 %3031  ;;  %v6500_v10 = vpop.xlane.xlu1 %3007 }
 0xbee   :  { %v3076_v50 = vsub.f32 %v6408_v46, %v3032_v40  ;;  %v3021_v46 = vsel %vm938_vm2, %v6517_v9, -inf }
 0xbf0   :  { %v6502_v27 = vpop.eup %4969  ;;  %v3113_v34 = vmul.f32 1.442695, %v3076_v50 }
 0xbf1   :  { %v3147_v36 = vsel %vm938_vm2, %v6502_v27, 0.0  ;;  %v6508_v47 = vpop.eup %4971 }
 0xbf2   :  { %3148 = vadd.xlane.f32.xlu1 %v3147_v36  ;;  %3040 = vmax.xlane.f32.xlu2 %v3039_v37  ;;  %v3144_v0 = vsel %vm938_vm2, %v6508_v47, 0.0  ;;  %v6553_v36 = vadd.f32 %v2965_v35, %v5475_v22 }
 0xbf5   :  { %v3014_v61 = vpop.xlane.xlu2 %3013  ;;  %v3029_v42 = vpop.xlane.xlu1 %3028 }
 0xbf6   :  { %v3070_v15 = vsub.f32 %v6420_v32, %v3014_v61  ;;  %v3075_v33 = vsub.f32 %v6423_v18, %v3029_v42  ;;  %v2961_v18 = vmul.f32 2.828427, %v6398_v48  ;;  %v2960_v48 = vmul.f32 2.828427, %v6445_v41 }
 0xbf7   :  { %v6547_v41 = vadd.f32 %v2963_v4, %v5446_v58  ;;  %v2966_v61 = vmul.f32 2.828427, %v6465_v5  ;;  %v3057_v42 = vsel %vm938_vm2, %v6553_v36, -inf }
 0xbf8   :  { %v3101_v12 = vmul.f32 1.442695, %v3070_v15  ;;  %v3111_v55 = vmul.f32 1.442695, %v3075_v33  ;;  %v6531_v7 = vadd.f32 %v2961_v18, %v5446_v58  ;;  %v6541_v56 = vadd.f32 %v2960_v48, %v5475_v22 }
 0xbf9   :  { %v3051_v40 = vsel %vm938_vm2, %v6547_v41, -inf  ;;  %v4787_v58 = vunpack.i.h.bf16 %v6363_v49  ;;  %v6561_v44 = vadd.f32 %v2966_v61, %v5475_v22 }
 0xbfa   :  { %4973 = vpow2.f32 %v3101_v12  ;;  %3145 = vadd.xlane.f32.xlu2 %v3144_v0  ;;  %v3045_v28 = vsel %vm938_vm2, %v6531_v7, -inf  ;;  %v3042_v52 = vsel %vm938_vm2, %v6541_v56, -inf }
 0xbfb   :  { %4975 = vpow2.f32 %v3111_v55  ;;  %v2601_v12 = vpack.c.bf16 %v4787_v58, %v4787_v58  ;;  %v3060_v5 = vsel %vm938_vm2, %v6561_v44, -inf }
 0xbfc   :  { %4977 = vpow2.f32 %v3113_v34 }
 0xbfd   :  { %v3011_v63 = vpop.xlane.xlu1 %3010  ;;  %v3554_v34 = vunpack.c.l.b16 %v2601_v12 }
 0xbfe   :  { %v3069_v11 = vsub.f32 %v6431_v60, %v3011_v63 }
 0xc00   :  { %v6519_v23 = vpop.eup %4973  ;;  %v3099_v15 = vmul.f32 1.442695, %v3069_v11 }
 0xc01   :  { %v6521_v32 = vpop.eup %4975  ;;  %v3156_v21 = vsel %vm938_vm2, %v6519_v23, 0.0 }
 0xc02   :  { %v3171_v29 = vsel %vm938_vm2, %v6521_v32, 0.0  ;;  %3157 = vadd.xlane.f32.xlu0 %v3156_v21  ;;  %3022 = vmax.xlane.f32.xlu2 %v3021_v46  ;;  %v6533_v39 = vpop.eup %4977  ;;  %4979 = vpow2.f32 %v3099_v15 }
 0xc03   :  { %3172 = vadd.xlane.f32.xlu1 %v3171_v29  ;;  %v3174_v53 = vsel %vm938_vm2, %v6533_v39, 0.0 }
 0xc05   :  { %v3038_v1 = vpop.xlane.xlu1 %3037 }
 0xc08   :  { %v6566_v29 = vpop.eup %4979 }
 0xc0a   :  { %3046 = vmax.xlane.f32.xlu2 %v3045_v28 }
 0xc0b   :  { %3175 = vadd.xlane.f32.xlu1 %v3174_v53  ;;  %v3035_v53 = vpop.xlane.xlu2 %3034 }
 0xc0d   :  { %v3020_v37 = vpop.xlane.xlu1 %3019 }
 0xc0e   :  { %v3072_v50 = vsub.f32 %v6448_v30, %v3020_v37  ;;  %v3153_v30 = vsel %vm938_vm2, %v6566_v29, 0.0 }
 0xc10   :  { %v3105_v21 = vmul.f32 1.442695, %v3072_v50 }
 0xc12   :  { %3043 = vmax.xlane.f32.xlu2 %v3042_v52  ;;  %4981 = vpow2.f32 %v3105_v21 }
 0xc18   :  { %v6571_v63 = vpop.eup %4981 }
 0xc19   :  { %v3162_v28 = vsel %vm938_vm2, %v6571_v63, 0.0 }
 0xc1a   :  { %3052 = vmax.xlane.f32.xlu2 %v3051_v40 }
 0xc22   :  { %3058 = vmax.xlane.f32.xlu2 %v3057_v42 }
 0xc25   :  { %v4795_v33 = vpop.permute.xlu1 %4794 }
 0xc26   :  { %v4797_v55 = vunpack.i.h.bf16 %v4795_v33  ;;  %v4796_v6 = vunpack.i.l.bf16 %v4795_v33  ;;  %v3078_v33 = vsub.f32 %v6441_v3, %v3038_v1 }
 0xc28   :  { %v2606_v60 = vpack.c.bf16 %v4797_v55, %v4797_v55  ;;  %v2602_v0 = vpack.c.bf16 %v4796_v6, %v4796_v6 }
 0xc2a   :  { %v3600_v18 = vunpack.c.l.b16 %v2606_v60  ;;  %v3555_v49 = vunpack.c.l.b16 %v2602_v0  ;;  %3061 = vmax.xlane.f32.xlu2 %v3060_v5  ;;  %v3117_v60 = vmul.f32 1.442695, %v3078_v33 }
 0xc2c   :  { %v3602_v46 = vpack.c.b16 %v3600_v18, %v3600_v18  ;;  %v3557_v22 = vpack.c.b16 %v3555_v49, %v3554_v34  ;;  %v3068_v18 = vsub.f32 %v6411_v51, %v6500_v10 }
 0xc2e   :  { %3576 = vmatpush.bf16.msrb.mxu2 %v3557_v22  ;;  %v3611_v48 = vsel %vm1250_vm1, %v3602_v46, 0  ;;  %v3097_v22 = vmul.f32 1.442695, %v3068_v18 }
 0xc2f   :  { %3619 = vmatpush.bf16.msrb.mxu3 %v3611_v48 }
 0xc32   :  { %3154 = vadd.xlane.f32.xlu2 %v3153_v30  ;;  %v3077_v30 = vsub.f32 %v6434_v16, %v3035_v53 }
 0xc34   :  { %v3115_v51 = vmul.f32 1.442695, %v3077_v30 }
 0xc3a   :  { %3163 = vadd.xlane.f32.xlu2 %v3162_v28 }
 0xc45   :  { %v3137_v4 = vpop.xlane.xlu0 %3136 }
 0xc46   :  { %4983 = vrcp.f32 %v3137_v4 }
 0xc4c   :  { %v4984_v35 = vpop.eup %4983 }
 0xc4d   :  { %v3140_v52 = vpop.xlane.xlu2 %3139  ;;  %v3231_v40 = vmul.f32 %v4984_v35, %v6458_v8  ;;  %v3050_v28 = vpop.xlane.xlu0 %3049 }
 0xc4e   :  { %4985 = vrcp.f32 %v3140_v52 }
 0xc4f   :  { %v3255_v11 = vpack.c.bf16 %v3231_v40, %v3231_v40 }
 0xc51   :  { %v3282_v55 = vunpack.c.l.b16 %v3255_v11 }
 0xc52   :  { %4799 = vrot.lane.b32.xlu2 %v6212_v26, %s5094_s3 }
 0xc54   :  { %v4986_v37 = vpop.eup %4985 }
 0xc55   :  { %v3232_v61 = vmul.f32 %v4986_v37, %v6467_v13  ;;  %v3017_v42 = vpop.xlane.xlu2 %3016  ;;  %v3026_v33 = vpop.xlane.xlu0 %3025 }
 0xc56   :  { %v3071_v58 = vsub.f32 %v6477_v20, %v3017_v42  ;;  %v3082_v42 = vsub.f32 %v6463_v25, %v3050_v28 }
 0xc57   :  { %v3256_v15 = vpack.c.bf16 %v3232_v61, %v3232_v61 }
 0xc58   :  { %v3103_v12 = vmul.f32 1.442695, %v3071_v58 }
 0xc59   :  { %v3283_v6 = vunpack.c.l.b16 %v3256_v15 }
 0xc5a   :  { %4987 = vpow2.f32 %v3103_v12  ;;  %v3125_v12 = vmul.f32 1.442695, %v3082_v42 }
 0xc5b   :  { %v3285_v50 = vpack.c.b16 %v3283_v6, %v3282_v55 }
 0xc5d   :  { %v3143_v8 = vpop.xlane.xlu2 %3142  ;;  %4527 = vmatmul.msk.bf16.vlgmr.msra.gmra.mxu0 %vm938_vm2, %v3285_v50 }
 0xc5e   :  { %4989 = vrcp.f32 %v3143_v8 }
 0xc5f   :  { %4991 = vpow2.f32 %v3117_v60 }
 0xc60   :  { %v6582_v26 = vpop.eup %4987 }
 0xc61   :  { %v3159_v13 = vsel %vm938_vm2, %v6582_v26, 0.0 }
 0xc62   :  { %3160 = vadd.xlane.f32.xlu0 %v3159_v13 }
 0xc64   :  { %v4990_v20 = vpop.eup %4989 }
 0xc65   :  { %v3233_v3 = vmul.f32 %v4990_v20, %v6489_v19  ;;  %v3149_v1 = vpop.xlane.xlu1 %3148  ;;  %v3041_v0 = vpop.xlane.xlu2 %3040 }
 0xc66   :  { %v6587_v5 = vpop.eup %4991  ;;  %4993 = vrcp.f32 %v3149_v1  ;;  %v3079_v16 = vsub.f32 %v6498_v62, %v3041_v0  ;;  %v3074_v62 = vsub.f32 %v6480_v31, %v3026_v33 }
 0xc67   :  { %v3257_v34 = vpack.c.bf16 %v3233_v3, %v3233_v3  ;;  %v3180_v49 = vsel %vm938_vm2, %v6587_v5, 0.0 }
 0xc68   :  { %v3109_v20 = vmul.f32 1.442695, %v3074_v62 }
 0xc69   :  { %v3284_v21 = vunpack.c.l.b16 %v3257_v34 }
 0xc6a   :  { %3181 = vadd.xlane.f32.xlu0 %v3180_v49 }
 0xc6b   :  { %v3286_v46 = vpack.c.b16 %v3284_v21, %v3284_v21 }
 0xc6c   :  { %v4994_v19 = vpop.eup %4993 }
 0xc6d   :  { %v3146_v48 = vpop.xlane.xlu2 %3145  ;;  %4528 = vmatmul.msk.bf16.gmra.mxu0 %vm938_vm2, %v3286_v46  ;;  %v3235_v4 = vmul.f32 %v4994_v19, %v6502_v27 }
 0xc6e   :  { %4995 = vrcp.f32 %v3146_v48 }
 0xc6f   :  { %4997 = vpow2.f32 %v3097_v22  ;;  %v3259_v10 = vpack.c.bf16 %v3235_v4, %v3235_v4 }
 0xc70   :  { %4999 = vpow2.f32 %v3115_v51 }
 0xc71   :  { %v3327_v15 = vunpack.c.l.b16 %v3259_v10 }
 0xc74   :  { %v4996_v52 = vpop.eup %4995 }
 0xc75   :  { %v3234_v35 = vmul.f32 %v4996_v52, %v6508_v47  ;;  %v3023_v40 = vpop.xlane.xlu2 %3022  ;;  %v6598_v11 = vpop.eup %4997 }
 0xc76   :  { %v3073_v37 = vsub.f32 %v6517_v9, %v3023_v40  ;;  %v3150_v27 = vsel %vm938_vm2, %v6598_v11, 0.0  ;;  %v3119_v9 = vmul.f32 1.442695, %v3079_v16  ;;  %v6606_v6 = vpop.eup %4999 }
 0xc77   :  { %v3258_v61 = vpack.c.bf16 %v3234_v35, %v3234_v35  ;;  %v3177_v13 = vsel %vm938_vm2, %v6606_v6, 0.0 }
 0xc78   :  { %v3107_v58 = vmul.f32 1.442695, %v3073_v37  ;;  %v3173_v37 = vpop.xlane.xlu1 %3172 }
 0xc79   :  { %v3326_v53 = vunpack.c.l.b16 %v3258_v61 }
 0xc7a   :  { %5001 = vpow2.f32 %v3107_v58 }
 0xc7b   :  { %v3329_v47 = vpack.c.b16 %v3327_v15, %v3326_v53  ;;  %3151 = vadd.xlane.f32.xlu2 %v3150_v27  ;;  %5003 = vpow2.f32 %v3125_v12 }
 0xc7c   :  { %5005 = vpow2.f32 %v3119_v9 }
 0xc7d   :  { %4529 = vmatmul.msk.bf16.vlgmr.msra.gmra.mxu1 %vm938_vm2, %v3329_v47  ;;  %v3047_v55 = vpop.xlane.xlu2 %3046 }
 0xc7e   :  { %v3081_v25 = vsub.f32 %v6531_v7, %v3047_v55  ;;  %v3056_v7 = vpop.xlane.xlu0 %3055 }
 0xc7f   :  { %v3084_v31 = vsub.f32 %v6487_v54, %v3056_v7 }
 0xc80   :  { %v6608_v50 = vpop.eup %5001  ;;  %v3123_v60 = vmul.f32 1.442695, %v3081_v25  ;;  %v3176_v47 = vpop.xlane.xlu1 %3175 }
 0xc81   :  { %v3165_v8 = vsel %vm938_vm2, %v6608_v50, 0.0  ;;  %v6615_v1 = vpop.eup %5003  ;;  %v3129_v46 = vmul.f32 1.442695, %v3084_v31  ;;  %v4792_v31 = vunpack.i.h.bf16 %v6338_v43 }
 0xc82   :  { %5007 = vpow2.f32 %v3123_v60  ;;  %3166 = vadd.xlane.f32.xlu1 %v3165_v8  ;;  %v6617_v0 = vpop.eup %5005  ;;  %v3192_v49 = vsel %vm938_vm2, %v6615_v1, 0.0 }
 0xc83   :  { %3178 = vadd.xlane.f32.xlu2 %v3177_v13  ;;  %5009 = vpow2.f32 %v3109_v20  ;;  %v3183_v21 = vsel %vm938_vm2, %v6617_v0, 0.0 }
 0xc84   :  { %5011 = vpow2.f32 %v3129_v46  ;;  %v2595_v46 = vpack.c.bf16 %v4792_v31, %v4792_v31 }
 0xc85   :  { %v3044_v3 = vpop.xlane.xlu2 %3043 }
 0xc86   :  { %v3158_v40 = vpop.xlane.xlu0 %3157 }
 0xc88   :  { %v6619_v34 = vpop.eup %5007 }
 0xc89   :  { %v3189_v18 = vsel %vm938_vm2, %v6619_v34, 0.0  ;;  %v6628_v48 = vpop.eup %5009 }
 0xc8a   :  { %3190 = vadd.xlane.f32.xlu0 %v3189_v18  ;;  %3193 = vadd.xlane.f32.xlu1 %v3192_v49  ;;  %v3168_v30 = vsel %vm938_vm2, %v6628_v48, 0.0  ;;  %v6633_v4 = vpop.eup %5011 }
 0xc8b   :  { %3184 = vadd.xlane.f32.xlu2 %v3183_v21 }
 0xc8d   :  { %v3053_v22 = vpop.xlane.xlu2 %3052 }
 0xc8e   :  { %v3083_v19 = vsub.f32 %v6547_v41, %v3053_v22  ;;  %v3198_v41 = vsel %vm938_vm2, %v6633_v4, 0.0 }
 0xc90   :  { %v3127_v54 = vmul.f32 1.442695, %v3083_v19 }
 0xc92   :  { %5013 = vpow2.f32 %v3127_v54  ;;  %3169 = vadd.xlane.f32.xlu0 %v3168_v30 }
 0xc95   :  { %v3059_v28 = vpop.xlane.xlu2 %3058 }
 0xc96   :  { %v3085_v52 = vsub.f32 %v6553_v36, %v3059_v28  ;;  %v3080_v36 = vsub.f32 %v6541_v56, %v3044_v3 }
 0xc98   :  { %v6636_v51 = vpop.eup %5013  ;;  %v3131_v10 = vmul.f32 1.442695, %v3085_v52  ;;  %v3121_v53 = vmul.f32 1.442695, %v3080_v36 }
 0xc99   :  { %v3195_v35 = vsel %vm938_vm2, %v6636_v51, 0.0 }
 0xc9a   :  { %5015 = vpow2.f32 %v3131_v10  ;;  %3196 = vadd.xlane.f32.xlu1 %v3195_v35  ;;  %3199 = vadd.xlane.f32.xlu0 %v3198_v41 }
 0xc9b   :  { %5017 = vrcp.f32 %v3158_v40 }
 0xc9d   :  { %v3062_v61 = vpop.xlane.xlu2 %3061 }
 0xc9e   :  { %v3086_v42 = vsub.f32 %v6561_v44, %v3062_v61 }
 0xca0   :  { %v6643_v58 = vpop.eup %5015  ;;  %v3133_v15 = vmul.f32 1.442695, %v3086_v42 }
 0xca1   :  { %v3201_v16 = vsel %vm938_vm2, %v6643_v58, 0.0  ;;  %v5018_v33 = vpop.eup %5017 }
 0xca2   :  { %5019 = vpow2.f32 %v3133_v15  ;;  %3202 = vadd.xlane.f32.xlu0 %v3201_v16  ;;  %v3238_v44 = vmul.f32 %v5018_v33, %v6519_v23 }
 0xca4   :  { %v3262_v55 = vpack.c.bf16 %v3238_v44, %v3238_v44 }
 0xca5   :  { %v3155_v27 = vpop.xlane.xlu2 %3154 }
 0xca6   :  { %5021 = vrcp.f32 %v3155_v27  ;;  %v3371_v20 = vunpack.c.l.b16 %v3262_v55 }
 0xca7   :  { %5023 = vpow2.f32 %v3121_v53 }
 0xca8   :  { %v6648_v12 = vpop.eup %5019  ;;  %5025 = vrcp.f32 %v3176_v47 }
 0xca9   :  { %v3204_v9 = vsel %vm938_vm2, %v6648_v12, 0.0  ;;  %5027 = vrcp.f32 %v3173_v37 }
 0xcaa   :  { %3205 = vadd.xlane.f32.xlu2 %v3204_v9 }
 0xcac   :  { %v5022_v56 = vpop.eup %5021 }
 0xcad   :  { %v3237_v25 = vmul.f32 %v5022_v56, %v6566_v29  ;;  %v3164_v62 = vpop.xlane.xlu2 %3163  ;;  %v6654_v60 = vpop.eup %5023  ;;  %v4484_v56 = vld [vmem:[%s7012_s9 + $0x10] sm:$0xf] }
 0xcae   :  { %v5026_v13 = vpop.eup %5025  ;;  %v3186_v23 = vsel %vm938_vm2, %v6654_v60, 0.0  ;;  %v3680_v55 = vsel %vm1250_vm1, %v4484_v56, 0 }
 0xcaf   :  { %v3261_v8 = vpack.c.bf16 %v3237_v25, %v3237_v25  ;;  %v5028_v3 = vpop.eup %5027  ;;  %v3244_v18 = vmul.f32 %v5026_v13, %v6533_v39  ;;  %v3466_v39 = vunpack.c.l.b16 %v2595_v46 }
 0xcb0   :  { %v3243_v29 = vmul.f32 %v5028_v3, %v6521_v32 }
 0xcb1   :  { %v3370_v7 = vunpack.c.l.b16 %v3261_v8  ;;  %v3268_v54 = vpack.c.bf16 %v3244_v18, %v3244_v18 }
 0xcb2   :  { %3187 = vadd.xlane.f32.xlu2 %v3186_v23  ;;  %v3267_v28 = vpack.c.bf16 %v3243_v29, %v3243_v29 }
 0xcb3   :  { %v3373_v49 = vpack.c.b16 %v3371_v20, %v3370_v7  ;;  %4804 = vrot.lane.b32.xlu1 %v6195_v17, %s5095_s22  ;;  %v3459_v35 = vunpack.c.l.b16 %v3268_v54 }
 0xcb4   :  { %v3458_v32 = vunpack.c.l.b16 %v3267_v28 }
 0xcb5   :  { %v4800_v21 = vpop.permute.xlu2 %4799  ;;  %4531 = vmatmul.msk.bf16.vlgmr.msra.gmra.mxu2 %vm938_vm2, %v3373_v49 }
 0xcb6   :  { %v4802_v22 = vunpack.i.h.bf16 %v4800_v21  ;;  %v4801_v19 = vunpack.i.l.bf16 %v4800_v21  ;;  %4809 = vrot.lane.b32.xlu0 %v6195_v17, %s5094_s3  ;;  %v3461_v61 = vpack.c.b16 %v3459_v35, %v3458_v32 }
 0xcb8   :  { %v2600_v43 = vpack.c.bf16 %v4802_v22, %v4802_v22  ;;  %v2596_v30 = vpack.c.bf16 %v4801_v19, %v4801_v19 }
 0xcba   :  { %v3512_v52 = vunpack.c.l.b16 %v2600_v43  ;;  %v3467_v10 = vunpack.c.l.b16 %v2596_v30 }
 0xcbc   :  { %v3514_v41 = vpack.c.b16 %v3512_v52, %v3512_v52  ;;  %v3469_v40 = vpack.c.b16 %v3467_v10, %v3466_v39 }
 0xcbe   :  { %3488 = vmatpush.bf16.msrb.mxu0 %v3469_v40  ;;  %v3523_v37 = vsel %vm1250_vm1, %v3514_v41, 0 }
 0xcbf   :  { %3531 = vmatpush.bf16.msrb.mxu1 %v3523_v37 }
 0xcc1   :  { %4535 = vmatmul.msk.bf16.vlgmr.msrb.gmra.mxu0 %vm938_vm2, %v3461_v61 }
 0xcc2   :  { %3689 = vmatpush.bf16.msra.mxu0 %v3680_v55 }
 0xcd5   :  { %v3161_v42 = vpop.xlane.xlu0 %3160 }
 0xcd6   :  { %5029 = vrcp.f32 %v3161_v42 }
 0xcda   :  { %v6668_v17 = vpop.f32.mrf.mxu0 }
 0xcdc   :  { %v5030_v36 = vpop.eup %5029 }
 0xcdd   :  { %v3239_v15 = vmul.f32 %v5030_v36, %v6582_v26  ;;  %v6678_v25 = vpop.xlane.xlu0 %3181 }
 0xcdf   :  { %v3263_v16 = vpack.c.bf16 %v3239_v15, %v3239_v15 }
 0xce1   :  { %v3372_v53 = vunpack.c.l.b16 %v3263_v16 }
 0xce2   :  { %v3316_v27 = vpop.f32.mrf.mxu0 }
 0xce3   :  { %v3374_v33 = vpack.c.b16 %v3372_v53, %v3372_v53  ;;  %v3632_v42 = vpack.c.bf16 %v3316_v27, %v3316_v27 }
 0xce5   :  { %4532 = vmatmul.msk.bf16.gmra.mxu2 %vm938_vm2, %v3374_v33  ;;  %v3662_v33 = vunpack.c.l.b16 %v3632_v42 }
 0xcea   :  { %v6672_v47 = vpop.f32.mrf.mxu0 }
 0xcee   :  { %v3152_v44 = vpop.xlane.xlu2 %3151 }
 0xcef   :  { %5031 = vrcp.f32 %v3152_v44 }
 0xcf0   :  { %5033 = vrcp.f32 %v3164_v62 }
 0xcf2   :  { %v3321_v9 = vpop.f32.mrf.mxu0 }
 0xcf5   :  { %v5032_v26 = vpop.eup %5031  ;;  %v3167_v8 = vpop.xlane.xlu1 %3166 }
 0xcf6   :  { %v5034_v13 = vpop.eup %5033  ;;  %v3236_v20 = vmul.f32 %v5032_v26, %v6598_v11  ;;  %5035 = vrcp.f32 %v3167_v8  ;;  %v3179_v7 = vpop.xlane.xlu2 %3178 }
 0xcf7   :  { %5037 = vrcp.f32 %v3179_v7  ;;  %v3240_v62 = vmul.f32 %v5034_v13, %v6571_v63 }
 0xcf8   :  { %v3260_v23 = vpack.c.bf16 %v3236_v20, %v3236_v20 }
 0xcf9   :  { %v3264_v29 = vpack.c.bf16 %v3240_v62, %v3240_v62  ;;  %v3633_v62 = vpack.c.bf16 %v6672_v47, %v6672_v47 }
 0xcfa   :  { %v3328_v3 = vunpack.c.l.b16 %v3260_v23 }
 0xcfb   :  { %v3414_v43 = vunpack.c.l.b16 %v3264_v29  ;;  %v3663_v29 = vunpack.c.l.b16 %v3633_v62 }
 0xcfc   :  { %v5036_v31 = vpop.eup %5035  ;;  %v3330_v18 = vpack.c.b16 %v3328_v3, %v3328_v3 }
 0xcfd   :  { %v5038_v49 = vpop.eup %5037  ;;  %v3241_v21 = vmul.f32 %v5036_v31, %v6608_v50  ;;  %v3194_v46 = vpop.xlane.xlu1 %3193 }
 0xcfe   :  { %v3191_v22 = vpop.xlane.xlu0 %3190  ;;  %v3245_v19 = vmul.f32 %v5038_v49, %v6606_v6  ;;  %5039 = vrcp.f32 %v3194_v46  ;;  %4530 = vmatmul.msk.bf16.gmra.mxu1 %vm938_vm2, %v3330_v18  ;;  %v3185_v13 = vpop.xlane.xlu2 %3184 }
 0xcff   :  { %v3265_v11 = vpack.c.bf16 %v3241_v21, %v3241_v21  ;;  %5041 = vrcp.f32 %v3191_v22 }
 0xd00   :  { %v3269_v54 = vpack.c.bf16 %v3245_v19, %v3245_v19 }
 0xd01   :  { %v3415_v30 = vunpack.c.l.b16 %v3265_v11 }
 0xd02   :  { %v3460_v63 = vunpack.c.l.b16 %v3269_v54 }
 0xd03   :  { %v3417_v28 = vpack.c.b16 %v3415_v30, %v3414_v43 }
 0xd04   :  { %v5040_v39 = vpop.eup %5039  ;;  %v3462_v52 = vpack.c.b16 %v3460_v63, %v3460_v63 }
 0xd05   :  { %v5042_v10 = vpop.eup %5041  ;;  %v3250_v35 = vmul.f32 %v5040_v39, %v6615_v1  ;;  %4533 = vmatmul.msk.bf16.vlgmr.msra.gmra.mxu3 %vm938_vm2, %v3417_v28  ;;  %v3631_v1 = vpack.c.bf16 %v6668_v17, %v6668_v17  ;;  %v3358_v17 = vpop.f32.mrf.mxu1 }
 0xd06   :  { %v3170_v50 = vpop.xlane.xlu0 %3169  ;;  %v3249_v6 = vmul.f32 %v5042_v10, %v6619_v34  ;;  %4536 = vmatmul.msk.bf16.gmra.mxu0 %vm938_vm2, %v3462_v52  ;;  %v3634_v23 = vpack.c.bf16 %v3358_v17, %v3358_v17 }
 0xd07   :  { %5043 = vrcp.f32 %v3170_v50  ;;  %v3274_v41 = vpack.c.bf16 %v3250_v35, %v3250_v35  ;;  %v3661_v9 = vunpack.c.l.b16 %v3631_v1 }
 0xd08   :  { %v3273_v40 = vpack.c.bf16 %v3249_v6, %v3249_v6  ;;  %v3664_v3 = vunpack.c.l.b16 %v3634_v23 }
 0xd09   :  { %v3547_v32 = vunpack.c.l.b16 %v3274_v41  ;;  %v3667_v26 = vpack.c.b16 %v3662_v33, %v3661_v9 }
 0xd0a   :  { %v3546_v37 = vunpack.c.l.b16 %v3273_v40  ;;  %v3668_v46 = vpack.c.b16 %v3664_v3, %v3663_v29 }
 0xd0c   :  { %v3549_v36 = vpack.c.b16 %v3547_v32, %v3546_v37 }
 0xd0d   :  { %v5044_v61 = vpop.eup %5043  ;;  %v3197_v16 = vpop.xlane.xlu1 %3196 }
 0xd0e   :  { %v3242_v15 = vmul.f32 %v5044_v61, %v6628_v48  ;;  %v3200_v53 = vpop.xlane.xlu0 %3199  ;;  %5045 = vrcp.f32 %v3197_v16  ;;  %4539 = vmatmul.msk.bf16.vlgmr.msrb.gmra.mxu2 %vm938_vm2, %v3549_v36  ;;  %v4485_v16 = vld [vmem:[%s7012_s9 + $0x14] sm:$0xf] }
 0xd0f   :  { %v3731_v33 = vsel %vm1250_vm1, %v4485_v16, 0 }
 0xd10   :  { %v3266_v34 = vpack.c.bf16 %v3242_v15, %v3242_v15 }
 0xd12   :  { %v3416_v44 = vunpack.c.l.b16 %v3266_v34 }
 0xd14   :  { %v3418_v56 = vpack.c.b16 %v3416_v44, %v3416_v44  ;;  %v5046_v55 = vpop.eup %5045 }
 0xd15   :  { %v3251_v27 = vmul.f32 %v5046_v55, %v6636_v51 }
 0xd16   :  { %4534 = vmatmul.msk.bf16.gmra.mxu3 %vm938_vm2, %v3418_v56  ;;  %4543 = vmatmul.msk.bf16.vlgmr.msra.gmra.mxu0 %vm565_vm14, %v3667_v26  ;;  %v3203_v8 = vpop.xlane.xlu0 %3202 }
 0xd17   :  { %v3275_v48 = vpack.c.bf16 %v3251_v27, %v3251_v27  ;;  %5047 = vrcp.f32 %v3203_v8 }
 0xd18   :  { %5049 = vrcp.f32 %v3185_v13 }
 0xd19   :  { %v3548_v20 = vunpack.c.l.b16 %v3275_v48  ;;  %5051 = vrcp.f32 %v3200_v53 }
 0xd1a   :  { %5053 = vrcp.f32 %v6678_v25 }
 0xd1b   :  { %v3550_v7 = vpack.c.b16 %v3548_v20, %v3548_v20 }
 0xd1d   :  { %v5048_v51 = vpop.eup %5047  ;;  %v3206_v31 = vpop.xlane.xlu2 %3205 }
 0xd1e   :  { %4540 = vmatmul.msk.bf16.gmra.mxu2 %vm938_vm2, %v3550_v7  ;;  %v5050_v18 = vpop.eup %5049  ;;  %v3253_v21 = vmul.f32 %v5048_v51, %v6643_v58  ;;  %5055 = vrcp.f32 %v3206_v31 }
 0xd1f   :  { %v5052_v49 = vpop.eup %5051  ;;  %v3247_v19 = vmul.f32 %v5050_v18, %v6617_v0  ;;  %v4486_v0 = vld [vmem:[%s7012_s9 + $0x18] sm:$0xf] }
 0xd20   :  { %v5054_v22 = vpop.eup %5053  ;;  %v3252_v11 = vmul.f32 %v5052_v49, %v6633_v4  ;;  %v3277_v25 = vpack.c.bf16 %v3253_v21, %v3253_v21  ;;  %v3782_v41 = vsel %vm1250_vm1, %v4486_v0, 0 }
 0xd21   :  { %v3246_v30 = vmul.f32 %v5054_v22, %v6587_v5  ;;  %v3271_v52 = vpack.c.bf16 %v3247_v19, %v3247_v19  ;;  %3791 = vmatpush.bf16.msra.mxu2 %v3782_v41 }
 0xd22   :  { %v3276_v10 = vpack.c.bf16 %v3252_v11, %v3252_v11  ;;  %v3591_v40 = vunpack.c.l.b16 %v3277_v25 }
 0xd23   :  { %v3270_v37 = vpack.c.bf16 %v3246_v30, %v3246_v30  ;;  %v3503_v53 = vunpack.c.l.b16 %v3271_v52  ;;  %v4487_v30 = vld [vmem:[%s7012_s9 + $0x1c] sm:$0xf] }
 0xd24   :  { %v3590_v42 = vunpack.c.l.b16 %v3276_v10  ;;  %v5056_v44 = vpop.eup %5055 }
 0xd25   :  { %v4805_v54 = vpop.permute.xlu1 %4804  ;;  %v3188_v4 = vpop.xlane.xlu2 %3187  ;;  %v3502_v9 = vunpack.c.l.b16 %v3270_v37  ;;  %v3254_v26 = vmul.f32 %v5056_v44, %v6648_v12 }
 0xd26   :  { %v4807_v47 = vunpack.i.h.bf16 %v4805_v54  ;;  %v4806_v43 = vunpack.i.l.bf16 %v4805_v54  ;;  %4544 = vmatmul.msk.bf16.gmra.mxu0 %vm565_vm14, %v3668_v46  ;;  %5057 = vrcp.f32 %v3188_v4  ;;  %v3593_v1 = vpack.c.b16 %v3591_v40, %v3590_v42 }
 0xd27   :  { %v3505_v56 = vpack.c.b16 %v3503_v53, %v3502_v9  ;;  %v3278_v48 = vpack.c.bf16 %v3254_v26, %v3254_v26 }
 0xd28   :  { %v2605_v63 = vpack.c.bf16 %v4807_v47, %v4807_v47  ;;  %v2604_v28 = vpack.c.bf16 %v4806_v43, %v4806_v43  ;;  %v4810_v39 = vpop.permute.xlu0 %4809  ;;  %v3360_v47 = vpop.f32.mrf.mxu1 }
 0xd29   :  { %v4812_v58 = vunpack.i.h.bf16 %v4810_v39  ;;  %v4811_v35 = vunpack.i.l.bf16 %v4810_v39  ;;  %v3592_v13 = vunpack.c.l.b16 %v3278_v48  ;;  %v3635_v43 = vpack.c.bf16 %v3360_v47, %v3360_v47 }
 0xd2a   :  { %v3599_v50 = vunpack.c.l.b16 %v2605_v63  ;;  %v3598_v6 = vunpack.c.l.b16 %v2604_v28  ;;  %v3833_v28 = vsel %vm1250_vm1, %v4487_v30, 0 }
 0xd2b   :  { %v2599_v32 = vpack.c.bf16 %v4812_v58, %v4812_v58  ;;  %v2598_v5 = vpack.c.bf16 %v4811_v35, %v4811_v35  ;;  %v3594_v23 = vpack.c.b16 %v3592_v13, %v3592_v13  ;;  %v3665_v39 = vunpack.c.l.b16 %v3635_v43 }
 0xd2c   :  { %v3601_v61 = vpack.c.b16 %v3599_v50, %v3598_v6  ;;  %v5058_v55 = vpop.eup %5057 }
 0xd2d   :  { %v3511_v36 = vunpack.c.l.b16 %v2599_v32  ;;  %v3510_v15 = vunpack.c.l.b16 %v2598_v5  ;;  %v3248_v27 = vmul.f32 %v5058_v55, %v6654_v60 }
 0xd2e   :  { %3620 = vmatpush.bf16.msrb.mxu3 %v3601_v61 }
 0xd2f   :  { %v3513_v34 = vpack.c.b16 %v3511_v36, %v3510_v15  ;;  %v3272_v8 = vpack.c.bf16 %v3248_v27, %v3248_v27 }
 0xd31   :  { %3532 = vmatpush.bf16.msrb.mxu1 %v3513_v34  ;;  %4541 = vmatmul.msk.bf16.vlgmr.msrb.gmra.mxu3 %vm938_vm2, %v3593_v1  ;;  %v3504_v7 = vunpack.c.l.b16 %v3272_v8 }
 0xd32   :  { %3842 = vmatpush.bf16.msra.mxu3 %v3833_v28 }
 0xd33   :  { %v3506_v62 = vpack.c.b16 %v3504_v7, %v3504_v7 }
 0xd34   :  { %4537 = vmatmul.msk.bf16.vlgmr.msrb.gmra.mxu1 %vm938_vm2, %v3505_v56 }
 0xd35   :  { %3740 = vmatpush.bf16.msra.mxu1 %v3731_v33 }
 0xd38   :  { %v3402_v17 = vpop.f32.mrf.mxu2 }
 0xd39   :  { %v3637_v21 = vpack.c.bf16 %v3402_v17, %v3402_v17 }
 0xd3b   :  { %v3712_v22 = vunpack.c.l.b16 %v3637_v21 }
 0xd3e   :  { %v3490_v20 = vpop.f32.mrf.mxu0 }
 0xd3f   :  { %v3643_v51 = vpack.c.bf16 %v3490_v20, %v3490_v20 }
 0xd40   :  { %v3404_v31 = vpop.f32.mrf.mxu2 }
 0xd41   :  { %4542 = vmatmul.msk.bf16.gmra.mxu3 %vm938_vm2, %v3594_v23  ;;  %v3763_v18 = vunpack.c.l.b16 %v3643_v51  ;;  %v3638_v29 = vpack.c.bf16 %v3404_v31, %v3404_v31 }
 0xd43   :  { %v3713_v46 = vunpack.c.l.b16 %v3638_v29 }
 0xd44   :  { %4538 = vmatmul.msk.bf16.gmra.mxu1 %vm938_vm2, %v3506_v62 }
 0xd45   :  { %v3718_v19 = vpack.c.b16 %v3713_v46, %v3712_v22 }
 0xd46   :  { %v3492_v3 = vpop.f32.mrf.mxu0 }
 0xd47   :  { %v3644_v12 = vpack.c.bf16 %v3492_v3, %v3492_v3 }
 0xd49   :  { %v3764_v49 = vunpack.c.l.b16 %v3644_v12 }
 0xd4b   :  { %v3769_v60 = vpack.c.b16 %v3764_v49, %v3763_v18 }
 0xd4d   :  { %4549 = vmatmul.msk.bf16.vlgmr.msra.gmra.mxu2 %vm565_vm14, %v3769_v60 }
 0xd54   :  { %4546 = vmatmul.msk.bf16.vlgmr.msra.gmra.mxu1 %vm565_vm14, %v3718_v19 }
 0xd68   :  { %v3407_v11 = vpop.f32.mrf.mxu2 }
 0xd69   :  { %v3639_v0 = vpack.c.bf16 %v3407_v11, %v3407_v11 }
 0xd6b   :  { %v3714_v6 = vunpack.c.l.b16 %v3639_v0 }
 0xd70   :  { %v3409_v54 = vpop.f32.mrf.mxu2 }
 0xd7b   :  { %v3363_v25 = vpop.f32.mrf.mxu1 }
 0xd7c   :  { %v3636_v63 = vpack.c.bf16 %v3363_v25, %v3363_v25 }
 0xd7e   :  { %v3666_v52 = vunpack.c.l.b16 %v3636_v63 }
 0xd80   :  { %v3669_v10 = vpack.c.b16 %v3666_v52, %v3665_v39 }
 0xd82   :  { %4545 = vmatmul.msk.bf16.gmra.mxu0 %vm565_vm14, %v3669_v10 }
 0xd83   :  { %v3365_v58 = vpop.f32.mrf.mxu1  ;;  %v3495_v35 = vpop.f32.mrf.mxu0 }
 0xd84   :  { %v3645_v48 = vpack.c.bf16 %v3495_v35, %v3495_v35 }
 0xd86   :  { %v3765_v20 = vunpack.c.l.b16 %v3645_v48 }
 0xd88   :  { %v3446_v4 = vpop.f32.mrf.mxu3 }
 0xd89   :  { %v3640_v50 = vpack.c.bf16 %v3446_v4, %v3446_v4 }
 0xd8b   :  { %v3715_v41 = vunpack.c.l.b16 %v3640_v50  ;;  %v3497_v40 = vpop.f32.mrf.mxu0 }
 0xd8d   :  { %v3719_v32 = vpack.c.b16 %v3715_v41, %v3714_v6 }
 0xd8f   :  { %4547 = vmatmul.msk.bf16.gmra.mxu1 %vm565_vm14, %v3719_v32  ;;  %v6739_v32 = vld [vmem:[%s7013_s10 + $0x1] ss:$0 sm:$0xff] }
 0xd90   :  { %v3448_v5 = vpop.f32.mrf.mxu3 }
 0xd91   :  { %v3578_v37 = vpop.f32.mrf.mxu2  ;;  %v3641_v61 = vpack.c.bf16 %v3448_v5, %v3448_v5 }
 0xd92   :  { %v3649_v42 = vpack.c.bf16 %v3578_v37, %v3578_v37 }
 0xd93   :  { %v3716_v1 = vunpack.c.l.b16 %v3641_v61  ;;  %v3691_v52 = vpop.f32.mrf.mxu0 }
 0xd94   :  { %v3814_v33 = vunpack.c.l.b16 %v3649_v42  ;;  %v3859_v35 = vsel %vm84_vm0, %v3691_v52, 0.0 }
 0xd99   :  { %v3451_v36 = vpop.f32.mrf.mxu3  ;;  %v3580_v16 = vpop.f32.mrf.mxu2 }
 0xd9a   :  { %v3642_v15 = vpack.c.bf16 %v3451_v36, %v3451_v36  ;;  %v3650_v53 = vpack.c.bf16 %v3580_v16, %v3580_v16 }
 0xd9b   :  { %v3693_v6 = vpop.f32.mrf.mxu0 }
 0xd9c   :  { %v3717_v34 = vunpack.c.l.b16 %v3642_v15  ;;  %v3815_v44 = vunpack.c.l.b16 %v3650_v53  ;;  %v3866_v42 = vsel %vm84_vm0, %v3693_v6, 0.0 }
 0xd9e   :  { %v3720_v9 = vpack.c.b16 %v3717_v34, %v3716_v1  ;;  %v3820_v56 = vpack.c.b16 %v3815_v44, %v3814_v33 }
 0xda0   :  { %4548 = vmatmul.msk.bf16.gmra.mxu1 %vm565_vm14, %v3720_v9  ;;  %4552 = vmatmul.msk.bf16.vlgmr.msra.gmra.mxu3 %vm565_vm14, %v3820_v56 }
 0xda1   :  { %v3453_v55 = vpop.f32.mrf.mxu3  ;;  %v3583_v26 = vpop.f32.mrf.mxu2 }
 0xda2   :  { %v3651_v17 = vpack.c.bf16 %v3583_v26, %v3583_v26 }
 0xda3   :  { %v3696_v48 = vpop.f32.mrf.mxu0 }
 0xda4   :  { %v3816_v3 = vunpack.c.l.b16 %v3651_v17  ;;  %v3873_v17 = vsel %vm84_vm0, %v3696_v48, 0.0 }
 0xda9   :  { %v3585_v27 = vpop.f32.mrf.mxu2 }
 0xdb1   :  { %v3534_v8 = vpop.f32.mrf.mxu1 }
 0xdb2   :  { %v3646_v13 = vpack.c.bf16 %v3534_v8, %v3534_v8 }
 0xdb4   :  { %v3766_v7 = vunpack.c.l.b16 %v3646_v13  ;;  %v3622_v23 = vpop.f32.mrf.mxu3 }
 0xdb5   :  { %v3652_v62 = vpack.c.bf16 %v3622_v23, %v3622_v23 }
 0xdb6   :  { %v3770_v51 = vpack.c.b16 %v3766_v7, %v3765_v20 }
 0xdb7   :  { %v3817_v31 = vunpack.c.l.b16 %v3652_v62  ;;  %v3698_v62 = vpop.f32.mrf.mxu0 }
 0xdb8   :  { %4550 = vmatmul.msk.bf16.gmra.mxu2 %vm565_vm14, %v3770_v51 }
 0xdb9   :  { %v3821_v12 = vpack.c.b16 %v3817_v31, %v3816_v3  ;;  %v3536_v18 = vpop.f32.mrf.mxu1 }
 0xdba   :  { %v3647_v29 = vpack.c.bf16 %v3536_v18, %v3536_v18  ;;  %v3880_v18 = vsel %vm84_vm0, %v3698_v62, 0.0 }
 0xdbb   :  { %4553 = vmatmul.msk.bf16.gmra.mxu3 %vm565_vm14, %v3821_v12 }
 0xdbc   :  { %v3624_v49 = vpop.f32.mrf.mxu3  ;;  %v3767_v22 = vunpack.c.l.b16 %v3647_v29 }
 0xdbd   :  { %v3653_v46 = vpack.c.bf16 %v3624_v49, %v3624_v49 }
 0xdbf   :  { %v3818_v43 = vunpack.c.l.b16 %v3653_v46 }
 0xdc1   :  { %v3539_v60 = vpop.f32.mrf.mxu1 }
 0xdc2   :  { %v3648_v21 = vpack.c.bf16 %v3539_v60, %v3539_v60 }
 0xdc4   :  { %v3768_v19 = vunpack.c.l.b16 %v3648_v21  ;;  %v3627_v11 = vpop.f32.mrf.mxu3 }
 0xdc5   :  { %v3654_v54 = vpack.c.bf16 %v3627_v11, %v3627_v11 }
 0xdc6   :  { %v3771_v47 = vpack.c.b16 %v3768_v19, %v3767_v22 }
 0xdc7   :  { %v3819_v25 = vunpack.c.l.b16 %v3654_v54 }
 0xdc8   :  { %4551 = vmatmul.msk.bf16.gmra.mxu2 %vm565_vm14, %v3771_v47 }
 0xdc9   :  { %v3822_v30 = vpack.c.b16 %v3819_v25, %v3818_v43  ;;  %v3541_v63 = vpop.f32.mrf.mxu1 }
 0xdcb   :  { %4554 = vmatmul.msk.bf16.gmra.mxu3 %vm565_vm14, %v3822_v30 }
 0xdcc   :  { %v3629_v28 = vpop.f32.mrf.mxu3 }
 0xdd0   :  { %v3793_v58 = vpop.f32.mrf.mxu2 }
 0xdd1   :  { %v3742_v39 = vpop.f32.mrf.mxu1  ;;  %v3862_v50 = vsel %vm84_vm0, %v3793_v58, 0.0 }
 0xdd2   :  { %v3860_v10 = vsel %vm84_vm0, %v3742_v39, 0.0 }
 0xdd3   :  { %v3861_v0 = vadd.f32 %v3860_v10, %v3859_v35 }
 0xdd5   :  { %v3863_v40 = vadd.f32 %v3862_v50, %v3861_v0 }
 0xdd8   :  { %v3795_v36 = vpop.f32.mrf.mxu2 }
 0xdd9   :  { %v3744_v4 = vpop.f32.mrf.mxu1  ;;  %v3869_v1 = vsel %vm84_vm0, %v3795_v36, 0.0 }
 0xdda   :  { %v3867_v5 = vsel %vm84_vm0, %v3744_v4, 0.0 }
 0xddb   :  { %v3868_v15 = vadd.f32 %v3867_v5, %v3866_v42 }
 0xddd   :  { %v3870_v33 = vadd.f32 %v3869_v1, %v3868_v15 }
 0xdff   :  { %v3701_v19 = vpop.f32.mrf.mxu0 }
 0xe00   :  { %v3887_v63 = vsel %vm84_vm0, %v3701_v19, 0.0 }
 0xe07   :  { %v3703_v50 = vpop.f32.mrf.mxu0 }
 0xe08   :  { %v3894_v5 = vsel %vm84_vm0, %v3703_v50, 0.0 }
 0xe0c   :  { %v3747_v55 = vpop.f32.mrf.mxu1 }
 0xe0d   :  { %v3874_v8 = vsel %vm84_vm0, %v3747_v55, 0.0 }
 0xe0e   :  { %v3875_v20 = vadd.f32 %v3874_v8, %v3873_v17 }
 0xe14   :  { %v3749_v13 = vpop.f32.mrf.mxu1 }
 0xe15   :  { %v3881_v31 = vsel %vm84_vm0, %v3749_v13, 0.0 }
 0xe16   :  { %v3882_v29 = vadd.f32 %v3881_v31, %v3880_v18 }
 0xe1d   :  { %v3752_v60 = vpop.f32.mrf.mxu1 }
 0xe1e   :  { %v3888_v25 = vsel %vm84_vm0, %v3752_v60, 0.0 }
 0xe1f   :  { %v3889_v39 = vadd.f32 %v3888_v25, %v3887_v63  ;;  %v4617_v25 = vld [vmem:[%s7017_s11 + $0x10] sm:$0xff] }
 0xe23   :  { %v3844_v41 = vpop.f32.mrf.mxu3 }
 0xe24   :  { %v3864_v37 = vsel %vm84_vm0, %v3844_v41, 0.0 }
 0xe25   :  { %v3865_v61 = vadd.f32 %v3864_v37, %v3863_v40  ;;  %v3754_v58 = vpop.f32.mrf.mxu1 }
 0xe26   :  { %v3895_v41 = vsel %vm84_vm0, %v3754_v58, 0.0 }
 0xe27   :  { %v3904_v16 = vadd.f32 %v6739_v32, %v3865_v61  ;;  %v3896_v61 = vadd.f32 %v3895_v41, %v3894_v5 }
 0xe29   :  { %v6746_v53 = vadd.f32 %v3904_v16, %v6111_v45 }
 0xe2b   :  { %v3846_v34 = vpop.f32.mrf.mxu3  ;;  %v3920_v44 = vsel %vm84_vm0, %v6746_v53, 0.0 }
 0xe2c   :  { %v3871_v9 = vsel %vm84_vm0, %v3846_v34, 0.0  ;;  %3921 = vadd.xlane.f32.xlu2 %v3920_v44 }
 0xe2d   :  { %v3872_v56 = vadd.f32 %v3871_v9, %v3870_v33 }
 0xe2f   :  { %v3905_v26 = vadd.f32 %v6739_v32, %v3872_v56 }
 0xe31   :  { %v6754_v27 = vadd.f32 %v3905_v26, %v6115_v59 }
 0xe33   :  { %v3923_v45 = vsel %vm84_vm0, %v6754_v27, 0.0 }
 0xe34   :  { %3924 = vadd.xlane.f32.xlu0 %v3923_v45 }
 0xe3b   :  { %v3798_v7 = vpop.f32.mrf.mxu2 }
 0xe3c   :  { %v3876_v23 = vsel %vm84_vm0, %v3798_v7, 0.0 }
 0xe3d   :  { %v3877_v51 = vadd.f32 %v3876_v23, %v3875_v20 }
 0xe3e   :  { %v3849_v3 = vpop.f32.mrf.mxu3 }
 0xe3f   :  { %v3878_v59 = vsel %vm84_vm0, %v3849_v3, 0.0 }
 0xe40   :  { %v3879_v12 = vadd.f32 %v3878_v59, %v3877_v51 }
 0xe42   :  { %v3906_v49 = vadd.f32 %v6739_v32, %v3879_v12 }
 0xe43   :  { %v3800_v21 = vpop.f32.mrf.mxu2 }
 0xe44   :  { %v3883_v46 = vsel %vm84_vm0, %v3800_v21, 0.0  ;;  %v3912_v22 = vadd.f32 %v3906_v49, %v6138_v57 }
 0xe45   :  { %v3884_v11 = vadd.f32 %v3883_v46, %v3882_v29 }
 0xe46   :  { %v3851_v54 = vpop.f32.mrf.mxu3  ;;  %v3926_v47 = vsel %vm84_vm0, %v3912_v22, 0.0 }
 0xe47   :  { %v3885_v43 = vsel %vm84_vm0, %v3851_v54, 0.0  ;;  %3927 = vadd.xlane.f32.xlu1 %v3926_v47  ;;  %v4618_v54 = vld [vmem:[%s7017_s11 + $0x18] sm:$0xff] }
 0xe48   :  { %v3886_v30 = vadd.f32 %v3885_v43, %v3884_v11  ;;  %4121 = vmatpush.bf16.msrb.mxu0 %v4618_v54 }
 0xe4a   :  { %v3907_v28 = vadd.f32 %v6739_v32, %v3886_v30 }
 0xe4b   :  { %v3803_v52 = vpop.f32.mrf.mxu2 }
 0xe4c   :  { %v3890_v10 = vsel %vm84_vm0, %v3803_v52, 0.0  ;;  %v3913_v57 = vadd.f32 %v3907_v28, %v6141_v2  ;;  %4122 = vmatpush.bf16.msrb.mxu0 %v4617_v25 }
 0xe4d   :  { %v3891_v35 = vadd.f32 %v3890_v10, %v3889_v39 }
 0xe4e   :  { %v3854_v0 = vpop.f32.mrf.mxu3  ;;  %v3929_v4 = vsel %vm84_vm0, %v3913_v57, 0.0 }
 0xe4f   :  { %v3892_v6 = vsel %vm84_vm0, %v3854_v0, 0.0  ;;  %3930 = vadd.xlane.f32.xlu2 %v3929_v4 }
 0xe50   :  { %v3893_v40 = vadd.f32 %v3892_v6, %v3891_v35 }
 0xe52   :  { %v3908_v37 = vadd.f32 %v6739_v32, %v3893_v40 }
 0xe53   :  { %v3805_v42 = vpop.f32.mrf.mxu2 }
 0xe54   :  { %v3897_v2 = vsel %vm84_vm0, %v3805_v42, 0.0  ;;  %v3914_v36 = vadd.f32 %v3908_v37, %v6160_v38  ;;  %v6835_v37 = vld [vmem:[%s7014_s15 + $0x1] ss:$0 sm:$0xff] }
 0xe55   :  { %v3898_v15 = vadd.f32 %v3897_v2, %v3896_v61 }
 0xe56   :  { %v3856_v16 = vpop.f32.mrf.mxu3  ;;  %v3932_v1 = vsel %vm84_vm0, %v3914_v36, 0.0 }
 0xe57   :  { %v3899_v34 = vsel %vm84_vm0, %v3856_v16, 0.0  ;;  %3933 = vadd.xlane.f32.xlu2 %v3932_v1  ;;  %v6842_v1 = vld [vmem:[%s7015_s16 + $0x1] ss:$0 sm:$0xff] }
 0xe58   :  { %v3900_v33 = vadd.f32 %v3899_v34, %v3898_v15 }
 0xe5a   :  { %v3909_v44 = vadd.f32 %v6739_v32, %v3900_v33 }
 0xe5c   :  { %v3915_v9 = vadd.f32 %v3909_v44, %v6163_v24 }
 0xe5e   :  { %v3935_v56 = vsel %vm84_vm0, %v3915_v9, 0.0 }
 0xe5f   :  { %3936 = vadd.xlane.f32.xlu2 %v3935_v56 }
 0xe9f   :  { %v3922_v55 = vpop.xlane.xlu2 %3921 }
 0xea0   :  { %v3938_v26 = vmul.f32 %v3922_v55, %v5213_v14 }
 0xea2   :  { %v6788_v38 = vsub.f32 %v6746_v53, %v3938_v26 }
 0xea4   :  { %v3950_v48 = vmul.f32 %v6788_v38, %v6788_v38 }
 0xea6   :  { %v3956_v45 = vsel %vm84_vm0, %v3950_v48, 0.0 }
 0xea7   :  { %v3925_v8 = vpop.xlane.xlu0 %3924  ;;  %3957 = vadd.xlane.f32.xlu2 %v3956_v45 }
 0xea8   :  { %v3939_v32 = vmul.f32 %v3925_v8, %v5213_v14 }
 0xeaa   :  { %v6795_v24 = vsub.f32 %v6754_v27, %v3939_v32 }
 0xeac   :  { %v3951_v13 = vmul.f32 %v6795_v24, %v6795_v24 }
 0xeae   :  { %v3959_v17 = vsel %vm84_vm0, %v3951_v13, 0.0 }
 0xeaf   :  { %3960 = vadd.xlane.f32.xlu2 %v3959_v17 }
 0xeba   :  { %v3928_v53 = vpop.xlane.xlu1 %3927 }
 0xebb   :  { %v3940_v20 = vmul.f32 %v3928_v53, %v5213_v14 }
 0xebd   :  { %v6801_v7 = vsub.f32 %v3912_v22, %v3940_v20 }
 0xebf   :  { %v3952_v23 = vmul.f32 %v6801_v7, %v6801_v7 }
 0xec1   :  { %v3962_v62 = vsel %vm84_vm0, %v3952_v23, 0.0 }
 0xec2   :  { %3963 = vadd.xlane.f32.xlu0 %v3962_v62  ;;  %v3931_v51 = vpop.xlane.xlu2 %3930 }
 0xec3   :  { %v3941_v27 = vmul.f32 %v3931_v51, %v5213_v14 }
 0xec5   :  { %v6807_v3 = vsub.f32 %v3913_v57, %v3941_v27 }
 0xec7   :  { %v3953_v59 = vmul.f32 %v6807_v3, %v6807_v3 }
 0xec9   :  { %v3965_v31 = vsel %vm84_vm0, %v3953_v59, 0.0 }
 0xeca   :  { %3966 = vadd.xlane.f32.xlu1 %v3965_v31  ;;  %v3934_v12 = vpop.xlane.xlu2 %3933 }
 0xecb   :  { %v3942_v18 = vmul.f32 %v3934_v12, %v5213_v14 }
 0xecd   :  { %v6813_v49 = vsub.f32 %v3914_v36, %v3942_v18 }
 0xecf   :  { %v3954_v29 = vmul.f32 %v6813_v49, %v6813_v49 }
 0xed1   :  { %v3968_v60 = vsel %vm84_vm0, %v3954_v29, 0.0 }
 0xed2   :  { %3969 = vadd.xlane.f32.xlu2 %v3968_v60  ;;  %v3937_v21 = vpop.xlane.xlu2 %3936 }
 0xed3   :  { %v3943_v46 = vmul.f32 %v3937_v21, %v5213_v14 }
 0xed5   :  { %v6819_v22 = vsub.f32 %v3915_v9, %v3943_v46 }
 0xed7   :  { %v3955_v19 = vmul.f32 %v6819_v22, %v6819_v22 }
 0xed9   :  { %v3971_v11 = vsel %vm84_vm0, %v3955_v19, 0.0 }
 0xeda   :  { %3972 = vadd.xlane.f32.xlu0 %v3971_v11 }
 0xf1a   :  { %v3958_v47 = vpop.xlane.xlu2 %3957 }
 0xf1b   :  { %v3974_v43 = vmul.f32 %v3958_v47, %v5213_v14 }
 0xf1d   :  { %v3980_v30 = vadd.f32 1e-05, %v3974_v43 }
 0xf1f   :  { %5059 = vrsqrt.f32 %v3980_v30  ;;  %vm3992_vm1 = vweird.f32 %v3980_v30 }
 0xf22   :  { %v3961_v63 = vpop.xlane.xlu2 %3960 }
 0xf23   :  { %v3975_v28 = vmul.f32 %v3961_v63, %v5213_v14 }
 0xf25   :  { %v5060_v39 = vpop.eup %5059  ;;  %v3981_v52 = vadd.f32 1e-05, %v3975_v28 }
 0xf26   :  { %v3987_v10 = vmul.f32 %v5060_v39, %v3980_v30  ;;  %vm3993_vm14 = vweird.f32 %v5060_v39 }
 0xf27   :  { %5061 = vrsqrt.f32 %v3981_v52  ;;  %vm3994_vm2 = vmor %vm3992_vm1, %vm3993_vm14  ;;  %vm4002_vm7 = vweird.f32 %v3981_v52 }
 0xf28   :  { %v3988_v57 = vmul.f32 %v5060_v39, %v3987_v10 }
 0xf2a   :  { %v3989_v58 = vmul.f32 0.5, %v3988_v57 }
 0xf2c   :  { %v3990_v35 = vsub.f32 1.5, %v3989_v58 }
 0xf2d   :  { %v5062_v0 = vpop.eup %5061 }
 0xf2e   :  { %v3991_v4 = vmul.f32 %v5060_v39, %v3990_v35  ;;  %v3997_v50 = vmul.f32 %v5062_v0, %v3981_v52  ;;  %vm4003_vm6 = vweird.f32 %v5062_v0 }
 0xf2f   :  { %vm4004_vm8 = vmor %vm4002_vm7, %vm4003_vm6 }
 0xf30   :  { %v3998_v6 = vmul.f32 %v5062_v0, %v3997_v50  ;;  %v3995_v41 = vsel %vm3994_vm2, %v5060_v39, %v3991_v4 }
 0xf31   :  { %v4046_v61 = vmul.f32 %v3995_v41, %v6788_v38 }
 0xf32   :  { %v3999_v40 = vmul.f32 0.5, %v3998_v6 }
 0xf33   :  { %v4055_v34 = vmul.f32 %v6835_v37, %v4046_v61 }
 0xf34   :  { %v4000_v5 = vsub.f32 1.5, %v3999_v40 }
 0xf35   :  { %v3964_v42 = vpop.xlane.xlu0 %3963  ;;  %v6848_v9 = vadd.f32 %v6842_v1, %v4055_v34 }
 0xf36   :  { %v4001_v2 = vmul.f32 %v5062_v0, %v4000_v5  ;;  %v3976_v36 = vmul.f32 %v3964_v42, %v5213_v14 }
 0xf38   :  { %v4005_v15 = vsel %vm4004_vm8, %v5062_v0, %v4001_v2  ;;  %v3982_v16 = vadd.f32 1e-05, %v3976_v36 }
 0xf39   :  { %v4047_v33 = vmul.f32 %v4005_v15, %v6795_v24  ;;  %v4619_v15 = vld [vmem:[%s7019_s13 + $0x20] sm:$0xff] }
 0xf3a   :  { %5063 = vrsqrt.f32 %v3982_v16  ;;  %vm4012_vm11 = vweird.f32 %v3982_v16 }
 0xf3b   :  { %v4056_v44 = vmul.f32 %v6835_v37, %v4047_v33 }
 0xf3d   :  { %v6851_v56 = vadd.f32 %v6842_v1, %v4056_v44  ;;  %v3967_v55 = vpop.xlane.xlu1 %3966 }
 0xf3e   :  { %v3977_v26 = vmul.f32 %v3967_v55, %v5213_v14 }
 0xf3f   :  { %v4088_v38 = vpack.c.bf16 %v6851_v56, %v6848_v9 }
 0xf40   :  { %v5064_v48 = vpop.eup %5063  ;;  %v3983_v45 = vadd.f32 1e-05, %v3977_v26 }
 0xf41   :  { %v4007_v8 = vmul.f32 %v5064_v48, %v3982_v16  ;;  %4579 = vmatmul.msk.bf16.vlgmr.msrb.gmra.mxu0 %vm84_vm0, %v4088_v38  ;;  %vm4013_vm9 = vweird.f32 %v5064_v48 }
 0xf42   :  { %5065 = vrsqrt.f32 %v3983_v45  ;;  %vm4014_vm12 = vmor %vm4012_vm11, %vm4013_vm9  ;;  %vm4022_vm15 = vweird.f32 %v3983_v45 }
 0xf43   :  { %v4008_v32 = vmul.f32 %v5064_v48, %v4007_v8 }
 0xf45   :  { %v4009_v24 = vmul.f32 0.5, %v4008_v32  ;;  %v3970_v13 = vpop.xlane.xlu2 %3969 }
 0xf46   :  { %v3978_v17 = vmul.f32 %v3970_v13, %v5213_v14 }
 0xf47   :  { %v4010_v53 = vsub.f32 1.5, %v4009_v24 }
 0xf48   :  { %v5066_v20 = vpop.eup %5065  ;;  %v3984_v23 = vadd.f32 1e-05, %v3978_v17 }
 0xf49   :  { %v4011_v62 = vmul.f32 %v5064_v48, %v4010_v53  ;;  %v4017_v51 = vmul.f32 %v5066_v20, %v3983_v45  ;;  %vm4023_vm13 = vweird.f32 %v5066_v20 }
 0xf4a   :  { %5067 = vrsqrt.f32 %v3984_v23  ;;  %vm4024_vm3 = vmor %vm4022_vm15, %vm4023_vm13  ;;  %vm4032_vm5 = vweird.f32 %v3984_v23 }
 0xf4b   :  { %v4018_v27 = vmul.f32 %v5066_v20, %v4017_v51  ;;  %v4015_v59 = vsel %vm4014_vm12, %v5064_v48, %v4011_v62 }
 0xf4c   :  { %v4048_v21 = vmul.f32 %v4015_v59, %v6801_v7 }
 0xf4d   :  { %v4019_v31 = vmul.f32 0.5, %v4018_v27  ;;  %v3973_v12 = vpop.xlane.xlu0 %3972 }
 0xf4e   :  { %v3979_v18 = vmul.f32 %v3973_v12, %v5213_v14  ;;  %v4057_v25 = vmul.f32 %v6835_v37, %v4048_v21 }
 0xf4f   :  { %v4020_v29 = vsub.f32 1.5, %v4019_v31  ;;  %v4830_v31 = vld [vmem:[%s7018_s14 + $0x1] ss:$0 sm:$0xff] }
 0xf50   :  { %v5068_v60 = vpop.eup %5067  ;;  %v3985_v46 = vadd.f32 1e-05, %v3979_v18  ;;  %v6864_v52 = vadd.f32 %v6842_v1, %v4057_v25 }
 0xf51   :  { %v4021_v19 = vmul.f32 %v5066_v20, %v4020_v29  ;;  %v4027_v11 = vmul.f32 %v5068_v60, %v3984_v23  ;;  %vm4033_vm4 = vweird.f32 %v5068_v60 }
 0xf52   :  { %5069 = vrsqrt.f32 %v3985_v46  ;;  %vm4034_vm14 = vmor %vm4032_vm5, %vm4033_vm4  ;;  %vm4042_vm2 = vweird.f32 %v3985_v46 }
 0xf53   :  { %v4025_v54 = vsel %vm4024_vm3, %v5066_v20, %v4021_v19  ;;  %v4028_v47 = vmul.f32 %v5068_v60, %v4027_v11 }
 0xf54   :  { %v4049_v43 = vmul.f32 %v4025_v54, %v6807_v3 }
 0xf55   :  { %v4029_v30 = vmul.f32 0.5, %v4028_v47 }
 0xf56   :  { %v4058_v63 = vmul.f32 %v6835_v37, %v4049_v43 }
 0xf57   :  { %v4030_v28 = vsub.f32 1.5, %v4029_v30 }
 0xf58   :  { %v5070_v39 = vpop.eup %5069  ;;  %v6867_v7 = vadd.f32 %v6842_v1, %v4058_v63 }
 0xf59   :  { %v4031_v10 = vmul.f32 %v5068_v60, %v4030_v28  ;;  %v4037_v57 = vmul.f32 %v5070_v39, %v3985_v46  ;;  %vm4043_vm1 = vweird.f32 %v5070_v39 }
 0xf5a   :  { %v4089_v58 = vpack.c.bf16 %v6867_v7, %v6864_v52  ;;  %vm4044_vm6 = vmor %vm4042_vm2, %vm4043_vm1 }
 0xf5b   :  { %v4038_v3 = vmul.f32 %v5070_v39, %v4037_v57  ;;  %v4035_v35 = vsel %vm4034_vm14, %v5068_v60, %v4031_v10 }
 0xf5c   :  { %4580 = vmatmul.msk.bf16.gmra.mxu0 %vm84_vm0, %v4089_v58  ;;  %v4050_v50 = vmul.f32 %v4035_v35, %v6813_v49  ;;  %v4622_v49 = vld [vmem:[%s7019_s13 + $0x38] sm:$0xff] }
 0xf5d   :  { %v4039_v0 = vmul.f32 0.5, %v4038_v3  ;;  %4188 = vmatpush.bf16.msrb.mxu1 %v4622_v49 }
 0xf5e   :  { %v4059_v5 = vmul.f32 %v6835_v37, %v4050_v50 }
 0xf5f   :  { %v4040_v4 = vsub.f32 1.5, %v4039_v0 }
 0xf60   :  { %v4068_v42 = vadd.f32 %v6842_v1, %v4059_v5 }
 0xf61   :  { %v4041_v6 = vmul.f32 %v5070_v39, %v4040_v4 }
 0xf63   :  { %v4045_v41 = vsel %vm4044_vm6, %v5070_v39, %v4041_v6 }
 0xf64   :  { %v4051_v40 = vmul.f32 %v4045_v41, %v6819_v22  ;;  %v4621_v22 = vld [vmem:[%s7019_s13 + $0x30] sm:$0xff] }
 0xf65   :  { %4189 = vmatpush.bf16.msrb.mxu1 %v4621_v22 }
 0xf66   :  { %v4060_v61 = vmul.f32 %v6835_v37, %v4051_v40  ;;  %v4620_v37 = vld [vmem:[%s7019_s13 + $0x28] sm:$0xff] }
 0xf68   :  { %v6878_v2 = vadd.f32 %v6842_v1, %v4060_v61  ;;  %v4829_v1 = vld [vmem:[%s7016_s12 + $0x1] ss:$0 sm:$0xff] }
 0xf69   :  { %4190 = vmatpush.bf16.msrb.mxu1 %v4620_v37 }
 0xf6a   :  { %v4090_v36 = vpack.c.bf16 %v6878_v2, %v4068_v42 }
 0xf6c   :  { %4581 = vmatmul.msk.bf16.gmra.mxu0 %vm84_vm0, %v4090_v36 }
 0xf6d   :  { %4191 = vmatpush.bf16.msrb.mxu1 %v4619_v15 }
 0xfbe   :  { %v4124_v16 = vpop.f32.mrf.mxu0 }
 0xfbf   :  { %v4125_v34 = vadd.f32 %v4829_v1, %v4124_v16 }
 0xfc1   :  { %v4139_v55 = vmax.f32 %v4125_v34, 0.0 }
 0xfc6   :  { %v4126_v33 = vpop.f32.mrf.mxu0 }
 0xfc7   :  { %v4127_v44 = vadd.f32 %v4829_v1, %v4126_v33 }
 0xfc9   :  { %v4140_v26 = vmax.f32 %v4127_v44, 0.0 }
 0xfcb   :  { %v4145_v38 = vpack.c.bf16 %v4140_v26, %v4139_v55 }
 0xfcd   :  { %4598 = vmatmul.msk.bf16.vlgmr.msrb.gmra.mxu1 %vm2118_vm10, %v4145_v38 }
 0xfd9   :  { %v4129_v48 = vpop.f32.mrf.mxu0 }
 0xfda   :  { %v4130_v45 = vadd.f32 %v4829_v1, %v4129_v48 }
 0xfdc   :  { %v4141_v24 = vmax.f32 %v4130_v45, 0.0 }
 0xfe1   :  { %v4131_v8 = vpop.f32.mrf.mxu0 }
 0xfe2   :  { %v4132_v32 = vadd.f32 %v4829_v1, %v4131_v8 }
 0xfe4   :  { %v4142_v13 = vmax.f32 %v4132_v32, 0.0 }
 0xfe6   :  { %v4146_v17 = vpack.c.bf16 %v4142_v13, %v4141_v24 }
 0xfe8   :  { %4599 = vmatmul.msk.bf16.gmra.mxu1 %vm2118_vm10, %v4146_v17 }
 0xfe9   :  { %v4134_v53 = vpop.f32.mrf.mxu0 }
 0xfea   :  { %v4135_v20 = vadd.f32 %v4829_v1, %v4134_v53 }
 0xfec   :  { %v4143_v51 = vmax.f32 %v4135_v20, 0.0 }
 0xff1   :  { %v4136_v23 = vpop.f32.mrf.mxu0 }
 0xff2   :  { %v4137_v62 = vadd.f32 %v4829_v1, %v4136_v23 }
 0xff4   :  { %v4144_v27 = vmax.f32 %v4137_v62, 0.0 }
 0xff6   :  { %v4147_v59 = vpack.c.bf16 %v4144_v27, %v4143_v51 }
 0xff8   :  { %4600 = vmatmul.msk.bf16.gmra.mxu1 %vm2118_vm10, %v4147_v59 }
0x104a   :  { %v4193_v12 = vpop.f32.mrf.mxu1 }
0x104b   :  { %v4194_v18 = vadd.f32 %v4830_v31, %v4193_v12 }
0x104d   :  { %v4208_v29 = vadd.f32 %v4194_v18, %v6848_v9 }
0x104f   :  { %v4218_v60 = vsel %vm84_vm0, %v4208_v29, 0.0 }
0x1050   :  { %4219 = vadd.xlane.f32.xlu1 %v4218_v60 }
0x1052   :  { %v4195_v21 = vpop.f32.mrf.mxu1 }
0x1053   :  { %v4196_v46 = vadd.f32 %v4830_v31, %v4195_v21 }
0x1055   :  { %v4209_v19 = vadd.f32 %v4196_v46, %v6851_v56  ;;  %v6951_v46 = vld [vmem:[%s7020_s17 + $0x1] ss:$0 sm:$0xff] }
0x1057   :  { %v4221_v11 = vsel %vm84_vm0, %v4209_v19, 0.0 }
0x1058   :  { %4222 = vadd.xlane.f32.xlu2 %v4221_v11 }
0x1065   :  { %v4198_v54 = vpop.f32.mrf.mxu1 }
0x1066   :  { %v4199_v47 = vadd.f32 %v4830_v31, %v4198_v54  ;;  %v6956_v54 = vld [vmem:[%s7021_s18 + $0x1] ss:$0 sm:$0xff] }
0x1068   :  { %v4210_v43 = vadd.f32 %v4199_v47, %v6864_v52 }
0x106a   :  { %v4224_v25 = vsel %vm84_vm0, %v4210_v43, 0.0 }
0x106b   :  { %4225 = vadd.xlane.f32.xlu0 %v4224_v25 }
0x106d   :  { %v4200_v30 = vpop.f32.mrf.mxu1 }
0x106e   :  { %v4201_v63 = vadd.f32 %v4830_v31, %v4200_v30 }
0x1070   :  { %v4211_v9 = vadd.f32 %v4201_v63, %v6867_v7 }
0x1072   :  { %v4227_v28 = vsel %vm84_vm0, %v4211_v9, 0.0 }
0x1073   :  { %4228 = vadd.xlane.f32.xlu1 %v4227_v28 }
0x1075   :  { %v4203_v39 = vpop.f32.mrf.mxu1 }
0x1076   :  { %v4204_v10 = vadd.f32 %v4830_v31, %v4203_v39 }
0x1078   :  { %v4212_v56 = vadd.f32 %v4204_v10, %v4068_v42 }
0x107a   :  { %v4230_v57 = vsel %vm84_vm0, %v4212_v56, 0.0 }
0x107b   :  { %4231 = vadd.xlane.f32.xlu2 %v4230_v57 }
0x107d   :  { %v4205_v58 = vpop.f32.mrf.mxu1 }
0x107e   :  { %v4206_v3 = vadd.f32 %v4830_v31, %v4205_v58 }
0x1080   :  { %v4213_v52 = vadd.f32 %v4206_v3, %v6878_v2 }
0x1082   :  { %v4233_v35 = vsel %vm84_vm0, %v4213_v52, 0.0 }
0x1083   :  { %4234 = vadd.xlane.f32.xlu0 %v4233_v35 }
0x10c3   :  { %v4220_v0 = vpop.xlane.xlu1 %4219 }
0x10c4   :  { %v4236_v4 = vmul.f32 %v4220_v0, %v5213_v14 }
0x10c6   :  { %v4242_v7 = vsub.f32 %v4208_v29, %v4236_v4 }
0x10c8   :  { %v4248_v50 = vmul.f32 %v4242_v7, %v4242_v7 }
0x10ca   :  { %v4254_v6 = vsel %vm84_vm0, %v4248_v50, 0.0 }
0x10cb   :  { %4255 = vadd.xlane.f32.xlu1 %v4254_v6  ;;  %v4223_v41 = vpop.xlane.xlu2 %4222 }
0x10cc   :  { %v4237_v40 = vmul.f32 %v4223_v41, %v5213_v14 }
0x10ce   :  { %v6917_v5 = vsub.f32 %v4209_v19, %v4237_v40 }
0x10d0   :  { %v4249_v61 = vmul.f32 %v6917_v5, %v6917_v5 }
0x10d2   :  { %v4257_v42 = vsel %vm84_vm0, %v4249_v61, 0.0 }
0x10d3   :  { %4258 = vadd.xlane.f32.xlu2 %v4257_v42 }
0x10de   :  { %v4226_v2 = vpop.xlane.xlu0 %4225 }
0x10df   :  { %v4238_v36 = vmul.f32 %v4226_v2, %v5213_v14 }
0x10e1   :  { %v6923_v49 = vsub.f32 %v4210_v43, %v4238_v36 }
0x10e3   :  { %v4250_v22 = vmul.f32 %v6923_v49, %v6923_v49 }
0x10e5   :  { %v4260_v37 = vsel %vm84_vm0, %v4250_v22, 0.0 }
0x10e6   :  { %v4229_v15 = vpop.xlane.xlu1 %4228  ;;  %4261 = vadd.xlane.f32.xlu0 %v4260_v37 }
0x10e7   :  { %v4239_v16 = vmul.f32 %v4229_v15, %v5213_v14 }
0x10e9   :  { %v6929_v1 = vsub.f32 %v4211_v9, %v4239_v16 }
0x10eb   :  { %v4251_v34 = vmul.f32 %v6929_v1, %v6929_v1 }
0x10ed   :  { %v4263_v33 = vsel %vm84_vm0, %v4251_v34, 0.0 }
0x10ee   :  { %4264 = vadd.xlane.f32.xlu1 %v4263_v33  ;;  %v4232_v44 = vpop.xlane.xlu2 %4231 }
0x10ef   :  { %v4240_v55 = vmul.f32 %v4232_v44, %v5213_v14 }
0x10f1   :  { %v6935_v26 = vsub.f32 %v4212_v56, %v4240_v55 }
0x10f3   :  { %v4252_v38 = vmul.f32 %v6935_v26, %v6935_v26 }
0x10f5   :  { %v4266_v48 = vsel %vm84_vm0, %v4252_v38, 0.0 }
0x10f6   :  { %v4235_v45 = vpop.xlane.xlu0 %4234  ;;  %4267 = vadd.xlane.f32.xlu2 %v4266_v48 }
0x10f7   :  { %v4241_v8 = vmul.f32 %v4235_v45, %v5213_v14 }
0x10f9   :  { %v6941_v32 = vsub.f32 %v4213_v52, %v4241_v8 }
0x10fb   :  { %v4253_v24 = vmul.f32 %v6941_v32, %v6941_v32 }
0x10fd   :  { %v4269_v13 = vsel %vm84_vm0, %v4253_v24, 0.0 }
0x10fe   :  { %4270 = vadd.xlane.f32.xlu0 %v4269_v13 }
0x113e   :  { %v4256_v17 = vpop.xlane.xlu1 %4255 }
0x113f   :  { %v4272_v53 = vmul.f32 %v4256_v17, %v5213_v14 }
0x1141   :  { %v4278_v20 = vadd.f32 1e-05, %v4272_v53 }
0x1143   :  { %5071 = vrsqrt.f32 %v4278_v20  ;;  %vm4290_vm7 = vweird.f32 %v4278_v20 }
0x1146   :  { %v4259_v23 = vpop.xlane.xlu2 %4258 }
0x1147   :  { %v4273_v62 = vmul.f32 %v4259_v23, %v5213_v14 }
0x1149   :  { %v5072_v51 = vpop.eup %5071  ;;  %v4279_v27 = vadd.f32 1e-05, %v4273_v62 }
0x114a   :  { %v4285_v59 = vmul.f32 %v5072_v51, %v4278_v20  ;;  %vm4291_vm10 = vweird.f32 %v5072_v51 }
0x114b   :  { %5073 = vrsqrt.f32 %v4279_v27  ;;  %vm4292_vm8 = vmor %vm4290_vm7, %vm4291_vm10  ;;  %vm4300_vm11 = vweird.f32 %v4279_v27 }
0x114c   :  { %v4286_v31 = vmul.f32 %v5072_v51, %v4285_v59 }
0x114e   :  { %v4287_v12 = vmul.f32 0.5, %v4286_v31 }
0x1150   :  { %v4288_v18 = vsub.f32 1.5, %v4287_v12 }
0x1151   :  { %v5074_v29 = vpop.eup %5073 }
0x1152   :  { %v4289_v60 = vmul.f32 %v5072_v51, %v4288_v18  ;;  %v4295_v21 = vmul.f32 %v5074_v29, %v4279_v27  ;;  %vm4301_vm9 = vweird.f32 %v5074_v29 }
0x1153   :  { %vm4302_vm12 = vmor %vm4300_vm11, %vm4301_vm9 }
0x1154   :  { %v4293_v19 = vsel %vm4292_vm8, %v5072_v51, %v4289_v60  ;;  %v4296_v11 = vmul.f32 %v5074_v29, %v4295_v21 }
0x1155   :  { %v4344_v47 = vmul.f32 %v4293_v19, %v4242_v7 }
0x1156   :  { %v4297_v43 = vmul.f32 0.5, %v4296_v11 }
0x1157   :  { %v4353_v25 = vmul.f32 %v6951_v46, %v4344_v47 }
0x1158   :  { %v4298_v30 = vsub.f32 1.5, %v4297_v43 }
0x1159   :  { %v4362_v63 = vadd.f32 %v6956_v54, %v4353_v25  ;;  %v4262_v9 = vpop.xlane.xlu0 %4261 }
0x115a   :  { %v4299_v28 = vmul.f32 %v5074_v29, %v4298_v30  ;;  %v4274_v39 = vmul.f32 %v4262_v9, %v5213_v14 }
0x115b   :  { %4368 = vst.msk [vmem:[%s7022_s19] sm:$0xff] %vm84_vm0, %v4362_v63 }
0x115c   :  { %v4303_v10 = vsel %vm4302_vm12, %v5074_v29, %v4299_v28  ;;  %v4280_v56 = vadd.f32 1e-05, %v4274_v39 }
0x115d   :  { %v4345_v57 = vmul.f32 %v4303_v10, %v6917_v5 }
0x115e   :  { %5075 = vrsqrt.f32 %v4280_v56  ;;  %vm4310_vm15 = vweird.f32 %v4280_v56 }
0x115f   :  { %v4354_v58 = vmul.f32 %v6951_v46, %v4345_v57 }
0x1161   :  { %v4363_v3 = vadd.f32 %v6956_v54, %v4354_v58  ;;  %v4265_v52 = vpop.xlane.xlu1 %4264 }
0x1162   :  { %v4275_v35 = vmul.f32 %v4265_v52, %v5213_v14 }
0x1163   :  { %4369 = vst.msk [vmem:[%s7022_s19 + $0x8] sm:$0xff] %vm84_vm0, %v4363_v3 }
0x1164   :  { %v5076_v0 = vpop.eup %5075  ;;  %v4281_v4 = vadd.f32 1e-05, %v4275_v35 }
0x1165   :  { %v4305_v7 = vmul.f32 %v5076_v0, %v4280_v56  ;;  %vm4311_vm13 = vweird.f32 %v5076_v0 }
0x1166   :  { %5077 = vrsqrt.f32 %v4281_v4  ;;  %vm4312_vm3 = vmor %vm4310_vm15, %vm4311_vm13  ;;  %vm4320_vm5 = vweird.f32 %v4281_v4 }
0x1167   :  { %v4306_v50 = vmul.f32 %v5076_v0, %v4305_v7 }
0x1169   :  { %v4307_v6 = vmul.f32 0.5, %v4306_v50  ;;  %v4268_v41 = vpop.xlane.xlu2 %4267 }
0x116a   :  { %v4276_v40 = vmul.f32 %v4268_v41, %v5213_v14 }
0x116b   :  { %v4308_v5 = vsub.f32 1.5, %v4307_v6 }
0x116c   :  { %v5078_v61 = vpop.eup %5077  ;;  %v4282_v42 = vadd.f32 1e-05, %v4276_v40 }
0x116d   :  { %v4309_v2 = vmul.f32 %v5076_v0, %v4308_v5  ;;  %v4315_v36 = vmul.f32 %v5078_v61, %v4281_v4  ;;  %vm4321_vm4 = vweird.f32 %v5078_v61 }
0x116e   :  { %5079 = vrsqrt.f32 %v4282_v42  ;;  %vm4322_vm14 = vmor %vm4320_vm5, %vm4321_vm4  ;;  %vm4330_vm2 = vweird.f32 %v4282_v42 }
0x116f   :  { %v4313_v22 = vsel %vm4312_vm3, %v5076_v0, %v4309_v2  ;;  %v4316_v37 = vmul.f32 %v5078_v61, %v4315_v36 }
0x1170   :  { %v4346_v15 = vmul.f32 %v4313_v22, %v6923_v49 }
0x1171   :  { %v4317_v16 = vmul.f32 0.5, %v4316_v37  ;;  %v4271_v34 = vpop.xlane.xlu0 %4270 }
0x1172   :  { %v4355_v33 = vmul.f32 %v6951_v46, %v4346_v15  ;;  %v4277_v44 = vmul.f32 %v4271_v34, %v5213_v14 }
0x1173   :  { %v4318_v55 = vsub.f32 1.5, %v4317_v16 }
0x1174   :  { %v5080_v38 = vpop.eup %5079  ;;  %v4364_v48 = vadd.f32 %v6956_v54, %v4355_v33  ;;  %v4283_v45 = vadd.f32 1e-05, %v4277_v44 }
0x1175   :  { %v4319_v8 = vmul.f32 %v5078_v61, %v4318_v55  ;;  %v4325_v24 = vmul.f32 %v5080_v38, %v4282_v42  ;;  %vm4331_vm1 = vweird.f32 %v5080_v38 }
0x1176   :  { %4370 = vst.msk [vmem:[%s7022_s19 + $0x10] sm:$0xff] %vm84_vm0, %v4364_v48  ;;  %5081 = vrsqrt.f32 %v4283_v45  ;;  %vm4332_vm6 = vmor %vm4330_vm2, %vm4331_vm1  ;;  %vm4340_vm7 = vweird.f32 %v4283_v45 }
0x1177   :  { %v4323_v49 = vsel %vm4322_vm14, %v5078_v61, %v4319_v8  ;;  %v4326_v13 = vmul.f32 %v5080_v38, %v4325_v24 }
0x1178   :  { %v4347_v14 = vmul.f32 %v4323_v49, %v6929_v1 }
0x1179   :  { %v4327_v17 = vmul.f32 0.5, %v4326_v13 }
0x117a   :  { %v4356_v53 = vmul.f32 %v6951_v46, %v4347_v14 }
0x117b   :  { %v4328_v20 = vsub.f32 1.5, %v4327_v17 }
0x117c   :  { %v5082_v23 = vpop.eup %5081  ;;  %v4365_v62 = vadd.f32 %v6956_v54, %v4356_v53 }
0x117d   :  { %v4329_v51 = vmul.f32 %v5080_v38, %v4328_v20  ;;  %v4335_v27 = vmul.f32 %v5082_v23, %v4283_v45  ;;  %vm4341_vm10 = vweird.f32 %v5082_v23 }
0x117e   :  { %4371 = vst.msk [vmem:[%s7022_s19 + $0x18] sm:$0xff] %vm84_vm0, %v4365_v62  ;;  %vm4342_vm8 = vmor %vm4340_vm7, %vm4341_vm10 }
0x117f   :  { %v4333_v59 = vsel %vm4332_vm6, %v5080_v38, %v4329_v51  ;;  %v4336_v31 = vmul.f32 %v5082_v23, %v4335_v27 }
0x1180   :  { %v4348_v1 = vmul.f32 %v4333_v59, %v6935_v26 }
0x1181   :  { %v4337_v12 = vmul.f32 0.5, %v4336_v31 }
0x1182   :  { %v4357_v18 = vmul.f32 %v6951_v46, %v4348_v1 }
0x1183   :  { %v4338_v29 = vsub.f32 1.5, %v4337_v12 }
0x1184   :  { %v4366_v60 = vadd.f32 %v6956_v54, %v4357_v18 }
0x1185   :  { %v4339_v21 = vmul.f32 %v5082_v23, %v4338_v29 }
0x1186   :  { %4372 = vst.msk [vmem:[%s7022_s19 + $0x20] sm:$0xff] %vm84_vm0, %v4366_v60 }
0x1187   :  { %v4343_v19 = vsel %vm4342_vm8, %v5082_v23, %v4339_v21 }
0x1188   :  { %v4349_v11 = vmul.f32 %v4343_v19, %v6941_v32 }
0x118a   :  { %v4358_v26 = vmul.f32 %v6951_v46, %v4349_v11 }
0x118c   :  { %v4367_v47 = vadd.f32 %v6956_v54, %v4358_v26 }
0x118e   :  { %4373 = vst.msk [vmem:[%s7022_s19 + $0x28] sm:$0xff] %vm84_vm0, %v4367_v47 }

</bundles_post_ra>
